<compile_context>
chip_gen: v5e
topology: v5e:2x2
jax: 0.10.0
libtpu: 0.0.40
codegen_flags: <defaults>
</compile_context>

<pallas_src>
import jax
import jax.numpy as jnp
from jax.experimental import pallas as pl
from jax.experimental.pallas import tpu as pltpu

_LANES = 128
_MAX_TILE_N = 256  # rows of the batch processed per grid step


def _round_up(x, m):
    return ((x + m - 1) // m) * m


# ---------------------------------------------------------------------------
# Fused Pallas kernel: 3 x (matmul + bias + activation), sigmoid at the end.
# ---------------------------------------------------------------------------
def _fused_critic_kernel(x_ref, w1_ref, b1_ref, w2_ref, b2_ref, w3_ref, b3_ref,
                         o_ref):
    # x_ref : (tile_n, 1024) bf16  -- flattened NCHW input rows
    # w*_ref: dense folded conv operators, bf16;  b*_ref: (1, D) f32
    # o_ref : (tile_n, 128) f32    -- column 0 holds sigmoid(D(x))
    h = jnp.dot(x_ref[...], w1_ref[...], preferred_element_type=jnp.float32)
    h = h + b1_ref[...]
    h = jnp.where(h > 0, h, 0.2 * h)                 # LeakyReLU(0.2), f32
    h = h.astype(jnp.bfloat16)

    h = jnp.dot(h, w2_ref[...], preferred_element_type=jnp.float32)
    h = h + b2_ref[...]
    h = jnp.where(h > 0, h, 0.2 * h)
    h = h.astype(jnp.bfloat16)

    logit = jnp.dot(h, w3_ref[...], preferred_element_type=jnp.float32)
    logit = logit + b3_ref[...]
    # sigmoid(x) = 1 / (1 + exp(-x)): exp and reciprocal both on the EUP slot.
    prob = pl.reciprocal(1.0 + jnp.exp(-logit), approx=True)
    o_ref[...] = jnp.clip(prob, 0.0, 1.0)


def wrap_critic_d_forward(dense, x):
    """prob = sigmoid(D(x)).  x: (N, 4, 16, 16) NCHW f32 -> (N, 1, 1, 1) f32."""
    n = x.shape[0]
    k1 = dense["w1"].shape[0]
    d1 = dense["w1"].shape[1]
    d2 = dense["w2"].shape[1]

    x_flat = x.reshape(n, k1).astype(jnp.bfloat16)
    tile_n = min(_MAX_TILE_N, _round_up(n, 8))
    n_pad = _round_up(n, tile_n)
    if n_pad != n:
        x_flat = jnp.pad(x_flat, ((0, n_pad - n), (0, 0)))

    const = lambda i: (0, 0)   # weights / biases: same (resident) block per tile
    out = pl.pallas_call(
        _fused_critic_kernel,
        out_shape=jax.ShapeDtypeStruct((n_pad, _LANES), jnp.float32),
        grid=(n_pad // tile_n,),
        in_specs=[
            pl.BlockSpec((tile_n, k1), lambda i: (i, 0)),   # x tile
            pl.BlockSpec((k1, d1), const),                  # W1 dense
            pl.BlockSpec((1, d1), const),                   # b1
            pl.BlockSpec((d1, d2), const),                  # W2 dense
            pl.BlockSpec((1, d2), const),                   # b2
            pl.BlockSpec((d2, _LANES), const),              # W3 dense (padded)
            pl.BlockSpec((1, _LANES), const),               # b3 (padded)
        ],
        out_specs=pl.BlockSpec((tile_n, _LANES), lambda i: (i, 0)),
        compiler_params=pltpu.CompilerParams(
            dimension_semantics=("parallel",),
            vmem_limit_bytes=32 * 1024 * 1024,
        ),
    )(x_flat, dense["w1"], dense["b1"], dense["w2"], dense["b2"],
      dense["w3"], dense["b3"])

    return out[:n, :1].reshape(n, 1, 1, 1)


# ---------------------------------------------------------------------------
# Weight-only preprocessing (done once, independent of the batch): fold each
# Conv2d over its fixed input geometry into a dense matrix on flattened NCHW.
# ---------------------------------------------------------------------------
def _conv_as_dense(weight, stride, pad, in_shape):
    cin, h, w = in_shape
    eye = jnp.eye(cin * h * w, dtype=jnp.float32).reshape(cin * h * w, cin, h, w)
    out = jax.lax.conv_general_dilated(
        eye, weight, window_strides=(stride, stride),
        padding=[(pad, pad), (pad, pad)],
        dimension_numbers=("NCHW", "OIHW", "NCHW"))
    cout, ho, wo = out.shape[1:]
    return out.reshape(cin * h * w, cout * ho * wo), (cout, ho, wo)


def prepare_dense_params(params, in_shape=(4, 16, 16)):
    d1, s1 = _conv_as_dense(params["w1"], 2, 1, in_shape)
    d2, s2 = _conv_as_dense(params["w2"], 2, 1, s1)
    d3, s3 = _conv_as_dense(params["w3"], 1, 0, s2)
    assert s3 == (1, 1, 1), s3

    def bias_flat(b, s):
        return jnp.repeat(b, s[1] * s[2]).reshape(1, -1).astype(jnp.float32)

    d3p = jnp.pad(d3, ((0, 0), (0, _LANES - d3.shape[1])))
    b3p = jnp.pad(params["b3"].reshape(1, 1),
                  ((0, 0), (0, _LANES - 1))).astype(jnp.float32)
    return {
        "w1": d1.astype(jnp.bfloat16), "b1": bias_flat(params["b1"], s1),
        "w2": d2.astype(jnp.bfloat16), "b2": bias_flat(params["b2"], s2),
        "w3": d3p.astype(jnp.bfloat16), "b3": b3p,
    }


def init_params(key, nc=4, ndf=16):
    ks = jax.random.split(key, 6)
    std = 0.02  # DCGAN init
    return {
        "w1": std * jax.random.normal(ks[0], (ndf, nc, 4, 4), jnp.float32),
        "b1": 0.01 * jax.random.normal(ks[1], (ndf,), jnp.float32),
        "w2": std * jax.random.normal(ks[2], (2 * ndf, ndf, 4, 4), jnp.float32),
        "b2": 0.01 * jax.random.normal(ks[3], (2 * ndf,), jnp.float32),
        "w3": std * jax.random.normal(ks[4], (1, 2 * ndf, 4, 4), jnp.float32),
        "b3": 0.01 * jax.random.normal(ks[5], (1,), jnp.float32),
    }


# Pure-JAX f32 reference (lax.conv, exact module math) for a sanity check.
def _reference_forward(params, x):
    def conv(h, w, b, s, p):
        y = jax.lax.conv_general_dilated(
            h, w, window_strides=(s, s), padding=[(p, p), (p, p)],
            dimension_numbers=("NCHW", "OIHW", "NCHW"))
        return y + b[None, :, None, None]

    h = conv(x, params["w1"], params["b1"], 2, 1)
    h = jnp.where(h > 0, h, 0.2 * h)
    h = conv(h, params["w2"], params["b2"], 2, 1)
    h = jnp.where(h > 0, h, 0.2 * h)
    logit = conv(h, params["w3"], params["b3"], 1, 0)
    return jax.nn.sigmoid(logit)


# TODO(synk): WrapCriticD.ar() (host-side acceptance-ratio helper) is not part
# of forward() and is intentionally not implemented as a kernel.

if __name__ == "__main__":
    key = jax.random.PRNGKey(0)
    k_param, k_x = jax.random.split(key)

    params = init_params(k_param, nc=4, ndf=16)
    x = jax.random.normal(k_x, (2, 4, 16, 16), jnp.float32)  # NCHW

    dense = prepare_dense_params(params, in_shape=x.shape[1:])  # once, weight-only
    fwd = jax.jit(wrap_critic_d_forward)
    prob = jax.block_until_ready(fwd(dense, x))

    ref = _reference_forward(params, x)
    assert prob.shape == (2, 1, 1, 1), prob.shape
    assert bool(jnp.all((prob >= 0.0) & (prob <= 1.0)))
    assert jnp.allclose(prob, ref, atol=1e-2, rtol=1e-2), float(
        jnp.max(jnp.abs(prob - ref)))

    print("KERNEL_OK")
</pallas_src>

<mosaic_0001>
module attributes {stable_mosaic.version = 11 : i64} {
  func.func @_fused_critic_kernel(%arg0: i32, %arg1: memref<8x1024xbf16, #tpu.memory_space<vmem>>, %arg2: memref<1024x1024xbf16, #tpu.memory_space<vmem>>, %arg3: memref<1x1024xf32, #tpu.memory_space<vmem>>, %arg4: memref<1024x512xbf16, #tpu.memory_space<vmem>>, %arg5: memref<1x512xf32, #tpu.memory_space<vmem>>, %arg6: memref<512x128xbf16, #tpu.memory_space<vmem>>, %arg7: memref<1x128xf32, #tpu.memory_space<vmem>>, %arg8: memref<8x128xf32, #tpu.memory_space<vmem>>) attributes {dimension_semantics = [#tpu.dimension_semantics<parallel>], iteration_bounds = array<i64: 1>, scalar_prefetch = 0 : i64, scratch_operands = 0 : i64, tpu.core_type = #tpu.core_type<tc>, window_params = [{transform_indices = @transform_0, window_bounds = array<i64: 8, 1024>}, {pipeline_mode = #tpu.pipeline_mode<synchronous>, transform_indices = @transform_1, window_bounds = array<i64: 1024, 1024>}, {pipeline_mode = #tpu.pipeline_mode<synchronous>, transform_indices = @transform_2, window_bounds = array<i64: 1, 1024>}, {pipeline_mode = #tpu.pipeline_mode<synchronous>, transform_indices = @transform_3, window_bounds = array<i64: 1024, 512>}, {pipeline_mode = #tpu.pipeline_mode<synchronous>, transform_indices = @transform_4, window_bounds = array<i64: 1, 512>}, {pipeline_mode = #tpu.pipeline_mode<synchronous>, transform_indices = @transform_5, window_bounds = array<i64: 512, 128>}, {pipeline_mode = #tpu.pipeline_mode<synchronous>, transform_indices = @transform_6, window_bounds = array<i64: 1, 128>}, {transform_indices = @transform_7, window_bounds = array<i64: 8, 128>}]} {
    %c0 = arith.constant 0 : index
    %c0_0 = arith.constant 0 : index
    %0 = vector.load %arg1[%c0, %c0_0] : memref<8x1024xbf16, #tpu.memory_space<vmem>>, vector<8x1024xbf16>
    %c0_1 = arith.constant 0 : index
    %c0_2 = arith.constant 0 : index
    %1 = vector.load %arg2[%c0_1, %c0_2] : memref<1024x1024xbf16, #tpu.memory_space<vmem>>, vector<1024x1024xbf16>
    %cst = arith.constant dense<0.000000e+00> : vector<8x1024xf32>
    %2 = tpu.matmul %0, %1, %cst {dimension_numbers = #tpu.dot_dimension_numbers<[1], [0], [0], [1], [0, 0, 1, 1], [], []>} : vector<8x1024xbf16>, vector<1024x1024xbf16>, vector<8x1024xf32> -> vector<8x1024xf32>
    %c0_3 = arith.constant 0 : index
    %c0_4 = arith.constant 0 : index
    %3 = vector.load %arg3[%c0_3, %c0_4] : memref<1x1024xf32, #tpu.memory_space<vmem>>, vector<1x1024xf32>
    %4 = vector.broadcast %3 : vector<1x1024xf32> to vector<8x1024xf32>
    %5 = arith.addf %2, %4 : vector<8x1024xf32>
    %cst_5 = arith.constant 0.000000e+00 : f32
    %6 = vector.broadcast %cst_5 : f32 to vector<8x1024xf32>
    %7 = arith.cmpf ogt, %5, %6 : vector<8x1024xf32>
    %cst_6 = arith.constant 2.000000e-01 : f32
    %8 = vector.broadcast %cst_6 : f32 to vector<8x1024xf32>
    %9 = arith.mulf %8, %5 : vector<8x1024xf32>
    %10 = arith.select %7, %5, %9 : vector<8x1024xi1>, vector<8x1024xf32>
    %11 = arith.truncf %10 : vector<8x1024xf32> to vector<8x1024xbf16>
    %c0_7 = arith.constant 0 : index
    %c0_8 = arith.constant 0 : index
    %12 = vector.load %arg4[%c0_7, %c0_8] : memref<1024x512xbf16, #tpu.memory_space<vmem>>, vector<1024x512xbf16>
    %cst_9 = arith.constant dense<0.000000e+00> : vector<8x512xf32>
    %13 = tpu.matmul %11, %12, %cst_9 {dimension_numbers = #tpu.dot_dimension_numbers<[1], [0], [0], [1], [0, 0, 1, 1], [], []>} : vector<8x1024xbf16>, vector<1024x512xbf16>, vector<8x512xf32> -> vector<8x512xf32>
    %c0_10 = arith.constant 0 : index
    %c0_11 = arith.constant 0 : index
    %14 = vector.load %arg5[%c0_10, %c0_11] : memref<1x512xf32, #tpu.memory_space<vmem>>, vector<1x512xf32>
    %15 = vector.broadcast %14 : vector<1x512xf32> to vector<8x512xf32>
    %16 = arith.addf %13, %15 : vector<8x512xf32>
    %cst_12 = arith.constant 0.000000e+00 : f32
    %17 = vector.broadcast %cst_12 : f32 to vector<8x512xf32>
    %18 = arith.cmpf ogt, %16, %17 : vector<8x512xf32>
    %cst_13 = arith.constant 2.000000e-01 : f32
    %19 = vector.broadcast %cst_13 : f32 to vector<8x512xf32>
    %20 = arith.mulf %19, %16 : vector<8x512xf32>
    %21 = arith.select %18, %16, %20 : vector<8x512xi1>, vector<8x512xf32>
    %22 = arith.truncf %21 : vector<8x512xf32> to vector<8x512xbf16>
    %c0_14 = arith.constant 0 : index
    %c0_15 = arith.constant 0 : index
    %23 = vector.load %arg6[%c0_14, %c0_15] : memref<512x128xbf16, #tpu.memory_space<vmem>>, vector<512x128xbf16>
    %cst_16 = arith.constant dense<0.000000e+00> : vector<8x128xf32>
    %24 = tpu.matmul %22, %23, %cst_16 {dimension_numbers = #tpu.dot_dimension_numbers<[1], [0], [0], [1], [0, 0, 1, 1], [], []>} : vector<8x512xbf16>, vector<512x128xbf16>, vector<8x128xf32> -> vector<8x128xf32>
    %c0_17 = arith.constant 0 : index
    %c0_18 = arith.constant 0 : index
    %25 = vector.load %arg7[%c0_17, %c0_18] : memref<1x128xf32, #tpu.memory_space<vmem>>, vector<1x128xf32>
    %26 = vector.broadcast %25 : vector<1x128xf32> to vector<8x128xf32>
    %27 = arith.addf %24, %26 : vector<8x128xf32>
    %cst_19 = arith.constant 0.000000e+00 : f32
    %28 = vector.broadcast %cst_19 : f32 to vector<8x128xf32>
    %29 = arith.subf %28, %27 : vector<8x128xf32>
    %30 = math.exp %29 : vector<8x128xf32>
    %cst_20 = arith.constant 1.000000e+00 : f32
    %31 = vector.broadcast %cst_20 : f32 to vector<8x128xf32>
    %32 = arith.addf %31, %30 : vector<8x128xf32>
    %33 = tpu.reciprocal %32 {approx = true} : vector<8x128xf32> -> vector<8x128xf32>
    %cst_21 = arith.constant 0.000000e+00 : f32
    %cst_22 = arith.constant 1.000000e+00 : f32
    %34 = vector.broadcast %cst_21 : f32 to vector<8x128xf32>
    %35 = arith.maximumf %34, %33 : vector<8x128xf32>
    %36 = vector.broadcast %cst_22 : f32 to vector<8x128xf32>
    %37 = arith.minimumf %36, %35 : vector<8x128xf32>
    %c0_23 = arith.constant 0 : index
    %c0_24 = arith.constant 0 : index
    %38 = vector.load %arg8[%c0_23, %c0_24] : memref<8x128xf32, #tpu.memory_space<vmem>>, vector<8x128xf32>
    tpu.vector_store %arg8[%c0_23, %c0_24], %37 {strides = array<i32>} : memref<8x128xf32, #tpu.memory_space<vmem>>, vector<8x128xf32>,
    return
  }
  func.func @transform_0(%arg0: i32) -> (i32, i32) {
    %c0_i32 = arith.constant 0 : i32
    %c0_i32_0 = arith.constant 0 : i32
    return %arg0, %c0_i32 : i32, i32
  }
  func.func @transform_1(%arg0: i32) -> (i32, i32) {
    %c0_i32 = arith.constant 0 : i32
    %c0_i32_0 = arith.constant 0 : i32
    %c0_i32_1 = arith.constant 0 : i32
    return %c0_i32, %c0_i32_0 : i32, i32
  }
  func.func @transform_2(%arg0: i32) -> (i32, i32) {
    %c0_i32 = arith.constant 0 : i32
    %c0_i32_0 = arith.constant 0 : i32
    %c0_i32_1 = arith.constant 0 : i32
    return %c0_i32, %c0_i32_0 : i32, i32
  }
  func.func @transform_3(%arg0: i32) -> (i32, i32) {
    %c0_i32 = arith.constant 0 : i32
    %c0_i32_0 = arith.constant 0 : i32
    %c0_i32_1 = arith.constant 0 : i32
    return %c0_i32, %c0_i32_0 : i32, i32
  }
  func.func @transform_4(%arg0: i32) -> (i32, i32) {
    %c0_i32 = arith.constant 0 : i32
    %c0_i32_0 = arith.constant 0 : i32
    %c0_i32_1 = arith.constant 0 : i32
    return %c0_i32, %c0_i32_0 : i32, i32
  }
  func.func @transform_5(%arg0: i32) -> (i32, i32) {
    %c0_i32 = arith.constant 0 : i32
    %c0_i32_0 = arith.constant 0 : i32
    %c0_i32_1 = arith.constant 0 : i32
    return %c0_i32, %c0_i32_0 : i32, i32
  }
  func.func @transform_6(%arg0: i32) -> (i32, i32) {
    %c0_i32 = arith.constant 0 : i32
    %c0_i32_0 = arith.constant 0 : i32
    %c0_i32_1 = arith.constant 0 : i32
    return %c0_i32, %c0_i32_0 : i32, i32
  }
  func.func @transform_7(%arg0: i32) -> (i32, i32) {
    %c0_i32 = arith.constant 0 : i32
    %c0_i32_0 = arith.constant 0 : i32
    return %arg0, %c0_i32 : i32, i32
  }
}

</mosaic_0001>

<bundles_post_ra>
// kernel: wrap_critic_d_forward.1
= control target key start
LH: loop header
LB: loop body
LE: loop exit
PB: predicated region body
PF: predicated region fallthrough
CT: control target
= control target key end

     0   :  { %12 = vsyncpa [#allocation3], 0  ;;  %s10936_s0 = inlined_call_operand.vmem [shape: bf16[8,1024], index: 0, kind: input, shape index: {}]   ;;  %s10937_s1 = inlined_call_operand.hbm [shape: bf16[1024,1024], index: 1, kind: input, shape index: {}]   ;;  %s10938_s2 = inlined_call_operand.hbm [shape: f32[1,1024], index: 2, kind: input, shape index: {}]   ;;  %s10939_s3 = inlined_call_operand.hbm [shape: bf16[1024,512], index: 3, kind: input, shape index: {}]   ;;  %s10940_s4 = inlined_call_operand.hbm [shape: f32[1,512], index: 4, kind: input, shape index: {}]   ;;  %s10941_s5 = inlined_call_operand.hbm [shape: bf16[512,128], index: 5, kind: input, shape index: {}]   ;;  %s10942_s6 = inlined_call_operand.hbm [shape: f32[1,128], index: 6, kind: input, shape index: {}]   ;;  %s10943_s7 = inlined_call_operand.vmem [shape: f32[8,128], index: 7, kind: output, shape index: {}]  }
   0x1   :  { %13 = vsyncpa [#allocation5], 0 }
   0x2   :  { %14 = vsyncpa [#allocation8], 0  ;;  %s36_s26 = sshll.u32 %s10938_s2, 4  ;;  %s37_s26 = int_to_ptr.hbm [resolvable:$true] %s36_s26 }
   0x3   :  { %15 = vsyncpa [#allocation11], 0  ;;  %s10579_s27 = smov [#allocation4]   ;;  %s60_s8 = sshll.u32 %s10940_s4, 4  ;;  %s61_s8 = int_to_ptr.hbm [resolvable:$true] %s60_s8 }
   0x4   :  { %s38_s28 = sshll.u32 %s10579_s27, 4  ;;  %s10580_s9 = smov [#allocation7]   ;;  %s39_s28 = int_to_ptr.vmem [resolvable:$true] %s38_s28 }
   0x5   :  { %41 = dma.hbm_to_vmem [thread:$0]  %s37_s26, 128, %s39_s28, [#allocation5]  }
   0x6   :  { %s62_s10 = sshll.u32 %s10580_s9, 4  ;;  %s22_s13 = sshll.u32 %s10937_s1, 4  ;;  %s63_s10 = int_to_ptr.vmem [resolvable:$true] %s62_s10  ;;  %s23_s13 = int_to_ptr.hbm [resolvable:$true] %s22_s13 }
   0x7   :  { %65 = dma.hbm_to_vmem [thread:$0]  %s61_s8, 64, %s63_s10, [#allocation8]  }
   0x8   :  { %s10581_s2 = smov [#allocation2]   ;;  %s46_s17 = sshll.u32 %s10939_s3, 4  ;;  %s47_s17 = int_to_ptr.hbm [resolvable:$true] %s46_s17 }
   0x9   :  { %s24_s14 = sshll.u32 %s10581_s2, 4  ;;  %s10582_s18 = smov 512   ;;  %s25_s14 = int_to_ptr.vmem [resolvable:$true] %s24_s14 }
   0xa   :  { %s10583_s4 = smov 32   ;;  %s10584_s19 = smov [#allocation6]  }
   0xb   :  { %30 = dma.hbm_to_vmem [thread:$0]  %s23_s13, 65536, %s25_s14, [#allocation3], %s10582_s18, %s10582_s18, %s10583_s4  }
   0xc   :  { %s48_s20 = sshll.u32 %s10584_s19, 4  ;;  %s10585_s21 = smov 256   ;;  %s49_s20 = int_to_ptr.vmem [resolvable:$true] %s48_s20 }
   0xd   :  { %s10586_s22 = smov 16   ;;  %s70_s24 = sshll.u32 %s10941_s5, 4  ;;  %s71_s24 = int_to_ptr.hbm [resolvable:$true] %s70_s24 }
   0xe   :  { %54 = dma.hbm_to_vmem [thread:$0]  %s47_s17, 32768, %s49_s20, [#allocation5], %s10585_s21, %s10585_s21, %s10586_s22  }
   0xf   :  { %s10587_s25 = smov [#allocation9]   ;;  %s84_s28 = sshll.u32 %s10942_s6, 4  ;;  %s85_s28 = int_to_ptr.hbm [resolvable:$true] %s84_s28 }
  0x10   :  { %s72_s26 = sshll.u32 %s10587_s25, 4  ;;  %s10588_s29 = smov 64   ;;  %s73_s26 = int_to_ptr.vmem [resolvable:$true] %s72_s26 }
  0x11   :  { %s10589_s30 = smov 4   ;;  %s10590_s8 = smov [#allocation10]  }
  0x12   :  { %78 = dma.hbm_to_vmem [thread:$0]  %s71_s24, 4096, %s73_s26, [#allocation8], %s10588_s29, %s10588_s29, %s10589_s30  }
  0x13   :  { %s86_s9 = sshll.u32 %s10590_s8, 4  ;;  %s87_s9 = int_to_ptr.vmem [resolvable:$true] %s86_s9 }
  0x14   :  { %89 = dma.hbm_to_vmem [thread:$0]  %s85_s28, 16, %s87_s9, [#allocation11]  }
  0x15   :  { %10571 = dma.done.wait [#allocation3], 65536  }
  0x16   :  { %10572 = vsyncadd [#allocation3], 4294901760 }
  0x17   :  { %10573 = dma.done.wait [#allocation5], 32896  }
  0x18   :  { %10574 = vsyncadd [#allocation5], 4294934400 }
  0x19   :  { %10575 = dma.done.wait [#allocation8], 4160  }
  0x1a   :  { %10576 = vsyncadd [#allocation8], 4294963136 }
  0x1b   :  { %10577 = dma.done.wait [#allocation11], 16  }
  0x1c   :  { %10578 = vsyncadd [#allocation11], 4294967280  ;;  %v6632_v0 = vld [vmem:[#allocation2 + $0x1c0] sm:$0xf] }
  0x1d   :  { %v9666_v1 = vld [vmem:[#allocation2 + $0x1dc] sm:$0xf0] }
  0x1e   :  { %v6888_v2 = vld [vmem:[#allocation2 + $0x3c0] sm:$0xf]  ;;  %v6633_v3 = vor.u32 %v9666_v1, %v6632_v0 }
  0x1f   :  { %v9730_v4 = vld [vmem:[#allocation2 + $0x3dc] sm:$0xf0] }
  0x20   :  { %v7144_v5 = vld [vmem:[#allocation2 + $0x5c0] sm:$0xf]  ;;  %v6889_v7 = vor.u32 %v9730_v4, %v6888_v2  ;;  %3236 = vmatpush.bf16.msra.mxu0 %v6633_v3 }
  0x21   :  { %v9794_v6 = vld [vmem:[#allocation2 + $0x5dc] sm:$0xf0] }
  0x22   :  { %v7145_v8 = vor.u32 %v9794_v6, %v7144_v5  ;;  %v7400_v9 = vld [vmem:[#allocation2 + $0x7c0] sm:$0xf]  ;;  %3249 = vmatpush.bf16.msra.mxu1 %v6889_v7 }
  0x23   :  { %v9858_v10 = vld [vmem:[#allocation2 + $0x7dc] sm:$0xf0] }
  0x24   :  { %v6600_v11 = vld [vmem:[#allocation2 + $0x180] sm:$0xf]  ;;  %v7401_v12 = vor.u32 %v9858_v10, %v7400_v9  ;;  %3262 = vmatpush.bf16.msra.mxu2 %v7145_v8 }
  0x25   :  { %v9658_v13 = vld [vmem:[#allocation2 + $0x19c] sm:$0xf0] }
  0x26   :  { %v6856_v14 = vld [vmem:[#allocation2 + $0x380] sm:$0xf]  ;;  %v6601_v16 = vor.u32 %v9658_v13, %v6600_v11  ;;  %3275 = vmatpush.bf16.msra.mxu3 %v7401_v12 }
  0x27   :  { %v9722_v15 = vld [vmem:[#allocation2 + $0x39c] sm:$0xf0] }
  0x28   :  { %v6857_v17 = vor.u32 %v9722_v15, %v6856_v14  ;;  %v7112_v18 = vld [vmem:[#allocation2 + $0x580] sm:$0xf]  ;;  %3237 = vmatpush.bf16.msra.mxu0 %v6601_v16 }
  0x29   :  { %v9786_v19 = vld [vmem:[#allocation2 + $0x59c] sm:$0xf0] }
  0x2a   :  { %v7368_v20 = vld [vmem:[#allocation2 + $0x780] sm:$0xf]  ;;  %v7113_v21 = vor.u32 %v9786_v19, %v7112_v18  ;;  %3250 = vmatpush.bf16.msra.mxu1 %v6857_v17 }
  0x2b   :  { %v9850_v22 = vld [vmem:[#allocation2 + $0x79c] sm:$0xf0] }
  0x2c   :  { %v6568_v23 = vld [vmem:[#allocation2 + $0x140] sm:$0xf]  ;;  %v7369_v25 = vor.u32 %v9850_v22, %v7368_v20  ;;  %3263 = vmatpush.bf16.msra.mxu2 %v7113_v21 }
  0x2d   :  { %v9650_v24 = vld [vmem:[#allocation2 + $0x15c] sm:$0xf0] }
  0x2e   :  { %v6824_v26 = vld [vmem:[#allocation2 + $0x340] sm:$0xf]  ;;  %v6569_v29 = vor.u32 %v9650_v24, %v6568_v23  ;;  %3276 = vmatpush.bf16.msra.mxu3 %v7369_v25 }
  0x2f   :  { %v9714_v27 = vld [vmem:[#allocation2 + $0x35c] sm:$0xf0] }
  0x30   :  { %v7080_v28 = vld [vmem:[#allocation2 + $0x540] sm:$0xf]  ;;  %v6825_v33 = vor.u32 %v9714_v27, %v6824_v26  ;;  %3238 = vmatpush.bf16.msra.mxu0 %v6569_v29 }
  0x31   :  { %v9778_v30 = vld [vmem:[#allocation2 + $0x55c] sm:$0xf0] }
  0x32   :  { %v7336_v31 = vld [vmem:[#allocation2 + $0x740] sm:$0xf]  ;;  %v7081_v34 = vor.u32 %v9778_v30, %v7080_v28  ;;  %3251 = vmatpush.bf16.msra.mxu1 %v6825_v33 }
  0x33   :  { %v9842_v32 = vld [vmem:[#allocation2 + $0x75c] sm:$0xf0] }
  0x34   :  { %v6536_v35 = vld [vmem:[#allocation2 + $0x100] sm:$0xf]  ;;  %v7337_v38 = vor.u32 %v9842_v32, %v7336_v31  ;;  %3264 = vmatpush.bf16.msra.mxu2 %v7081_v34 }
  0x35   :  { %v9642_v36 = vld [vmem:[#allocation2 + $0x11c] sm:$0xf0] }
  0x36   :  { %v6792_v37 = vld [vmem:[#allocation2 + $0x300] sm:$0xf]  ;;  %v6537_v44 = vor.u32 %v9642_v36, %v6536_v35  ;;  %3277 = vmatpush.bf16.msra.mxu3 %v7337_v38 }
  0x37   :  { %v9706_v39 = vld [vmem:[#allocation2 + $0x31c] sm:$0xf0] }
  0x38   :  { %v7048_v40 = vld [vmem:[#allocation2 + $0x500] sm:$0xf]  ;;  %v6793_v45 = vor.u32 %v9706_v39, %v6792_v37  ;;  %3239 = vmatpush.bf16.msra.mxu0 %v6537_v44 }
  0x39   :  { %v9770_v41 = vld [vmem:[#allocation2 + $0x51c] sm:$0xf0] }
  0x3a   :  { %v7304_v42 = vld [vmem:[#allocation2 + $0x700] sm:$0xf]  ;;  %v7049_v46 = vor.u32 %v9770_v41, %v7048_v40  ;;  %3252 = vmatpush.bf16.msra.mxu1 %v6793_v45 }
  0x3b   :  { %v9834_v43 = vld [vmem:[#allocation2 + $0x71c] sm:$0xf0] }
  0x3c   :  { %v6504_v47 = vld [vmem:[#allocation2 + $0xc0] sm:$0xf]  ;;  %v7305_v50 = vor.u32 %v9834_v43, %v7304_v42  ;;  %3265 = vmatpush.bf16.msra.mxu2 %v7049_v46 }
  0x3d   :  { %v9634_v48 = vld [vmem:[#allocation2 + $0xdc] sm:$0xf0] }
  0x3e   :  { %v6760_v49 = vld [vmem:[#allocation2 + $0x2c0] sm:$0xf]  ;;  %v6505_v56 = vor.u32 %v9634_v48, %v6504_v47  ;;  %3278 = vmatpush.bf16.msra.mxu3 %v7305_v50 }
  0x3f   :  { %v9698_v51 = vld [vmem:[#allocation2 + $0x2dc] sm:$0xf0] }
  0x40   :  { %v7016_v52 = vld [vmem:[#allocation2 + $0x4c0] sm:$0xf]  ;;  %v6761_v57 = vor.u32 %v9698_v51, %v6760_v49  ;;  %3240 = vmatpush.bf16.msra.mxu0 %v6505_v56 }
  0x41   :  { %v9762_v53 = vld [vmem:[#allocation2 + $0x4dc] sm:$0xf0] }
  0x42   :  { %v7272_v54 = vld [vmem:[#allocation2 + $0x6c0] sm:$0xf]  ;;  %v7017_v58 = vor.u32 %v9762_v53, %v7016_v52  ;;  %3253 = vmatpush.bf16.msra.mxu1 %v6761_v57 }
  0x43   :  { %v9826_v55 = vld [vmem:[#allocation2 + $0x6dc] sm:$0xf0] }
  0x44   :  { %v6472_v59 = vld [vmem:[#allocation2 + $0x80] sm:$0xf]  ;;  %v7273_v62 = vor.u32 %v9826_v55, %v7272_v54  ;;  %3266 = vmatpush.bf16.msra.mxu2 %v7017_v58  ;;  %v115_v58 = vld [vmem:[%s10936_s0 + $0x8] sm:$0xff] }
  0x45   :  { %v9626_v60 = vld [vmem:[#allocation2 + $0x9c] sm:$0xf0] }
  0x46   :  { %v6728_v61 = vld [vmem:[#allocation2 + $0x280] sm:$0xf]  ;;  %v6473_v4 = vor.u32 %v9626_v60, %v6472_v59  ;;  %3279 = vmatpush.bf16.msra.mxu3 %v7273_v62 }
  0x47   :  { %v9690_v63 = vld [vmem:[#allocation2 + $0x29c] sm:$0xf0] }
  0x48   :  { %v6984_v0 = vld [vmem:[#allocation2 + $0x480] sm:$0xf]  ;;  %v6729_v5 = vor.u32 %v9690_v63, %v6728_v61  ;;  %3241 = vmatpush.bf16.msra.mxu0 %v6473_v4  ;;  %v654_v63 = vunpack.c.l.b16 %v115_v58 }
  0x49   :  { %v9754_v1 = vld [vmem:[#allocation2 + $0x49c] sm:$0xf0] }
  0x4a   :  { %v7240_v2 = vld [vmem:[#allocation2 + $0x680] sm:$0xf]  ;;  %v6985_v6 = vor.u32 %v9754_v1, %v6984_v0  ;;  %3254 = vmatpush.bf16.msra.mxu1 %v6729_v5  ;;  %v655_v0 = vunpack.c.h.b16 %v115_v58  ;;  %v10652_v4 = vpack.c.b16 %v654_v63, %v654_v63 }
  0x4b   :  { %v9818_v3 = vld [vmem:[#allocation2 + $0x69c] sm:$0xf0] }
  0x4c   :  { %v6440_v7 = vld [vmem:[#allocation2 + $0x40] sm:$0xf]  ;;  %v7241_v10 = vor.u32 %v9818_v3, %v7240_v2  ;;  %3267 = vmatpush.bf16.msra.mxu2 %v6985_v6  ;;  %v10657_v6 = vpack.c.b16 %v655_v0, %v655_v0 }
  0x4d   :  { %v9618_v8 = vld [vmem:[#allocation2 + $0x5c] sm:$0xf0] }
  0x4e   :  { %v6696_v9 = vld [vmem:[#allocation2 + $0x240] sm:$0xf]  ;;  %v6441_v16 = vor.u32 %v9618_v8, %v6440_v7  ;;  %3280 = vmatpush.bf16.msra.mxu3 %v7241_v10 }
  0x4f   :  { %v9682_v11 = vld [vmem:[#allocation2 + $0x25c] sm:$0xf0] }
  0x50   :  { %v6952_v12 = vld [vmem:[#allocation2 + $0x440] sm:$0xf]  ;;  %v6697_v19 = vor.u32 %v9682_v11, %v6696_v9  ;;  %3242 = vmatpush.bf16.msra.mxu0 %v6441_v16 }
  0x51   :  { %v9746_v13 = vld [vmem:[#allocation2 + $0x45c] sm:$0xf0] }
  0x52   :  { %v7208_v14 = vld [vmem:[#allocation2 + $0x640] sm:$0xf]  ;;  %v6953_v20 = vor.u32 %v9746_v13, %v6952_v12  ;;  %3255 = vmatpush.bf16.msra.mxu1 %v6697_v19 }
  0x53   :  { %v9810_v15 = vld [vmem:[#allocation2 + $0x65c] sm:$0xf0] }
  0x54   :  { %v6408_v17 = vld [vmem:[#allocation2] sm:$0xf]  ;;  %v7209_v24 = vor.u32 %v9810_v15, %v7208_v14  ;;  %3268 = vmatpush.bf16.msra.mxu2 %v6953_v20 }
  0x55   :  { %v9610_v18 = vld [vmem:[#allocation2 + $0x1c] sm:$0xf0] }
  0x56   :  { %v6664_v21 = vld [vmem:[#allocation2 + $0x200] sm:$0xf]  ;;  %v6409_v31 = vor.u32 %v9610_v18, %v6408_v17  ;;  %3281 = vmatpush.bf16.msra.mxu3 %v7209_v24 }
  0x57   :  { %v9674_v22 = vld [vmem:[#allocation2 + $0x21c] sm:$0xf0] }
  0x58   :  { %v6920_v23 = vld [vmem:[#allocation2 + $0x400] sm:$0xf]  ;;  %v6665_v35 = vor.u32 %v9674_v22, %v6664_v21  ;;  %3243 = vmatpush.bf16.msra.mxu0 %v6409_v31 }
  0x59   :  { %v9738_v25 = vld [vmem:[#allocation2 + $0x41c] sm:$0xf0] }
  0x5a   :  { %v7176_v26 = vld [vmem:[#allocation2 + $0x600] sm:$0xf]  ;;  %v6921_v36 = vor.u32 %v9738_v25, %v6920_v23  ;;  %3256 = vmatpush.bf16.msra.mxu1 %v6665_v35 }
  0x5b   :  { %v9802_v27 = vld [vmem:[#allocation2 + $0x61c] sm:$0xf0] }
  0x5c   :  { %v7656_v28 = vld [vmem:[#allocation2 + $0x9c0] sm:$0xf]  ;;  %v7177_v39 = vor.u32 %v9802_v27, %v7176_v26  ;;  %3269 = vmatpush.bf16.msra.mxu2 %v6921_v36 }
  0x5d   :  { %v9922_v29 = vld [vmem:[#allocation2 + $0x9dc] sm:$0xf0] }
  0x5e   :  { %v7912_v30 = vld [vmem:[#allocation2 + $0xbc0] sm:$0xf]  ;;  %v7657_v40 = vor.u32 %v9922_v29, %v7656_v28  ;;  %3282 = vmatpush.bf16.msra.mxu3 %v7177_v39 }
  0x5f   :  { %v9986_v32 = vld [vmem:[#allocation2 + $0xbdc] sm:$0xf0]  ;;  %3270 = vmatmul.bf16.vlgmr.msra.gmra.mxu2 %v10652_v4 }
  0x60   :  { %v8168_v33 = vld [vmem:[#allocation2 + $0xdc0] sm:$0xf]  ;;  %v7913_v41 = vor.u32 %v9986_v32, %v7912_v30  ;;  %3288 = vmatpush.bf16.msrb.mxu0 %v7657_v40 }
  0x61   :  { %v10050_v34 = vld [vmem:[#allocation2 + $0xddc] sm:$0xf0]  ;;  %3283 = vmatmul.bf16.vlgmr.msra.gmra.mxu3 %v10657_v6 }
  0x62   :  { %v8424_v37 = vld [vmem:[#allocation2 + $0xfc0] sm:$0xf]  ;;  %v8169_v42 = vor.u32 %v10050_v34, %v8168_v33  ;;  %3301 = vmatpush.bf16.msrb.mxu1 %v7913_v41 }
  0x63   :  { %v10114_v38 = vld [vmem:[#allocation2 + $0xfdc] sm:$0xf0] }
  0x64   :  { %v7624_v43 = vld [vmem:[#allocation2 + $0x980] sm:$0xf]  ;;  %v8425_v46 = vor.u32 %v10114_v38, %v8424_v37  ;;  %3314 = vmatpush.bf16.msrb.mxu2 %v8169_v42 }
  0x65   :  { %v9914_v44 = vld [vmem:[#allocation2 + $0x99c] sm:$0xf0] }
  0x66   :  { %v7880_v45 = vld [vmem:[#allocation2 + $0xb80] sm:$0xf]  ;;  %v7625_v52 = vor.u32 %v9914_v44, %v7624_v43  ;;  %3327 = vmatpush.bf16.msrb.mxu3 %v8425_v46 }
  0x67   :  { %v9978_v47 = vld [vmem:[#allocation2 + $0xb9c] sm:$0xf0] }
  0x68   :  { %v8136_v48 = vld [vmem:[#allocation2 + $0xd80] sm:$0xf]  ;;  %v7881_v54 = vor.u32 %v9978_v47, %v7880_v45  ;;  %3289 = vmatpush.bf16.msrb.mxu0 %v7625_v52 }
  0x69   :  { %v10042_v49 = vld [vmem:[#allocation2 + $0xd9c] sm:$0xf0] }
  0x6a   :  { %v8392_v50 = vld [vmem:[#allocation2 + $0xf80] sm:$0xf]  ;;  %v8137_v55 = vor.u32 %v10042_v49, %v8136_v48  ;;  %3302 = vmatpush.bf16.msrb.mxu1 %v7881_v54 }
  0x6b   :  { %v10106_v51 = vld [vmem:[#allocation2 + $0xf9c] sm:$0xf0] }
  0x6c   :  { %v7592_v53 = vld [vmem:[#allocation2 + $0x940] sm:$0xf]  ;;  %v8393_v59 = vor.u32 %v10106_v51, %v8392_v50  ;;  %3315 = vmatpush.bf16.msrb.mxu2 %v8137_v55 }
  0x6d   :  { %v9906_v56 = vld [vmem:[#allocation2 + $0x95c] sm:$0xf0] }
  0x6e   :  { %v7848_v57 = vld [vmem:[#allocation2 + $0xb40] sm:$0xf]  ;;  %v7593_v3 = vor.u32 %v9906_v56, %v7592_v53  ;;  %3328 = vmatpush.bf16.msrb.mxu3 %v8393_v59 }
  0x6f   :  { %v9970_v60 = vld [vmem:[#allocation2 + $0xb5c] sm:$0xf0] }
  0x70   :  { %v8104_v61 = vld [vmem:[#allocation2 + $0xd40] sm:$0xf]  ;;  %v7849_v7 = vor.u32 %v9970_v60, %v7848_v57  ;;  %3290 = vmatpush.bf16.msrb.mxu0 %v7593_v3  ;;  %v117_v3 = vld [vmem:[%s10936_s0 + $0x18] sm:$0xff] }
  0x71   :  { %v10034_v62 = vld [vmem:[#allocation2 + $0xd5c] sm:$0xf0] }
  0x72   :  { %v8360_v1 = vld [vmem:[#allocation2 + $0xf40] sm:$0xf]  ;;  %v8105_v8 = vor.u32 %v10034_v62, %v8104_v61  ;;  %3303 = vmatpush.bf16.msrb.mxu1 %v7849_v7 }
  0x73   :  { %v10098_v2 = vld [vmem:[#allocation2 + $0xf5c] sm:$0xf0] }
  0x74   :  { %v114_v5 = vld [vmem:[%s10936_s0] sm:$0xff]  ;;  %v8361_v14 = vor.u32 %v10098_v2, %v8360_v1  ;;  %3316 = vmatpush.bf16.msrb.mxu2 %v8105_v8 }
  0x75   :  { %v7560_v9 = vld [vmem:[#allocation2 + $0x900] sm:$0xf]  ;;  %v652_v12 = vunpack.c.l.b16 %v114_v5  ;;  %v653_v13 = vunpack.c.h.b16 %v114_v5 }
  0x76   :  { %v9898_v10 = vld [vmem:[#allocation2 + $0x91c] sm:$0xf0]  ;;  %3329 = vmatpush.bf16.msrb.mxu3 %v8361_v14  ;;  %v6890_v14 = vld [vmem:[#allocation2 + $0x3e0] sm:$0xf0] }
  0x77   :  { %v7816_v11 = vld [vmem:[#allocation2 + $0xb00] sm:$0xf]  ;;  %v10660_v20 = vpack.c.b16 %v652_v12, %v652_v12  ;;  %v10663_v21 = vpack.c.b16 %v653_v13, %v653_v13  ;;  %v7561_v22 = vor.u32 %v9898_v10, %v7560_v9  ;;  %v116_v9 = vld [vmem:[%s10936_s0 + $0x10] sm:$0xff]  ;;  %v9662_v10 = vld [vmem:[#allocation2 + $0x1c4] sm:$0xf] }
  0x78   :  { %v9962_v15 = vld [vmem:[#allocation2 + $0xb1c] sm:$0xf0]  ;;  %v9726_v12 = vld [vmem:[#allocation2 + $0x3c4] sm:$0xf] }
  0x79   :  { %v8072_v16 = vld [vmem:[#allocation2 + $0xd00] sm:$0xf]  ;;  %v7817_v23 = vor.u32 %v9962_v15, %v7816_v11  ;;  %3244 = vmatmul.bf16.vlgmr.msra.gmra.mxu0 %v10660_v20  ;;  %3257 = vmatmul.bf16.vlgmr.msra.gmra.mxu1 %v10663_v21  ;;  %v6634_v11 = vld [vmem:[#allocation2 + $0x1e0] sm:$0xf0] }
  0x7a   :  { %v10026_v17 = vld [vmem:[#allocation2 + $0xd1c] sm:$0xf0]  ;;  %3291 = vmatpush.bf16.msrb.mxu0 %v7561_v22  ;;  %v9790_v15 = vld [vmem:[#allocation2 + $0x5c4] sm:$0xf] }
  0x7b   :  { %v8328_v18 = vld [vmem:[#allocation2 + $0xf00] sm:$0xf]  ;;  %v8073_v24 = vor.u32 %v10026_v17, %v8072_v16  ;;  %3304 = vmatpush.bf16.msrb.mxu1 %v7817_v23  ;;  %v7146_v16 = vld [vmem:[#allocation2 + $0x5e0] sm:$0xf0]  ;;  %v658_v17 = vunpack.c.l.b16 %v117_v3 }
  0x7c   :  { %v10090_v19 = vld [vmem:[#allocation2 + $0xf1c] sm:$0xf0]  ;;  %v9854_v22 = vld [vmem:[#allocation2 + $0x7c4] sm:$0xf] }
  0x7d   :  { %v7528_v25 = vld [vmem:[#allocation2 + $0x8c0] sm:$0xf]  ;;  %v8329_v28 = vor.u32 %v10090_v19, %v8328_v18  ;;  %3317 = vmatpush.bf16.msrb.mxu2 %v8073_v24  ;;  %v7402_v23 = vld [vmem:[#allocation2 + $0x7e0] sm:$0xf0]  ;;  %v656_v24 = vunpack.c.l.b16 %v116_v9 }
  0x7e   :  { %v9890_v26 = vld [vmem:[#allocation2 + $0x8dc] sm:$0xf0] }
  0x7f   :  { %v7784_v27 = vld [vmem:[#allocation2 + $0xac0] sm:$0xf]  ;;  %v7529_v34 = vor.u32 %v9890_v26, %v7528_v25  ;;  %3330 = vmatpush.bf16.msrb.mxu3 %v8329_v28  ;;  %v659_v25 = vunpack.c.h.b16 %v117_v3  ;;  %v657_v28 = vunpack.c.h.b16 %v116_v9  ;;  %v7306_v3 = vld [vmem:[#allocation2 + $0x720] sm:$0xf0] }
  0x80   :  { %v9954_v29 = vld [vmem:[#allocation2 + $0xadc] sm:$0xf0]  ;;  %v9630_v9 = vld [vmem:[#allocation2 + $0xc4] sm:$0xf] }
  0x81   :  { %v8040_v30 = vld [vmem:[#allocation2 + $0xcc0] sm:$0xf]  ;;  %v7785_v35 = vor.u32 %v9954_v29, %v7784_v27  ;;  %3292 = vmatpush.bf16.msrb.mxu0 %v7529_v34  ;;  %v6637_v27 = vor.u32 %v9662_v10, %v6634_v11  ;;  %v6893_v29 = vor.u32 %v9726_v12, %v6890_v14  ;;  %v7405_v34 = vor.u32 %v9854_v22, %v7402_v23  ;;  %v6506_v10 = vld [vmem:[#allocation2 + $0xe0] sm:$0xf0] }
  0x82   :  { %v10018_v31 = vld [vmem:[#allocation2 + $0xcdc] sm:$0xf0]  ;;  %v9694_v11 = vld [vmem:[#allocation2 + $0x2c4] sm:$0xf] }
  0x83   :  { %v8296_v32 = vld [vmem:[#allocation2 + $0xec0] sm:$0xf]  ;;  %v8041_v36 = vor.u32 %v10018_v31, %v8040_v30  ;;  %3305 = vmatpush.bf16.msrb.mxu1 %v7785_v35  ;;  %v7149_v30 = vor.u32 %v9790_v15, %v7146_v16  ;;  %v9654_v31 = vld [vmem:[#allocation2 + $0x184] sm:$0xf] }
  0x84   :  { %v10082_v33 = vld [vmem:[#allocation2 + $0xedc] sm:$0xf0]  ;;  %v6858_v35 = vld [vmem:[#allocation2 + $0x3a0] sm:$0xf0] }
  0x85   :  { %v7496_v37 = vld [vmem:[#allocation2 + $0x880] sm:$0xf]  ;;  %v8297_v40 = vor.u32 %v10082_v33, %v8296_v32  ;;  %3318 = vmatpush.bf16.msrb.mxu2 %v8041_v36  ;;  %v6602_v32 = vld [vmem:[#allocation2 + $0x1a0] sm:$0xf0] }
  0x86   :  { %v9882_v38 = vld [vmem:[#allocation2 + $0x89c] sm:$0xf0]  ;;  %v9718_v33 = vld [vmem:[#allocation2 + $0x384] sm:$0xf] }
  0x87   :  { %v7752_v39 = vld [vmem:[#allocation2 + $0xa80] sm:$0xf]  ;;  %v7497_v46 = vor.u32 %v9882_v38, %v7496_v37  ;;  %3331 = vmatpush.bf16.msrb.mxu3 %v8297_v40  ;;  %v9782_v36 = vld [vmem:[#allocation2 + $0x584] sm:$0xf]  ;;  %v10673_v38 = vpack.c.b16 %v658_v17, %v658_v17 }
  0x88   :  { %v9946_v41 = vld [vmem:[#allocation2 + $0xa9c] sm:$0xf0]  ;;  %v7114_v37 = vld [vmem:[#allocation2 + $0x5a0] sm:$0xf0] }
  0x89   :  { %v8008_v42 = vld [vmem:[#allocation2 + $0xc80] sm:$0xf]  ;;  %v7753_v47 = vor.u32 %v9946_v41, %v7752_v39  ;;  %3293 = vmatpush.bf16.msrb.mxu0 %v7497_v46  ;;  %v9846_v39 = vld [vmem:[#allocation2 + $0x784] sm:$0xf]  ;;  %v10675_v41 = vpack.c.b16 %v656_v24, %v656_v24  ;;  %v7117_v46 = vor.u32 %v9782_v36, %v7114_v37 }
  0x8a   :  { %v10010_v43 = vld [vmem:[#allocation2 + $0xc9c] sm:$0xf0]  ;;  %v7370_v40 = vld [vmem:[#allocation2 + $0x7a0] sm:$0xf0] }
  0x8b   :  { %v8264_v44 = vld [vmem:[#allocation2 + $0xe80] sm:$0xf]  ;;  %v8009_v48 = vor.u32 %v10010_v43, %v8008_v42  ;;  %3306 = vmatpush.bf16.msrb.mxu1 %v7753_v47  ;;  %v10677_v42 = vpack.c.b16 %v659_v25, %v659_v25  ;;  %v6605_v43 = vor.u32 %v9654_v31, %v6602_v32  ;;  %v9646_v47 = vld [vmem:[#allocation2 + $0x144] sm:$0xf] }
  0x8c   :  { %v10074_v45 = vld [vmem:[#allocation2 + $0xe9c] sm:$0xf0]  ;;  %v9758_v14 = vld [vmem:[#allocation2 + $0x4c4] sm:$0xf] }
  0x8d   :  { %v7464_v49 = vld [vmem:[#allocation2 + $0x840] sm:$0xf]  ;;  %v8265_v52 = vor.u32 %v10074_v45, %v8264_v44  ;;  %3319 = vmatpush.bf16.msrb.mxu2 %v8009_v48  ;;  %v10679_v44 = vpack.c.b16 %v657_v28, %v657_v28  ;;  %v6861_v45 = vor.u32 %v9718_v33, %v6858_v35  ;;  %v6570_v48 = vld [vmem:[#allocation2 + $0x160] sm:$0xf0] }
  0x8e   :  { %v9874_v50 = vld [vmem:[#allocation2 + $0x85c] sm:$0xf0]  ;;  %v7018_v15 = vld [vmem:[#allocation2 + $0x4e0] sm:$0xf0] }
  0x8f   :  { %v7720_v51 = vld [vmem:[#allocation2 + $0xa40] sm:$0xf]  ;;  %v7465_v59 = vor.u32 %v9874_v50, %v7464_v49  ;;  %3332 = vmatpush.bf16.msrb.mxu3 %v8265_v52  ;;  %v9710_v49 = vld [vmem:[#allocation2 + $0x344] sm:$0xf]  ;;  %v7373_v50 = vor.u32 %v9846_v39, %v7370_v40  ;;  %v7021_v22 = vor.u32 %v9758_v14, %v7018_v15 }
  0x90   :  { %v9938_v53 = vld [vmem:[#allocation2 + $0xa5c] sm:$0xf0]  ;;  %v9774_v52 = vld [vmem:[#allocation2 + $0x544] sm:$0xf] }
  0x91   :  { %v7976_v54 = vld [vmem:[#allocation2 + $0xc40] sm:$0xf]  ;;  %v7721_v63 = vor.u32 %v9938_v53, %v7720_v51  ;;  %3294 = vmatpush.bf16.msrb.mxu0 %v7465_v59  ;;  %v6826_v51 = vld [vmem:[#allocation2 + $0x360] sm:$0xf0] }
  0x92   :  { %v10002_v55 = vld [vmem:[#allocation2 + $0xc5c] sm:$0xf0]  ;;  %v7082_v53 = vld [vmem:[#allocation2 + $0x560] sm:$0xf0] }
  0x93   :  { %v8232_v56 = vld [vmem:[#allocation2 + $0xe40] sm:$0xf]  ;;  %v7977_v0 = vor.u32 %v10002_v55, %v7976_v54  ;;  %3307 = vmatpush.bf16.msrb.mxu1 %v7721_v63  ;;  %v9838_v54 = vld [vmem:[#allocation2 + $0x744] sm:$0xf] }
  0x94   :  { %v10066_v57 = vld [vmem:[#allocation2 + $0xe5c] sm:$0xf0]  ;;  %v7338_v55 = vld [vmem:[#allocation2 + $0x760] sm:$0xf0] }
  0x95   :  { %v7432_v58 = vld [vmem:[#allocation2 + $0x800] sm:$0xf]  ;;  %v8233_v5 = vor.u32 %v10066_v57, %v8232_v56  ;;  %3320 = vmatpush.bf16.msrb.mxu2 %v7977_v0  ;;  %v6573_v56 = vor.u32 %v9646_v47, %v6570_v48  ;;  %v6829_v57 = vor.u32 %v9710_v49, %v6826_v51  ;;  %v9638_v59 = vld [vmem:[#allocation2 + $0x104] sm:$0xf] }
  0x96   :  { %v9866_v60 = vld [vmem:[#allocation2 + $0x81c] sm:$0xf0]  ;;  %v6794_v63 = vld [vmem:[#allocation2 + $0x320] sm:$0xf0] }
  0x97   :  { %v7688_v61 = vld [vmem:[#allocation2 + $0xa00] sm:$0xf]  ;;  %v7433_v13 = vor.u32 %v9866_v60, %v7432_v58  ;;  %3333 = vmatpush.bf16.msrb.mxu3 %v8233_v5  ;;  %v7085_v58 = vor.u32 %v9774_v52, %v7082_v53  ;;  %v6538_v60 = vld [vmem:[#allocation2 + $0x120] sm:$0xf0] }
  0x98   :  { %v9930_v62 = vld [vmem:[#allocation2 + $0xa1c] sm:$0xf0]  ;;  %v9766_v0 = vld [vmem:[#allocation2 + $0x504] sm:$0xf]  ;;  %v6541_v5 = vor.u32 %v9638_v59, %v6538_v60 }
  0x99   :  { %v7944_v1 = vld [vmem:[#allocation2 + $0xc00] sm:$0xf]  ;;  %v7689_v18 = vor.u32 %v9930_v62, %v7688_v61  ;;  %3295 = vmatpush.bf16.msrb.mxu0 %v7433_v13  ;;  %v9702_v61 = vld [vmem:[#allocation2 + $0x304] sm:$0xf]  ;;  %v7341_v62 = vor.u32 %v9838_v54, %v7338_v55 }
  0x9a   :  { %v9994_v2 = vld [vmem:[#allocation2 + $0xc1c] sm:$0xf0]  ;;  %v6762_v13 = vld [vmem:[#allocation2 + $0x2e0] sm:$0xf0] }
  0x9b   :  { %v8200_v7 = vld [vmem:[#allocation2 + $0xe00] sm:$0xf]  ;;  %v7945_v19 = vor.u32 %v9994_v2, %v7944_v1  ;;  %3308 = vmatpush.bf16.msrb.mxu1 %v7689_v18  ;;  %v7050_v1 = vld [vmem:[#allocation2 + $0x520] sm:$0xf0]  ;;  %v6509_v18 = vor.u32 %v9630_v9, %v6506_v10 }
  0x9c   :  { %v10058_v8 = vld [vmem:[#allocation2 + $0xe1c] sm:$0xf0]  ;;  %3296 = vmatmul.bf16.vlgmr.msrb.gmra.mxu0 %v10675_v41  ;;  %v9830_v2 = vld [vmem:[#allocation2 + $0x704] sm:$0xf] }
  0x9d   :  { %v8201_v26 = vor.u32 %v10058_v8, %v8200_v7  ;;  %3321 = vmatpush.bf16.msrb.mxu2 %v7945_v19  ;;  %3340 = vmatpush.bf16.msra.mxu0 %v6637_v27  ;;  %v6797_v7 = vor.u32 %v9702_v61, %v6794_v63  ;;  %v7053_v8 = vor.u32 %v9766_v0, %v7050_v1  ;;  %v9822_v16 = vld [vmem:[#allocation2 + $0x6c4] sm:$0xf] }
  0x9e   :  { %3309 = vmatmul.bf16.vlgmr.msrb.gmra.mxu1 %v10679_v44  ;;  %v7309_v12 = vor.u32 %v9830_v2, %v7306_v3  ;;  %v7274_v17 = vld [vmem:[#allocation2 + $0x6e0] sm:$0xf0]  ;;  %v6765_v19 = vor.u32 %v9694_v11, %v6762_v13 }
  0x9f   :  { %3334 = vmatpush.bf16.msrb.mxu3 %v8201_v26  ;;  %3353 = vmatpush.bf16.msra.mxu1 %v6893_v29  ;;  %v9622_v23 = vld [vmem:[#allocation2 + $0x84] sm:$0xf]  ;;  %v7277_v26 = vor.u32 %v9822_v16, %v7274_v17 }
  0xa0   :  { %3322 = vmatmul.bf16.vlgmr.msrb.gmra.mxu2 %v10673_v38  ;;  %v6474_v24 = vld [vmem:[#allocation2 + $0xa0] sm:$0xf0] }
  0xa1   :  { %3366 = vmatpush.bf16.msra.mxu2 %v7149_v30  ;;  %3341 = vmatpush.bf16.msra.mxu0 %v6605_v43  ;;  %v9686_v25 = vld [vmem:[#allocation2 + $0x284] sm:$0xf]  ;;  %v6477_v32 = vor.u32 %v9622_v23, %v6474_v24 }
  0xa2   :  { %3335 = vmatmul.bf16.vlgmr.msrb.gmra.mxu3 %v10677_v42  ;;  %v6730_v27 = vld [vmem:[#allocation2 + $0x2a0] sm:$0xf0] }
  0xa3   :  { %3379 = vmatpush.bf16.msra.mxu3 %v7405_v34  ;;  %3354 = vmatpush.bf16.msra.mxu1 %v6861_v45  ;;  %v9750_v28 = vld [vmem:[#allocation2 + $0x484] sm:$0xf]  ;;  %v6733_v33 = vor.u32 %v9686_v25, %v6730_v27 }
  0xa4   :  { %v6986_v29 = vld [vmem:[#allocation2 + $0x4a0] sm:$0xf0] }
  0xa5   :  { %3367 = vmatpush.bf16.msra.mxu2 %v7117_v46  ;;  %3342 = vmatpush.bf16.msra.mxu0 %v6573_v56  ;;  %v9814_v30 = vld [vmem:[#allocation2 + $0x684] sm:$0xf]  ;;  %v6989_v34 = vor.u32 %v9750_v28, %v6986_v29 }
  0xa6   :  { %v7242_v31 = vld [vmem:[#allocation2 + $0x6a0] sm:$0xf0] }
  0xa7   :  { %3380 = vmatpush.bf16.msra.mxu3 %v7373_v50  ;;  %3355 = vmatpush.bf16.msra.mxu1 %v6829_v57  ;;  %v9614_v35 = vld [vmem:[#allocation2 + $0x44] sm:$0xf]  ;;  %v7245_v39 = vor.u32 %v9814_v30, %v7242_v31 }
  0xa8   :  { %v6442_v36 = vld [vmem:[#allocation2 + $0x60] sm:$0xf0] }
  0xa9   :  { %3368 = vmatpush.bf16.msra.mxu2 %v7085_v58  ;;  %3343 = vmatpush.bf16.msra.mxu0 %v6541_v5  ;;  %v9678_v37 = vld [vmem:[#allocation2 + $0x244] sm:$0xf]  ;;  %v6445_v48 = vor.u32 %v9614_v35, %v6442_v36 }
  0xaa   :  { %v6698_v40 = vld [vmem:[#allocation2 + $0x260] sm:$0xf0] }
  0xab   :  { %3381 = vmatpush.bf16.msra.mxu3 %v7341_v62  ;;  %3356 = vmatpush.bf16.msra.mxu1 %v6797_v7  ;;  %v9742_v43 = vld [vmem:[#allocation2 + $0x444] sm:$0xf]  ;;  %v6701_v51 = vor.u32 %v9678_v37, %v6698_v40 }
  0xac   :  { %v6954_v45 = vld [vmem:[#allocation2 + $0x460] sm:$0xf0] }
  0xad   :  { %3369 = vmatpush.bf16.msra.mxu2 %v7053_v8  ;;  %3344 = vmatpush.bf16.msra.mxu0 %v6509_v18  ;;  %v9806_v46 = vld [vmem:[#allocation2 + $0x644] sm:$0xf]  ;;  %v6957_v52 = vor.u32 %v9742_v43, %v6954_v45 }
  0xae   :  { %v7210_v47 = vld [vmem:[#allocation2 + $0x660] sm:$0xf0] }
  0xaf   :  { %3382 = vmatpush.bf16.msra.mxu3 %v7309_v12  ;;  %3357 = vmatpush.bf16.msra.mxu1 %v6765_v19  ;;  %v9606_v49 = vld [vmem:[#allocation2 + $0x4] sm:$0xf]  ;;  %v7213_v56 = vor.u32 %v9806_v46, %v7210_v47 }
  0xb0   :  { %v6410_v50 = vld [vmem:[#allocation2 + $0x20] sm:$0xf0] }
  0xb1   :  { %3370 = vmatpush.bf16.msra.mxu2 %v7021_v22  ;;  %3345 = vmatpush.bf16.msra.mxu0 %v6477_v32  ;;  %v9670_v53 = vld [vmem:[#allocation2 + $0x204] sm:$0xf]  ;;  %v6413_v63 = vor.u32 %v9606_v49, %v6410_v50 }
  0xb2   :  { %v6666_v54 = vld [vmem:[#allocation2 + $0x220] sm:$0xf0] }
  0xb3   :  { %3383 = vmatpush.bf16.msra.mxu3 %v7277_v26  ;;  %3358 = vmatpush.bf16.msra.mxu1 %v6733_v33  ;;  %v9734_v55 = vld [vmem:[#allocation2 + $0x404] sm:$0xf]  ;;  %v6669_v3 = vor.u32 %v9670_v53, %v6666_v54 }
  0xb4   :  { %v6922_v57 = vld [vmem:[#allocation2 + $0x420] sm:$0xf0] }
  0xb5   :  { %3371 = vmatpush.bf16.msra.mxu2 %v6989_v34  ;;  %v9798_v58 = vld [vmem:[#allocation2 + $0x604] sm:$0xf]  ;;  %3346 = vmatpush.bf16.msra.mxu0 %v6445_v48  ;;  %v6925_v5 = vor.u32 %v9734_v55, %v6922_v57 }
  0xb6   :  { %v7178_v59 = vld [vmem:[#allocation2 + $0x620] sm:$0xf0] }
  0xb7   :  { %3384 = vmatpush.bf16.msra.mxu3 %v7245_v39  ;;  %v9918_v60 = vld [vmem:[#allocation2 + $0x9c4] sm:$0xf]  ;;  %3359 = vmatpush.bf16.msra.mxu1 %v6701_v51  ;;  %v7181_v9 = vor.u32 %v9798_v58, %v7178_v59 }
  0xb8   :  { %v7658_v61 = vld [vmem:[#allocation2 + $0x9e0] sm:$0xf0] }
  0xb9   :  { %v9982_v62 = vld [vmem:[#allocation2 + $0xbc4] sm:$0xf]  ;;  %3372 = vmatpush.bf16.msra.mxu2 %v6957_v52  ;;  %v7661_v10 = vor.u32 %v9918_v60, %v7658_v61  ;;  %3347 = vmatpush.bf16.msra.mxu0 %v6413_v63 }
  0xba   :  { %v7914_v0 = vld [vmem:[#allocation2 + $0xbe0] sm:$0xf0] }
  0xbb   :  { %v10046_v1 = vld [vmem:[#allocation2 + $0xdc4] sm:$0xf]  ;;  %3385 = vmatpush.bf16.msra.mxu3 %v7213_v56  ;;  %v7917_v11 = vor.u32 %v9982_v62, %v7914_v0  ;;  %3360 = vmatpush.bf16.msra.mxu1 %v6669_v3 }
  0xbc   :  { %v8170_v2 = vld [vmem:[#allocation2 + $0xde0] sm:$0xf0]  ;;  %3348 = vmatmul.bf16.vlgmr.msra.gmra.mxu0 %v10660_v20 }
  0xbd   :  { %v10110_v7 = vld [vmem:[#allocation2 + $0xfc4] sm:$0xf]  ;;  %v8173_v12 = vor.u32 %v10046_v1, %v8170_v2  ;;  %3373 = vmatpush.bf16.msra.mxu2 %v6925_v5  ;;  %3392 = vmatpush.bf16.msrb.mxu0 %v7661_v10 }
  0xbe   :  { %v8426_v8 = vld [vmem:[#allocation2 + $0xfe0] sm:$0xf0]  ;;  %3361 = vmatmul.bf16.vlgmr.msra.gmra.mxu1 %v10663_v21 }
  0xbf   :  { %v9910_v13 = vld [vmem:[#allocation2 + $0x984] sm:$0xf]  ;;  %v8429_v16 = vor.u32 %v10110_v7, %v8426_v8  ;;  %3386 = vmatpush.bf16.msra.mxu3 %v7181_v9  ;;  %3405 = vmatpush.bf16.msrb.mxu1 %v7917_v11 }
  0xc0   :  { %v7626_v14 = vld [vmem:[#allocation2 + $0x9a0] sm:$0xf0]  ;;  %3374 = vmatmul.bf16.vlgmr.msra.gmra.mxu2 %v10652_v4 }
  0xc1   :  { %v9974_v15 = vld [vmem:[#allocation2 + $0xb84] sm:$0xf]  ;;  %v7629_v24 = vor.u32 %v9910_v13, %v7626_v14  ;;  %3418 = vmatpush.bf16.msrb.mxu2 %v8173_v12 }
  0xc2   :  { %v7882_v17 = vld [vmem:[#allocation2 + $0xba0] sm:$0xf0]  ;;  %3387 = vmatmul.bf16.vlgmr.msra.gmra.mxu3 %v10657_v6 }
  0xc3   :  { %v10038_v18 = vld [vmem:[#allocation2 + $0xd84] sm:$0xf]  ;;  %v7885_v25 = vor.u32 %v9974_v15, %v7882_v17  ;;  %3431 = vmatpush.bf16.msrb.mxu3 %v8429_v16  ;;  %3393 = vmatpush.bf16.msrb.mxu0 %v7629_v24 }
  0xc4   :  { %v8138_v19 = vld [vmem:[#allocation2 + $0xda0] sm:$0xf0] }
  0xc5   :  { %v10102_v22 = vld [vmem:[#allocation2 + $0xf84] sm:$0xf]  ;;  %v8141_v26 = vor.u32 %v10038_v18, %v8138_v19  ;;  %3406 = vmatpush.bf16.msrb.mxu1 %v7885_v25 }
  0xc6   :  { %v8394_v23 = vld [vmem:[#allocation2 + $0xfa0] sm:$0xf0] }
  0xc7   :  { %v9902_v27 = vld [vmem:[#allocation2 + $0x944] sm:$0xf]  ;;  %v8397_v30 = vor.u32 %v10102_v22, %v8394_v23  ;;  %3419 = vmatpush.bf16.msrb.mxu2 %v8141_v26 }
  0xc8   :  { %v7594_v28 = vld [vmem:[#allocation2 + $0x960] sm:$0xf0] }
  0xc9   :  { %v9966_v29 = vld [vmem:[#allocation2 + $0xb44] sm:$0xf]  ;;  %v7597_v36 = vor.u32 %v9902_v27, %v7594_v28  ;;  %3432 = vmatpush.bf16.msrb.mxu3 %v8397_v30 }
  0xca   :  { %v7850_v31 = vld [vmem:[#allocation2 + $0xb60] sm:$0xf0] }
  0xcb   :  { %v10030_v32 = vld [vmem:[#allocation2 + $0xd44] sm:$0xf]  ;;  %v7853_v37 = vor.u32 %v9966_v29, %v7850_v31  ;;  %3394 = vmatpush.bf16.msrb.mxu0 %v7597_v36 }
  0xcc   :  { %v8106_v33 = vld [vmem:[#allocation2 + $0xd60] sm:$0xf0] }
  0xcd   :  { %v10094_v34 = vld [vmem:[#allocation2 + $0xf44] sm:$0xf]  ;;  %v8109_v39 = vor.u32 %v10030_v32, %v8106_v33  ;;  %3407 = vmatpush.bf16.msrb.mxu1 %v7853_v37 }
  0xce   :  { %v8362_v35 = vld [vmem:[#allocation2 + $0xf60] sm:$0xf0] }
  0xcf   :  { %v9894_v40 = vld [vmem:[#allocation2 + $0x904] sm:$0xf]  ;;  %v8365_v46 = vor.u32 %v10094_v34, %v8362_v35  ;;  %3420 = vmatpush.bf16.msrb.mxu2 %v8109_v39 }
  0xd0   :  { %v7562_v43 = vld [vmem:[#allocation2 + $0x920] sm:$0xf0] }
  0xd1   :  { %v9958_v45 = vld [vmem:[#allocation2 + $0xb04] sm:$0xf]  ;;  %v7565_v52 = vor.u32 %v9894_v40, %v7562_v43  ;;  %3433 = vmatpush.bf16.msrb.mxu3 %v8365_v46  ;;  %v6640_v43 = vld [vmem:[#allocation2 + $0x1c8] sm:$0xf] }
  0xd2   :  { %v7818_v47 = vld [vmem:[#allocation2 + $0xb20] sm:$0xf0]  ;;  %v6896_v46 = vld [vmem:[#allocation2 + $0x3c8] sm:$0xf] }
  0xd3   :  { %v10022_v48 = vld [vmem:[#allocation2 + $0xd04] sm:$0xf]  ;;  %v7821_v53 = vor.u32 %v9958_v45, %v7818_v47  ;;  %3395 = vmatpush.bf16.msrb.mxu0 %v7565_v52  ;;  %v9667_v45 = vld [vmem:[#allocation2 + $0x1e4] sm:$0xf0] }
  0xd4   :  { %v8074_v49 = vld [vmem:[#allocation2 + $0xd20] sm:$0xf0] }
  0xd5   :  { %v10086_v50 = vld [vmem:[#allocation2 + $0xf04] sm:$0xf]  ;;  %v8077_v54 = vor.u32 %v10022_v48, %v8074_v49  ;;  %3408 = vmatpush.bf16.msrb.mxu1 %v7821_v53  ;;  %v9731_v48 = vld [vmem:[#allocation2 + $0x3e4] sm:$0xf0] }
  0xd6   :  { %v8330_v51 = vld [vmem:[#allocation2 + $0xf20] sm:$0xf0]  ;;  %v7152_v49 = vld [vmem:[#allocation2 + $0x5c8] sm:$0xf] }
  0xd7   :  { %v9886_v55 = vld [vmem:[#allocation2 + $0x8c4] sm:$0xf]  ;;  %v8333_v58 = vor.u32 %v10086_v50, %v8330_v51  ;;  %3421 = vmatpush.bf16.msrb.mxu2 %v8077_v54  ;;  %v9795_v50 = vld [vmem:[#allocation2 + $0x5e4] sm:$0xf0] }
  0xd8   :  { %v7530_v56 = vld [vmem:[#allocation2 + $0x8e0] sm:$0xf0]  ;;  %v7408_v53 = vld [vmem:[#allocation2 + $0x7c8] sm:$0xf] }
  0xd9   :  { %v9950_v57 = vld [vmem:[#allocation2 + $0xac4] sm:$0xf]  ;;  %v7533_v0 = vor.u32 %v9886_v55, %v7530_v56  ;;  %3434 = vmatpush.bf16.msrb.mxu3 %v8333_v58  ;;  %v9859_v54 = vld [vmem:[#allocation2 + $0x7e4] sm:$0xf0]  ;;  %v6641_v56 = vor.u32 %v9667_v45, %v6640_v43  ;;  %v7153_v58 = vor.u32 %v9795_v50, %v7152_v49 }
  0xda   :  { %v7786_v59 = vld [vmem:[#allocation2 + $0xae0] sm:$0xf0]  ;;  %v7024_v43 = vld [vmem:[#allocation2 + $0x4c8] sm:$0xf] }
  0xdb   :  { %v10014_v60 = vld [vmem:[#allocation2 + $0xcc4] sm:$0xf]  ;;  %v7789_v1 = vor.u32 %v9950_v57, %v7786_v59  ;;  %3396 = vmatpush.bf16.msrb.mxu0 %v7533_v0  ;;  %v6897_v57 = vor.u32 %v9731_v48, %v6896_v46  ;;  %v6608_v59 = vld [vmem:[#allocation2 + $0x188] sm:$0xf] }
  0xdc   :  { %v8042_v61 = vld [vmem:[#allocation2 + $0xce0] sm:$0xf0]  ;;  %v7120_v0 = vld [vmem:[#allocation2 + $0x588] sm:$0xf] }
  0xdd   :  { %v10078_v62 = vld [vmem:[#allocation2 + $0xec4] sm:$0xf]  ;;  %v8045_v2 = vor.u32 %v10014_v60, %v8042_v61  ;;  %3409 = vmatpush.bf16.msrb.mxu1 %v7789_v1  ;;  %v9659_v60 = vld [vmem:[#allocation2 + $0x1a4] sm:$0xf0] }
  0xde   :  { %v8298_v63 = vld [vmem:[#allocation2 + $0xee0] sm:$0xf0]  ;;  %v6864_v61 = vld [vmem:[#allocation2 + $0x388] sm:$0xf] }
  0xdf   :  { %v9878_v3 = vld [vmem:[#allocation2 + $0x884] sm:$0xf]  ;;  %v8301_v8 = vor.u32 %v10078_v62, %v8298_v63  ;;  %3422 = vmatpush.bf16.msrb.mxu2 %v8045_v2  ;;  %v7409_v62 = vor.u32 %v9859_v54, %v7408_v53  ;;  %v9723_v63 = vld [vmem:[#allocation2 + $0x3a4] sm:$0xf0] }
  0xe0   :  { %v7498_v5 = vld [vmem:[#allocation2 + $0x8a0] sm:$0xf0]  ;;  %v9787_v1 = vld [vmem:[#allocation2 + $0x5a4] sm:$0xf0] }
  0xe1   :  { %v9942_v7 = vld [vmem:[#allocation2 + $0xa84] sm:$0xf]  ;;  %v7501_v14 = vor.u32 %v9878_v3, %v7498_v5  ;;  %3435 = vmatpush.bf16.msrb.mxu3 %v8301_v8  ;;  %v7376_v2 = vld [vmem:[#allocation2 + $0x788] sm:$0xf]  ;;  %v6609_v5 = vor.u32 %v9659_v60, %v6608_v59  ;;  %v7121_v8 = vor.u32 %v9787_v1, %v7120_v0 }
  0xe2   :  { %v7754_v9 = vld [vmem:[#allocation2 + $0xaa0] sm:$0xf0]  ;;  %v9851_v3 = vld [vmem:[#allocation2 + $0x7a4] sm:$0xf0] }
  0xe3   :  { %v10006_v10 = vld [vmem:[#allocation2 + $0xc84] sm:$0xf]  ;;  %v7757_v15 = vor.u32 %v9942_v7, %v7754_v9  ;;  %3397 = vmatpush.bf16.msrb.mxu0 %v7501_v14  ;;  %v6865_v7 = vor.u32 %v9723_v63, %v6864_v61  ;;  %v6576_v9 = vld [vmem:[#allocation2 + $0x148] sm:$0xf] }
  0xe4   :  { %v8010_v11 = vld [vmem:[#allocation2 + $0xca0] sm:$0xf0]  ;;  %v7088_v14 = vld [vmem:[#allocation2 + $0x548] sm:$0xf] }
  0xe5   :  { %v10070_v12 = vld [vmem:[#allocation2 + $0xe84] sm:$0xf]  ;;  %v8013_v16 = vor.u32 %v10006_v10, %v8010_v11  ;;  %3410 = vmatpush.bf16.msrb.mxu1 %v7757_v15  ;;  %v9651_v10 = vld [vmem:[#allocation2 + $0x164] sm:$0xf0] }
  0xe6   :  { %v8266_v13 = vld [vmem:[#allocation2 + $0xea0] sm:$0xf0]  ;;  %v6832_v11 = vld [vmem:[#allocation2 + $0x348] sm:$0xf] }
  0xe7   :  { %v9870_v17 = vld [vmem:[#allocation2 + $0x844] sm:$0xf]  ;;  %v8269_v22 = vor.u32 %v10070_v12, %v8266_v13  ;;  %3423 = vmatpush.bf16.msrb.mxu2 %v8013_v16  ;;  %v7377_v12 = vor.u32 %v9851_v3, %v7376_v2  ;;  %v9715_v13 = vld [vmem:[#allocation2 + $0x364] sm:$0xf0] }
  0xe8   :  { %v7466_v18 = vld [vmem:[#allocation2 + $0x860] sm:$0xf0]  ;;  %v9779_v15 = vld [vmem:[#allocation2 + $0x564] sm:$0xf0] }
  0xe9   :  { %v9934_v19 = vld [vmem:[#allocation2 + $0xa44] sm:$0xf]  ;;  %v7469_v28 = vor.u32 %v9870_v17, %v7466_v18  ;;  %3436 = vmatpush.bf16.msrb.mxu3 %v8269_v22  ;;  %v7344_v16 = vld [vmem:[#allocation2 + $0x748] sm:$0xf]  ;;  %v6577_v18 = vor.u32 %v9651_v10, %v6576_v9  ;;  %v7089_v22 = vor.u32 %v9779_v15, %v7088_v14 }
  0xea   :  { %v7722_v23 = vld [vmem:[#allocation2 + $0xa60] sm:$0xf0]  ;;  %v9843_v17 = vld [vmem:[#allocation2 + $0x764] sm:$0xf0] }
  0xeb   :  { %v9998_v24 = vld [vmem:[#allocation2 + $0xc44] sm:$0xf]  ;;  %v7725_v31 = vor.u32 %v9934_v19, %v7722_v23  ;;  %3398 = vmatpush.bf16.msrb.mxu0 %v7469_v28  ;;  %v6833_v19 = vor.u32 %v9715_v13, %v6832_v11  ;;  %v6544_v23 = vld [vmem:[#allocation2 + $0x108] sm:$0xf] }
  0xec   :  { %v7978_v25 = vld [vmem:[#allocation2 + $0xc60] sm:$0xf0]  ;;  %v7056_v28 = vld [vmem:[#allocation2 + $0x508] sm:$0xf] }
  0xed   :  { %v10062_v26 = vld [vmem:[#allocation2 + $0xe44] sm:$0xf]  ;;  %v7981_v32 = vor.u32 %v9998_v24, %v7978_v25  ;;  %3411 = vmatpush.bf16.msrb.mxu1 %v7725_v31  ;;  %v9643_v24 = vld [vmem:[#allocation2 + $0x124] sm:$0xf0] }
  0xee   :  { %v8234_v27 = vld [vmem:[#allocation2 + $0xe60] sm:$0xf0]  ;;  %v6800_v25 = vld [vmem:[#allocation2 + $0x308] sm:$0xf] }
  0xef   :  { %v9862_v29 = vld [vmem:[#allocation2 + $0x804] sm:$0xf]  ;;  %v8237_v36 = vor.u32 %v10062_v26, %v8234_v27  ;;  %3424 = vmatpush.bf16.msrb.mxu2 %v7981_v32  ;;  %v7345_v26 = vor.u32 %v9843_v17, %v7344_v16  ;;  %v9707_v27 = vld [vmem:[#allocation2 + $0x324] sm:$0xf0]  ;;  %v6545_v32 = vor.u32 %v9643_v24, %v6544_v23 }
  0xf0   :  { %v7434_v30 = vld [vmem:[#allocation2 + $0x820] sm:$0xf0]  ;;  %v9835_v31 = vld [vmem:[#allocation2 + $0x724] sm:$0xf0] }
  0xf1   :  { %v9926_v33 = vld [vmem:[#allocation2 + $0xa04] sm:$0xf]  ;;  %v7437_v47 = vor.u32 %v9862_v29, %v7434_v30  ;;  %3437 = vmatpush.bf16.msrb.mxu3 %v8237_v36  ;;  %v9771_v29 = vld [vmem:[#allocation2 + $0x524] sm:$0xf0] }
  0xf2   :  { %v7690_v34 = vld [vmem:[#allocation2 + $0xa20] sm:$0xf0]  ;;  %v7312_v30 = vld [vmem:[#allocation2 + $0x708] sm:$0xf] }
  0xf3   :  { %v9990_v35 = vld [vmem:[#allocation2 + $0xc04] sm:$0xf]  ;;  %v7693_v51 = vor.u32 %v9926_v33, %v7690_v34  ;;  %3399 = vmatpush.bf16.msrb.mxu0 %v7437_v47  ;;  %v6801_v33 = vor.u32 %v9707_v27, %v6800_v25  ;;  %v7057_v34 = vor.u32 %v9771_v29, %v7056_v28  ;;  %v9635_v36 = vld [vmem:[#allocation2 + $0xe4] sm:$0xf0] }
  0xf4   :  { %v7946_v37 = vld [vmem:[#allocation2 + $0xc20] sm:$0xf0]  ;;  %v9763_v45 = vld [vmem:[#allocation2 + $0x4e4] sm:$0xf0] }
  0xf5   :  { %v10054_v39 = vld [vmem:[#allocation2 + $0xe04] sm:$0xf]  ;;  %v7949_v52 = vor.u32 %v9990_v35, %v7946_v37  ;;  %3412 = vmatpush.bf16.msrb.mxu1 %v7693_v51  ;;  %v6512_v35 = vld [vmem:[#allocation2 + $0xc8] sm:$0xf]  ;;  %v7025_v50 = vor.u32 %v9763_v45, %v7024_v43 }
  0xf6   :  { %v8202_v40 = vld [vmem:[#allocation2 + $0xe20] sm:$0xf0]  ;;  %3400 = vmatmul.bf16.vlgmr.msrb.gmra.mxu0 %v10675_v41  ;;  %v6768_v37 = vld [vmem:[#allocation2 + $0x2c8] sm:$0xf]  ;;  %v6513_v48 = vor.u32 %v9635_v36, %v6512_v35 }
  0xf7   :  { %v8205_v55 = vor.u32 %v10054_v39, %v8202_v40  ;;  %3425 = vmatpush.bf16.msrb.mxu2 %v7949_v52  ;;  %3444 = vmatpush.bf16.msra.mxu0 %v6641_v56  ;;  %v7313_v39 = vor.u32 %v9835_v31, %v7312_v30  ;;  %v9699_v40 = vld [vmem:[#allocation2 + $0x2e4] sm:$0xf0] }
  0xf8   :  { %3413 = vmatmul.bf16.vlgmr.msrb.gmra.mxu1 %v10679_v44  ;;  %v7280_v46 = vld [vmem:[#allocation2 + $0x6c8] sm:$0xf]  ;;  %v6769_v49 = vor.u32 %v9699_v40, %v6768_v37 }
  0xf9   :  { %3438 = vmatpush.bf16.msrb.mxu3 %v8205_v55  ;;  %3457 = vmatpush.bf16.msra.mxu1 %v6897_v57  ;;  %v9827_v47 = vld [vmem:[#allocation2 + $0x6e4] sm:$0xf0] }
  0xfa   :  { %3426 = vmatmul.bf16.vlgmr.msrb.gmra.mxu2 %v10673_v38  ;;  %v6480_v51 = vld [vmem:[#allocation2 + $0x88] sm:$0xf]  ;;  %v7281_v54 = vor.u32 %v9827_v47, %v7280_v46 }
  0xfb   :  { %3470 = vmatpush.bf16.msra.mxu2 %v7153_v58  ;;  %3445 = vmatpush.bf16.msra.mxu0 %v6609_v5  ;;  %v9627_v52 = vld [vmem:[#allocation2 + $0xa4] sm:$0xf0] }
  0xfc   :  { %3439 = vmatmul.bf16.vlgmr.msrb.gmra.mxu3 %v10677_v42  ;;  %v6736_v53 = vld [vmem:[#allocation2 + $0x288] sm:$0xf]  ;;  %v6481_v60 = vor.u32 %v9627_v52, %v6480_v51 }
  0xfd   :  { %3483 = vmatpush.bf16.msra.mxu3 %v7409_v62  ;;  %3458 = vmatpush.bf16.msra.mxu1 %v6865_v7  ;;  %v9691_v55 = vld [vmem:[#allocation2 + $0x2a4] sm:$0xf0] }
  0xfe   :  { %v6992_v56 = vld [vmem:[#allocation2 + $0x488] sm:$0xf]  ;;  %v6737_v61 = vor.u32 %v9691_v55, %v6736_v53 }
  0xff   :  { %3471 = vmatpush.bf16.msra.mxu2 %v7121_v8  ;;  %3446 = vmatpush.bf16.msra.mxu0 %v6577_v18  ;;  %v9755_v57 = vld [vmem:[#allocation2 + $0x4a4] sm:$0xf0] }
 0x100   :  { %v7248_v58 = vld [vmem:[#allocation2 + $0x688] sm:$0xf]  ;;  %v6993_v62 = vor.u32 %v9755_v57, %v6992_v56 }
 0x101   :  { %3484 = vmatpush.bf16.msra.mxu3 %v7377_v12  ;;  %3459 = vmatpush.bf16.msra.mxu1 %v6833_v19  ;;  %v9819_v59 = vld [vmem:[#allocation2 + $0x6a4] sm:$0xf0] }
 0x102   :  { %v6448_v63 = vld [vmem:[#allocation2 + $0x48] sm:$0xf]  ;;  %v7249_v2 = vor.u32 %v9819_v59, %v7248_v58 }
 0x103   :  { %3472 = vmatpush.bf16.msra.mxu2 %v7089_v22  ;;  %3447 = vmatpush.bf16.msra.mxu0 %v6545_v32  ;;  %v9619_v0 = vld [vmem:[#allocation2 + $0x64] sm:$0xf0] }
 0x104   :  { %v6704_v1 = vld [vmem:[#allocation2 + $0x248] sm:$0xf]  ;;  %v6449_v10 = vor.u32 %v9619_v0, %v6448_v63 }
 0x105   :  { %3485 = vmatpush.bf16.msra.mxu3 %v7345_v26  ;;  %3460 = vmatpush.bf16.msra.mxu1 %v6801_v33  ;;  %v9683_v3 = vld [vmem:[#allocation2 + $0x264] sm:$0xf0] }
 0x106   :  { %v6960_v5 = vld [vmem:[#allocation2 + $0x448] sm:$0xf]  ;;  %v6705_v13 = vor.u32 %v9683_v3, %v6704_v1 }
 0x107   :  { %3473 = vmatpush.bf16.msra.mxu2 %v7057_v34  ;;  %3448 = vmatpush.bf16.msra.mxu0 %v6513_v48  ;;  %v9747_v7 = vld [vmem:[#allocation2 + $0x464] sm:$0xf0] }
 0x108   :  { %v7216_v8 = vld [vmem:[#allocation2 + $0x648] sm:$0xf]  ;;  %v6961_v14 = vor.u32 %v9747_v7, %v6960_v5 }
 0x109   :  { %3486 = vmatpush.bf16.msra.mxu3 %v7313_v39  ;;  %3461 = vmatpush.bf16.msra.mxu1 %v6769_v49  ;;  %v9811_v9 = vld [vmem:[#allocation2 + $0x664] sm:$0xf0] }
 0x10a   :  { %v6416_v11 = vld [vmem:[#allocation2 + $0x8] sm:$0xf]  ;;  %v7217_v18 = vor.u32 %v9811_v9, %v7216_v8 }
 0x10b   :  { %3474 = vmatpush.bf16.msra.mxu2 %v7025_v50  ;;  %3449 = vmatpush.bf16.msra.mxu0 %v6481_v60  ;;  %v9611_v12 = vld [vmem:[#allocation2 + $0x24] sm:$0xf0] }
 0x10c   :  { %v6672_v15 = vld [vmem:[#allocation2 + $0x208] sm:$0xf]  ;;  %v6417_v27 = vor.u32 %v9611_v12, %v6416_v11 }
 0x10d   :  { %3487 = vmatpush.bf16.msra.mxu3 %v7281_v54  ;;  %3462 = vmatpush.bf16.msra.mxu1 %v6737_v61  ;;  %v9675_v16 = vld [vmem:[#allocation2 + $0x224] sm:$0xf0] }
 0x10e   :  { %v6928_v17 = vld [vmem:[#allocation2 + $0x408] sm:$0xf]  ;;  %v6673_v31 = vor.u32 %v9675_v16, %v6672_v15 }
 0x10f   :  { %3475 = vmatpush.bf16.msra.mxu2 %v6993_v62  ;;  %v9739_v19 = vld [vmem:[#allocation2 + $0x424] sm:$0xf0]  ;;  %3450 = vmatpush.bf16.msra.mxu0 %v6449_v10 }
 0x110   :  { %v7184_v22 = vld [vmem:[#allocation2 + $0x608] sm:$0xf]  ;;  %v6929_v32 = vor.u32 %v9739_v19, %v6928_v17 }
 0x111   :  { %3488 = vmatpush.bf16.msra.mxu3 %v7249_v2  ;;  %v9803_v23 = vld [vmem:[#allocation2 + $0x624] sm:$0xf0]  ;;  %3463 = vmatpush.bf16.msra.mxu1 %v6705_v13 }
 0x112   :  { %v7664_v24 = vld [vmem:[#allocation2 + $0x9c8] sm:$0xf]  ;;  %v7185_v35 = vor.u32 %v9803_v23, %v7184_v22  ;;  %v10697_v22 = vld [vmem:[#allocation4] sm:$0xff] }
 0x113   :  { %v9923_v25 = vld [vmem:[#allocation2 + $0x9e4] sm:$0xf0]  ;;  %3476 = vmatpush.bf16.msra.mxu2 %v6961_v14  ;;  %3451 = vmatpush.bf16.msra.mxu0 %v6417_v27 }
 0x114   :  { %v7920_v26 = vld [vmem:[#allocation2 + $0xbc8] sm:$0xf]  ;;  %v7665_v36 = vor.u32 %v9923_v25, %v7664_v24 }
 0x115   :  { %v9987_v28 = vld [vmem:[#allocation2 + $0xbe4] sm:$0xf0]  ;;  %3489 = vmatpush.bf16.msra.mxu3 %v7217_v18  ;;  %3464 = vmatpush.bf16.msra.mxu1 %v6673_v31 }
 0x116   :  { %v8176_v29 = vld [vmem:[#allocation2 + $0xdc8] sm:$0xf]  ;;  %v7921_v37 = vor.u32 %v9987_v28, %v7920_v26  ;;  %3452 = vmatmul.bf16.vlgmr.msra.gmra.mxu0 %v10660_v20 }
 0x117   :  { %v10051_v30 = vld [vmem:[#allocation2 + $0xde4] sm:$0xf0]  ;;  %3477 = vmatpush.bf16.msra.mxu2 %v6929_v32  ;;  %3496 = vmatpush.bf16.msrb.mxu0 %v7665_v36 }
 0x118   :  { %v8432_v33 = vld [vmem:[#allocation2 + $0xfc8] sm:$0xf]  ;;  %v8177_v39 = vor.u32 %v10051_v30, %v8176_v29  ;;  %3465 = vmatmul.bf16.vlgmr.msra.gmra.mxu1 %v10663_v21  ;;  %v632_v30 = vperm.slane %v10697_v22, 0 }
 0x119   :  { %v10115_v34 = vld [vmem:[#allocation2 + $0xfe4] sm:$0xf0]  ;;  %3490 = vmatpush.bf16.msra.mxu3 %v7185_v35  ;;  %3509 = vmatpush.bf16.msrb.mxu1 %v7921_v37 }
 0x11a   :  { %v7632_v40 = vld [vmem:[#allocation2 + $0x988] sm:$0xf]  ;;  %v8433_v46 = vor.u32 %v10115_v34, %v8432_v33  ;;  %3478 = vmatmul.bf16.vlgmr.msra.gmra.mxu2 %v10652_v4 }
 0x11b   :  { %v9915_v43 = vld [vmem:[#allocation2 + $0x9a4] sm:$0xf0]  ;;  %3522 = vmatpush.bf16.msrb.mxu2 %v8177_v39 }
 0x11c   :  { %v7888_v45 = vld [vmem:[#allocation2 + $0xb88] sm:$0xf]  ;;  %v7633_v52 = vor.u32 %v9915_v43, %v7632_v40  ;;  %3491 = vmatmul.bf16.vlgmr.msra.gmra.mxu3 %v10657_v6 }
 0x11d   :  { %v9979_v47 = vld [vmem:[#allocation2 + $0xba4] sm:$0xf0]  ;;  %3535 = vmatpush.bf16.msrb.mxu3 %v8433_v46  ;;  %v3245_v46 = vpop.f32.mrf.mxu0 }
 0x11e   :  { %v8144_v48 = vld [vmem:[#allocation2 + $0xd88] sm:$0xf]  ;;  %v7889_v53 = vor.u32 %v9979_v47, %v7888_v45  ;;  %3497 = vmatpush.bf16.msrb.mxu0 %v7633_v52 }
 0x11f   :  { %v10043_v49 = vld [vmem:[#allocation2 + $0xda4] sm:$0xf0] }
 0x120   :  { %v8400_v50 = vld [vmem:[#allocation2 + $0xf88] sm:$0xf]  ;;  %v8145_v54 = vor.u32 %v10043_v49, %v8144_v48  ;;  %3510 = vmatpush.bf16.msrb.mxu1 %v7889_v53  ;;  %v3246_v48 = vadd.f32 %v3245_v46, %v632_v30  ;;  %v3258_v49 = vpop.f32.mrf.mxu1  ;;  %v9855_v30 = vld [vmem:[#allocation2 + $0x7cc] sm:$0xf] }
 0x121   :  { %v10107_v51 = vld [vmem:[#allocation2 + $0xfa4] sm:$0xf0]  ;;  %v6866_v46 = vld [vmem:[#allocation2 + $0x3a8] sm:$0xf0] }
 0x122   :  { %v7600_v55 = vld [vmem:[#allocation2 + $0x948] sm:$0xf]  ;;  %v8401_v58 = vor.u32 %v10107_v51, %v8400_v50  ;;  %3523 = vmatpush.bf16.msrb.mxu2 %v8145_v54 }
 0x123   :  { %v9907_v56 = vld [vmem:[#allocation2 + $0x964] sm:$0xf0] }
 0x124   :  { %v7856_v57 = vld [vmem:[#allocation2 + $0xb48] sm:$0xf]  ;;  %v7601_v0 = vor.u32 %v9907_v56, %v7600_v55  ;;  %3536 = vmatpush.bf16.msrb.mxu3 %v8401_v58  ;;  %v3271_v55 = vpop.f32.mrf.mxu2 }
 0x125   :  { %v9971_v59 = vld [vmem:[#allocation2 + $0xb64] sm:$0xf0] }
 0x126   :  { %v8112_v60 = vld [vmem:[#allocation2 + $0xd48] sm:$0xf]  ;;  %v7857_v1 = vor.u32 %v9971_v59, %v7856_v57  ;;  %3498 = vmatpush.bf16.msrb.mxu0 %v7601_v0 }
 0x127   :  { %v10035_v61 = vld [vmem:[#allocation2 + $0xd64] sm:$0xf0] }
 0x128   :  { %v8368_v62 = vld [vmem:[#allocation2 + $0xf48] sm:$0xf]  ;;  %v8113_v2 = vor.u32 %v10035_v61, %v8112_v60  ;;  %3511 = vmatpush.bf16.msrb.mxu1 %v7857_v1  ;;  %v3259_v60 = vadd.f32 %v3258_v49, %v3246_v48  ;;  %v3284_v61 = vpop.f32.mrf.mxu3  ;;  %v7122_v48 = vld [vmem:[#allocation2 + $0x5a8] sm:$0xf0] }
 0x129   :  { %v10099_v63 = vld [vmem:[#allocation2 + $0xf64] sm:$0xf0]  ;;  %v9847_v49 = vld [vmem:[#allocation2 + $0x78c] sm:$0xf] }
 0x12a   :  { %v7568_v3 = vld [vmem:[#allocation2 + $0x908] sm:$0xf]  ;;  %v8369_v8 = vor.u32 %v10099_v63, %v8368_v62  ;;  %3524 = vmatpush.bf16.msrb.mxu2 %v8113_v2 }
 0x12b   :  { %v9899_v5 = vld [vmem:[#allocation2 + $0x924] sm:$0xf0] }
 0x12c   :  { %v7824_v7 = vld [vmem:[#allocation2 + $0xb08] sm:$0xf]  ;;  %v7569_v14 = vor.u32 %v9899_v5, %v7568_v3  ;;  %3537 = vmatpush.bf16.msrb.mxu3 %v8369_v8  ;;  %v3272_v3 = vadd.f32 %v3271_v55, %v3259_v60  ;;  %v6578_v55 = vld [vmem:[#allocation2 + $0x168] sm:$0xf0] }
 0x12d   :  { %v9963_v9 = vld [vmem:[#allocation2 + $0xb24] sm:$0xf0]  ;;  %v7090_v60 = vld [vmem:[#allocation2 + $0x568] sm:$0xf0] }
 0x12e   :  { %v8080_v10 = vld [vmem:[#allocation2 + $0xd08] sm:$0xf]  ;;  %v7825_v16 = vor.u32 %v9963_v9, %v7824_v7  ;;  %3499 = vmatpush.bf16.msrb.mxu0 %v7569_v14 }
 0x12f   :  { %v10027_v11 = vld [vmem:[#allocation2 + $0xd24] sm:$0xf0] }
 0x130   :  { %v8336_v12 = vld [vmem:[#allocation2 + $0xf08] sm:$0xf]  ;;  %v8081_v17 = vor.u32 %v10027_v11, %v8080_v10  ;;  %3512 = vmatpush.bf16.msrb.mxu1 %v7825_v16  ;;  %v9663_v16 = vld [vmem:[#allocation2 + $0x1cc] sm:$0xf] }
 0x131   :  { %v10091_v13 = vld [vmem:[#allocation2 + $0xf24] sm:$0xf0] }
 0x132   :  { %v7536_v15 = vld [vmem:[#allocation2 + $0x8c8] sm:$0xf]  ;;  %v8337_v23 = vor.u32 %v10091_v13, %v8336_v12  ;;  %3525 = vmatpush.bf16.msrb.mxu2 %v8081_v17  ;;  %v6642_v17 = vld [vmem:[#allocation2 + $0x1e8] sm:$0xf0] }
 0x133   :  { %v9891_v18 = vld [vmem:[#allocation2 + $0x8e4] sm:$0xf0] }
 0x134   :  { %v7792_v19 = vld [vmem:[#allocation2 + $0xac8] sm:$0xf]  ;;  %v7537_v29 = vor.u32 %v9891_v18, %v7536_v15  ;;  %3538 = vmatpush.bf16.msrb.mxu3 %v8337_v23  ;;  %v10700_v15 = vadd.f32 %v3284_v61, %v3272_v3  ;;  %v9727_v18 = vld [vmem:[#allocation2 + $0x3cc] sm:$0xf] }
 0x135   :  { %v9955_v24 = vld [vmem:[#allocation2 + $0xae4] sm:$0xf0]  ;;  %v9839_v61 = vld [vmem:[#allocation2 + $0x74c] sm:$0xf] }
 0x136   :  { %v8048_v25 = vld [vmem:[#allocation2 + $0xcc8] sm:$0xf]  ;;  %v7793_v31 = vor.u32 %v9955_v24, %v7792_v19  ;;  %3500 = vmatpush.bf16.msrb.mxu0 %v7537_v29  ;;  %v3247_v19 = vpop.f32.mrf.mxu0  ;;  %v6898_v24 = vld [vmem:[#allocation2 + $0x3e8] sm:$0xf0] }
 0x137   :  { %v10019_v26 = vld [vmem:[#allocation2 + $0xce4] sm:$0xf0]  ;;  %v6546_v3 = vld [vmem:[#allocation2 + $0x128] sm:$0xf0] }
 0x138   :  { %v8304_v27 = vld [vmem:[#allocation2 + $0xec8] sm:$0xf]  ;;  %v8049_v32 = vor.u32 %v10019_v26, %v8048_v25  ;;  %3513 = vmatpush.bf16.msrb.mxu1 %v7793_v31  ;;  %v9791_v25 = vld [vmem:[#allocation2 + $0x5cc] sm:$0xf] }
 0x139   :  { %v10083_v28 = vld [vmem:[#allocation2 + $0xee4] sm:$0xf0]  ;;  %v7154_v26 = vld [vmem:[#allocation2 + $0x5e8] sm:$0xf0] }
 0x13a   :  { %v7504_v33 = vld [vmem:[#allocation2 + $0x888] sm:$0xf]  ;;  %v8305_v36 = vor.u32 %v10083_v28, %v8304_v27  ;;  %3526 = vmatpush.bf16.msrb.mxu2 %v8049_v32  ;;  %v3260_v27 = vpop.f32.mrf.mxu1  ;;  %v7410_v31 = vld [vmem:[#allocation2 + $0x7e8] sm:$0xf0]  ;;  %v3273_v32 = vpop.f32.mrf.mxu2 }
 0x13b   :  { %v9883_v34 = vld [vmem:[#allocation2 + $0x8a4] sm:$0xf0]  ;;  %v6514_v19 = vld [vmem:[#allocation2 + $0xe8] sm:$0xf0] }
 0x13c   :  { %v7760_v35 = vld [vmem:[#allocation2 + $0xa88] sm:$0xf]  ;;  %v7505_v47 = vor.u32 %v9883_v34, %v7504_v33  ;;  %3539 = vmatpush.bf16.msrb.mxu3 %v8305_v36  ;;  %v6645_v34 = vor.u32 %v9663_v16, %v6642_v17  ;;  %v6901_v36 = vor.u32 %v9727_v18, %v6898_v24  ;;  %v9631_v18 = vld [vmem:[#allocation2 + $0xcc] sm:$0xf] }
 0x13d   :  { %v9947_v37 = vld [vmem:[#allocation2 + $0xaa4] sm:$0xf0]  ;;  %v6770_v27 = vld [vmem:[#allocation2 + $0x2e8] sm:$0xf0] }
 0x13e   :  { %v8016_v39 = vld [vmem:[#allocation2 + $0xc88] sm:$0xf]  ;;  %v7761_v50 = vor.u32 %v9947_v37, %v7760_v35  ;;  %3501 = vmatpush.bf16.msrb.mxu0 %v7505_v47  ;;  %v3286_v35 = vpop.f32.mrf.mxu3  ;;  %v7157_v37 = vor.u32 %v9791_v25, %v7154_v26  ;;  %v9783_v47 = vld [vmem:[#allocation2 + $0x58c] sm:$0xf] }
 0x13f   :  { %v10011_v40 = vld [vmem:[#allocation2 + $0xca4] sm:$0xf0] }
 0x140   :  { %v8272_v43 = vld [vmem:[#allocation2 + $0xe88] sm:$0xf]  ;;  %v8017_v51 = vor.u32 %v10011_v40, %v8016_v39  ;;  %3514 = vmatpush.bf16.msrb.mxu1 %v7761_v50  ;;  %v9655_v39 = vld [vmem:[#allocation2 + $0x18c] sm:$0xf] }
 0x141   :  { %v10075_v45 = vld [vmem:[#allocation2 + $0xea4] sm:$0xf0]  ;;  %v6610_v40 = vld [vmem:[#allocation2 + $0x1a8] sm:$0xf0] }
 0x142   :  { %v7472_v52 = vld [vmem:[#allocation2 + $0x848] sm:$0xf]  ;;  %v8273_v56 = vor.u32 %v10075_v45, %v8272_v43  ;;  %3527 = vmatpush.bf16.msrb.mxu2 %v8017_v51  ;;  %v9719_v43 = vld [vmem:[#allocation2 + $0x38c] sm:$0xf]  ;;  %v7413_v45 = vor.u32 %v9855_v30, %v7410_v31  ;;  %v6613_v51 = vor.u32 %v9655_v39, %v6610_v40  ;;  %v3310_v25 = vpop.f32.mrf.mxu1  ;;  %v3323_v40 = vpop.f32.mrf.mxu2 }
 0x143   :  { %v9875_v53 = vld [vmem:[#allocation2 + $0x864] sm:$0xf0]  ;;  %v7378_v50 = vld [vmem:[#allocation2 + $0x7a8] sm:$0xf0] }
 0x144   :  { %v7728_v54 = vld [vmem:[#allocation2 + $0xa48] sm:$0xf]  ;;  %v7473_v0 = vor.u32 %v9875_v53, %v7472_v52  ;;  %3540 = vmatpush.bf16.msrb.mxu3 %v8273_v56  ;;  %v6869_v52 = vor.u32 %v9719_v43, %v6866_v46  ;;  %v7125_v53 = vor.u32 %v9783_v47, %v7122_v48  ;;  %v9711_v56 = vld [vmem:[#allocation2 + $0x34c] sm:$0xf] }
 0x145   :  { %v9939_v57 = vld [vmem:[#allocation2 + $0xa64] sm:$0xf0]  ;;  %v9823_v30 = vld [vmem:[#allocation2 + $0x6cc] sm:$0xf] }
 0x146   :  { %v7984_v58 = vld [vmem:[#allocation2 + $0xc48] sm:$0xf]  ;;  %v7729_v5 = vor.u32 %v9939_v57, %v7728_v54  ;;  %3502 = vmatpush.bf16.msrb.mxu0 %v7473_v0  ;;  %v9647_v54 = vld [vmem:[#allocation2 + $0x14c] sm:$0xf]  ;;  %v7381_v57 = vor.u32 %v9847_v49, %v7378_v50  ;;  %v3336_v48 = vpop.f32.mrf.mxu3 }
 0x147   :  { %v10003_v59 = vld [vmem:[#allocation2 + $0xc64] sm:$0xf0]  ;;  %v7282_v31 = vld [vmem:[#allocation2 + $0x6e8] sm:$0xf0] }
 0x148   :  { %v8240_v62 = vld [vmem:[#allocation2 + $0xe48] sm:$0xf]  ;;  %v7985_v7 = vor.u32 %v10003_v59, %v7984_v58  ;;  %3515 = vmatpush.bf16.msrb.mxu1 %v7729_v5  ;;  %v6834_v58 = vld [vmem:[#allocation2 + $0x368] sm:$0xf0] }
 0x149   :  { %v10067_v63 = vld [vmem:[#allocation2 + $0xe64] sm:$0xf0]  ;;  %v9775_v59 = vld [vmem:[#allocation2 + $0x54c] sm:$0xf]  ;;  %v6837_v0 = vor.u32 %v9711_v56, %v6834_v58 }
 0x14a   :  { %v7440_v1 = vld [vmem:[#allocation2 + $0x808] sm:$0xf]  ;;  %v8241_v11 = vor.u32 %v10067_v63, %v8240_v62  ;;  %3528 = vmatpush.bf16.msrb.mxu2 %v7985_v7  ;;  %v7346_v62 = vld [vmem:[#allocation2 + $0x768] sm:$0xf0]  ;;  %v6581_v63 = vor.u32 %v9647_v54, %v6578_v55 }
 0x14b   :  { %v9867_v2 = vld [vmem:[#allocation2 + $0x824] sm:$0xf0]  ;;  %v9703_v5 = vld [vmem:[#allocation2 + $0x30c] sm:$0xf]  ;;  %v7349_v7 = vor.u32 %v9839_v61, %v7346_v62 }
 0x14c   :  { %v7696_v8 = vld [vmem:[#allocation2 + $0xa08] sm:$0xf]  ;;  %v7441_v23 = vor.u32 %v9867_v2, %v7440_v1  ;;  %3541 = vmatpush.bf16.msrb.mxu3 %v8241_v11  ;;  %v7093_v1 = vor.u32 %v9775_v59, %v7090_v60  ;;  %v9639_v2 = vld [vmem:[#allocation2 + $0x10c] sm:$0xf]  ;;  %v3312_v59 = vpop.f32.mrf.mxu1 }
 0x14d   :  { %v9931_v9 = vld [vmem:[#allocation2 + $0xa24] sm:$0xf0]  ;;  %v9831_v11 = vld [vmem:[#allocation2 + $0x70c] sm:$0xf] }
 0x14e   :  { %v7952_v10 = vld [vmem:[#allocation2 + $0xc08] sm:$0xf]  ;;  %v7697_v28 = vor.u32 %v9931_v9, %v7696_v8  ;;  %3503 = vmatpush.bf16.msrb.mxu0 %v7441_v23  ;;  %v6802_v8 = vld [vmem:[#allocation2 + $0x328] sm:$0xf0] }
 0x14f   :  { %v9995_v12 = vld [vmem:[#allocation2 + $0xc24] sm:$0xf0]  ;;  %v9767_v9 = vld [vmem:[#allocation2 + $0x50c] sm:$0xf]  ;;  %v6805_v16 = vor.u32 %v9703_v5, %v6802_v8 }
 0x150   :  { %v8208_v13 = vld [vmem:[#allocation2 + $0xe08] sm:$0xf]  ;;  %v7953_v29 = vor.u32 %v9995_v12, %v7952_v10  ;;  %3516 = vmatpush.bf16.msrb.mxu1 %v7697_v28  ;;  %v7058_v10 = vld [vmem:[#allocation2 + $0x528] sm:$0xf0] }
 0x151   :  { %v10059_v14 = vld [vmem:[#allocation2 + $0xe24] sm:$0xf0]  ;;  %3504 = vmatmul.bf16.vlgmr.msrb.gmra.mxu0 %v10675_v41  ;;  %v7314_v12 = vld [vmem:[#allocation2 + $0x728] sm:$0xf0]  ;;  %v7061_v17 = vor.u32 %v9767_v9, %v7058_v10 }
 0x152   :  { %v8209_v33 = vor.u32 %v10059_v14, %v8208_v13  ;;  %3529 = vmatpush.bf16.msrb.mxu2 %v7953_v29  ;;  %3548 = vmatpush.bf16.msra.mxu0 %v6645_v34  ;;  %v6549_v13 = vor.u32 %v9639_v2, %v6546_v3  ;;  %v3297_v14 = vpop.f32.mrf.mxu0  ;;  %v9695_v23 = vld [vmem:[#allocation2 + $0x2cc] sm:$0xf]  ;;  %v7317_v26 = vor.u32 %v9831_v11, %v7314_v12  ;;  %v3325_v12 = vpop.f32.mrf.mxu2 }
 0x153   :  { %3517 = vmatmul.bf16.vlgmr.msrb.gmra.mxu1 %v10679_v44  ;;  %v3298_v24 = vadd.f32 %v3297_v14, %v10700_v15  ;;  %v9759_v28 = vld [vmem:[#allocation2 + $0x4cc] sm:$0xf]  ;;  %v6773_v34 = vor.u32 %v9695_v23, %v6770_v27  ;;  %v7285_v15 = vor.u32 %v9823_v30, %v7282_v31 }
 0x154   :  { %3542 = vmatpush.bf16.msrb.mxu3 %v8209_v33  ;;  %3561 = vmatpush.bf16.msra.mxu1 %v6901_v36  ;;  %v7026_v29 = vld [vmem:[#allocation2 + $0x4e8] sm:$0xf0]  ;;  %v6517_v33 = vor.u32 %v9631_v18, %v6514_v19  ;;  %v3338_v18 = vpop.f32.mrf.mxu3 }
 0x155   :  { %3530 = vmatmul.bf16.vlgmr.msrb.gmra.mxu2 %v10673_v38  ;;  %v3311_v32 = vadd.f32 %v3310_v25, %v3298_v24  ;;  %v7029_v35 = vor.u32 %v9759_v28, %v7026_v29  ;;  %v9623_v36 = vld [vmem:[#allocation2 + $0x8c] sm:$0xf] }
 0x156   :  { %3574 = vmatpush.bf16.msra.mxu2 %v7157_v37  ;;  %3549 = vmatpush.bf16.msra.mxu0 %v6613_v51  ;;  %v6482_v37 = vld [vmem:[#allocation2 + $0xa8] sm:$0xf0] }
 0x157   :  { %3543 = vmatmul.bf16.vlgmr.msrb.gmra.mxu3 %v10677_v42  ;;  %v9687_v39 = vld [vmem:[#allocation2 + $0x28c] sm:$0xf]  ;;  %v3324_v47 = vadd.f32 %v3323_v40, %v3311_v32  ;;  %v6485_v51 = vor.u32 %v9623_v36, %v6482_v37 }
 0x158   :  { %3587 = vmatpush.bf16.msra.mxu3 %v7413_v45  ;;  %3562 = vmatpush.bf16.msra.mxu1 %v6869_v52  ;;  %v6738_v43 = vld [vmem:[#allocation2 + $0x2a8] sm:$0xf0] }
 0x159   :  { %v9751_v45 = vld [vmem:[#allocation2 + $0x48c] sm:$0xf]  ;;  %v10707_v52 = vadd.f32 %v3336_v48, %v3324_v47  ;;  %v6741_v54 = vor.u32 %v9687_v39, %v6738_v43 }
 0x15a   :  { %3575 = vmatpush.bf16.msra.mxu2 %v7125_v53  ;;  %3550 = vmatpush.bf16.msra.mxu0 %v6581_v63  ;;  %v6994_v46 = vld [vmem:[#allocation2 + $0x4a8] sm:$0xf0]  ;;  %v3299_v53 = vpop.f32.mrf.mxu0 }
 0x15b   :  { %v9815_v49 = vld [vmem:[#allocation2 + $0x68c] sm:$0xf]  ;;  %v6997_v55 = vor.u32 %v9751_v45, %v6994_v46  ;;  %vm4068_vm0 = vcmp.gt.f32.partialorder %v10707_v52, 0.0 }
 0x15c   :  { %3588 = vmatpush.bf16.msra.mxu3 %v7381_v57  ;;  %3563 = vmatpush.bf16.msra.mxu1 %v6837_v0  ;;  %v7250_v50 = vld [vmem:[#allocation2 + $0x6a8] sm:$0xf0] }
 0x15d   :  { %v9615_v56 = vld [vmem:[#allocation2 + $0x4c] sm:$0xf]  ;;  %v7253_v60 = vor.u32 %v9815_v49, %v7250_v50 }
 0x15e   :  { %3576 = vmatpush.bf16.msra.mxu2 %v7093_v1  ;;  %3551 = vmatpush.bf16.msra.mxu0 %v6549_v13  ;;  %v6450_v57 = vld [vmem:[#allocation2 + $0x68] sm:$0xf0] }
 0x15f   :  { %v9679_v58 = vld [vmem:[#allocation2 + $0x24c] sm:$0xf]  ;;  %v6453_v2 = vor.u32 %v9615_v56, %v6450_v57 }
 0x160   :  { %3589 = vmatpush.bf16.msra.mxu3 %v7349_v7  ;;  %3564 = vmatpush.bf16.msra.mxu1 %v6805_v16  ;;  %v6706_v61 = vld [vmem:[#allocation2 + $0x268] sm:$0xf0] }
 0x161   :  { %v9743_v62 = vld [vmem:[#allocation2 + $0x44c] sm:$0xf]  ;;  %v6709_v7 = vor.u32 %v9679_v58, %v6706_v61 }
 0x162   :  { %3577 = vmatpush.bf16.msra.mxu2 %v7061_v17  ;;  %3552 = vmatpush.bf16.msra.mxu0 %v6517_v33  ;;  %v6962_v63 = vld [vmem:[#allocation2 + $0x468] sm:$0xf0] }
 0x163   :  { %v9807_v0 = vld [vmem:[#allocation2 + $0x64c] sm:$0xf]  ;;  %v6965_v8 = vor.u32 %v9743_v62, %v6962_v63 }
 0x164   :  { %3590 = vmatpush.bf16.msra.mxu3 %v7317_v26  ;;  %3565 = vmatpush.bf16.msra.mxu1 %v6773_v34  ;;  %v7218_v1 = vld [vmem:[#allocation2 + $0x668] sm:$0xf0] }
 0x165   :  { %v9607_v3 = vld [vmem:[#allocation2 + $0xc] sm:$0xf]  ;;  %v7221_v13 = vor.u32 %v9807_v0, %v7218_v1 }
 0x166   :  { %3578 = vmatpush.bf16.msra.mxu2 %v7029_v35  ;;  %3553 = vmatpush.bf16.msra.mxu0 %v6485_v51  ;;  %v6418_v5 = vld [vmem:[#allocation2 + $0x28] sm:$0xf0] }
 0x167   :  { %v9671_v9 = vld [vmem:[#allocation2 + $0x20c] sm:$0xf]  ;;  %v6421_v25 = vor.u32 %v9607_v3, %v6418_v5  ;;  %v633_v5 = vperm.slane %v10697_v22, 1 }
 0x168   :  { %3591 = vmatpush.bf16.msra.mxu3 %v7285_v15  ;;  %3566 = vmatpush.bf16.msra.mxu1 %v6741_v54  ;;  %v6674_v10 = vld [vmem:[#allocation2 + $0x228] sm:$0xf0] }
 0x169   :  { %v9735_v11 = vld [vmem:[#allocation2 + $0x40c] sm:$0xf]  ;;  %v6677_v29 = vor.u32 %v9671_v9, %v6674_v10 }
 0x16a   :  { %3579 = vmatpush.bf16.msra.mxu2 %v6997_v55  ;;  %v6930_v14 = vld [vmem:[#allocation2 + $0x428] sm:$0xf0]  ;;  %3554 = vmatpush.bf16.msra.mxu0 %v6453_v2 }
 0x16b   :  { %v9799_v16 = vld [vmem:[#allocation2 + $0x60c] sm:$0xf]  ;;  %v6933_v30 = vor.u32 %v9735_v11, %v6930_v14  ;;  %v3349_v14 = vpop.f32.mrf.mxu0 }
 0x16c   :  { %3592 = vmatpush.bf16.msra.mxu3 %v7253_v60  ;;  %v7186_v17 = vld [vmem:[#allocation2 + $0x628] sm:$0xf0]  ;;  %3567 = vmatpush.bf16.msra.mxu1 %v6709_v7 }
 0x16d   :  { %v9919_v19 = vld [vmem:[#allocation2 + $0x9cc] sm:$0xf]  ;;  %v7189_v33 = vor.u32 %v9799_v16, %v7186_v17 }
 0x16e   :  { %v7666_v23 = vld [vmem:[#allocation2 + $0x9e8] sm:$0xf0]  ;;  %3580 = vmatpush.bf16.msra.mxu2 %v6965_v8  ;;  %3555 = vmatpush.bf16.msra.mxu0 %v6421_v25  ;;  %v3362_v25 = vpop.f32.mrf.mxu1 }
 0x16f   :  { %v9983_v24 = vld [vmem:[#allocation2 + $0xbcc] sm:$0xf]  ;;  %v7669_v34 = vor.u32 %v9919_v19, %v7666_v23 }
 0x170   :  { %v7922_v26 = vld [vmem:[#allocation2 + $0xbe8] sm:$0xf0]  ;;  %3593 = vmatpush.bf16.msra.mxu3 %v7221_v13  ;;  %3568 = vmatpush.bf16.msra.mxu1 %v6677_v29 }
 0x171   :  { %v10047_v27 = vld [vmem:[#allocation2 + $0xdcc] sm:$0xf]  ;;  %v7925_v35 = vor.u32 %v9983_v24, %v7922_v26  ;;  %3556 = vmatmul.bf16.vlgmr.msra.gmra.mxu0 %v10660_v20  ;;  %v3350_v24 = vadd.f32 %v3349_v14, %v633_v5 }
 0x172   :  { %v8178_v28 = vld [vmem:[#allocation2 + $0xde8] sm:$0xf0]  ;;  %3581 = vmatpush.bf16.msra.mxu2 %v6933_v30  ;;  %3600 = vmatpush.bf16.msrb.mxu0 %v7669_v34 }
 0x173   :  { %v10111_v31 = vld [vmem:[#allocation2 + $0xfcc] sm:$0xf]  ;;  %v8181_v36 = vor.u32 %v10047_v27, %v8178_v28  ;;  %3569 = vmatmul.bf16.vlgmr.msra.gmra.mxu1 %v10663_v21 }
 0x174   :  { %v8434_v32 = vld [vmem:[#allocation2 + $0xfe8] sm:$0xf0]  ;;  %3594 = vmatpush.bf16.msra.mxu3 %v7189_v33  ;;  %3613 = vmatpush.bf16.msrb.mxu1 %v7925_v35 }
 0x175   :  { %v9911_v37 = vld [vmem:[#allocation2 + $0x98c] sm:$0xf]  ;;  %v8437_v15 = vor.u32 %v10111_v31, %v8434_v32  ;;  %3582 = vmatmul.bf16.vlgmr.msra.gmra.mxu2 %v10652_v4  ;;  %v3363_v31 = vadd.f32 %v3362_v25, %v3350_v24  ;;  %v6904_v24 = vld [vmem:[#allocation2 + $0x3d0] sm:$0xf] }
 0x176   :  { %v7634_v39 = vld [vmem:[#allocation2 + $0x9a8] sm:$0xf0]  ;;  %3626 = vmatpush.bf16.msrb.mxu2 %v8181_v36 }
 0x177   :  { %v9975_v40 = vld [vmem:[#allocation2 + $0xb8c] sm:$0xf]  ;;  %v7637_v49 = vor.u32 %v9911_v37, %v7634_v39  ;;  %3595 = vmatmul.bf16.vlgmr.msra.gmra.mxu3 %v10657_v6  ;;  %v3375_v39 = vpop.f32.mrf.mxu2 }
 0x178   :  { %v7890_v43 = vld [vmem:[#allocation2 + $0xba8] sm:$0xf0]  ;;  %3639 = vmatpush.bf16.msrb.mxu3 %v8437_v15 }
 0x179   :  { %v10039_v45 = vld [vmem:[#allocation2 + $0xd8c] sm:$0xf]  ;;  %v7893_v50 = vor.u32 %v9975_v40, %v7890_v43  ;;  %3601 = vmatpush.bf16.msrb.mxu0 %v7637_v49 }
 0x17a   :  { %v8146_v46 = vld [vmem:[#allocation2 + $0xda8] sm:$0xf0] }
 0x17b   :  { %v10103_v47 = vld [vmem:[#allocation2 + $0xf8c] sm:$0xf]  ;;  %v8149_v51 = vor.u32 %v10039_v45, %v8146_v46  ;;  %3614 = vmatpush.bf16.msrb.mxu1 %v7893_v50  ;;  %v3376_v46 = vadd.f32 %v3375_v39, %v3363_v31  ;;  %v9860_v31 = vld [vmem:[#allocation2 + $0x7ec] sm:$0xf0] }
 0x17c   :  { %v8402_v48 = vld [vmem:[#allocation2 + $0xfa8] sm:$0xf0]  ;;  %v6872_v39 = vld [vmem:[#allocation2 + $0x390] sm:$0xf] }
 0x17d   :  { %v9903_v53 = vld [vmem:[#allocation2 + $0x94c] sm:$0xf]  ;;  %v8405_v56 = vor.u32 %v10103_v47, %v8402_v48  ;;  %3627 = vmatpush.bf16.msrb.mxu2 %v8149_v51  ;;  %v3388_v47 = vpop.f32.mrf.mxu3 }
 0x17e   :  { %v7602_v54 = vld [vmem:[#allocation2 + $0x968] sm:$0xf0]  ;;  %v10714_v51 = vadd.f32 %v3388_v47, %v3376_v46  ;;  %v7384_v46 = vld [vmem:[#allocation2 + $0x790] sm:$0xf] }
 0x17f   :  { %v9967_v55 = vld [vmem:[#allocation2 + $0xb4c] sm:$0xf]  ;;  %v7605_v62 = vor.u32 %v9903_v53, %v7602_v54  ;;  %3640 = vmatpush.bf16.msrb.mxu3 %v8405_v56  ;;  %v3351_v53 = vpop.f32.mrf.mxu0  ;;  %v9852_v47 = vld [vmem:[#allocation2 + $0x7ac] sm:$0xf0] }
 0x180   :  { %v7858_v57 = vld [vmem:[#allocation2 + $0xb68] sm:$0xf0]  ;;  %v6584_v53 = vld [vmem:[#allocation2 + $0x150] sm:$0xf] }
 0x181   :  { %v10031_v58 = vld [vmem:[#allocation2 + $0xd4c] sm:$0xf]  ;;  %v7861_v0 = vor.u32 %v9967_v55, %v7858_v57  ;;  %3602 = vmatpush.bf16.msrb.mxu0 %v7605_v62 }
 0x182   :  { %v8114_v59 = vld [vmem:[#allocation2 + $0xd68] sm:$0xf0] }
 0x183   :  { %v10095_v60 = vld [vmem:[#allocation2 + $0xf4c] sm:$0xf]  ;;  %v8117_v1 = vor.u32 %v10031_v58, %v8114_v59  ;;  %3615 = vmatpush.bf16.msrb.mxu1 %v7861_v0  ;;  %v3364_v59 = vpop.f32.mrf.mxu1 }
 0x184   :  { %v8370_v61 = vld [vmem:[#allocation2 + $0xf68] sm:$0xf0]  ;;  %v9780_v59 = vld [vmem:[#allocation2 + $0x56c] sm:$0xf0] }
 0x185   :  { %v9895_v63 = vld [vmem:[#allocation2 + $0x90c] sm:$0xf]  ;;  %v8373_v7 = vor.u32 %v10095_v60, %v8370_v61  ;;  %3628 = vmatpush.bf16.msrb.mxu2 %v8117_v1 }
 0x186   :  { %v7570_v2 = vld [vmem:[#allocation2 + $0x928] sm:$0xf0] }
 0x187   :  { %v9959_v3 = vld [vmem:[#allocation2 + $0xb0c] sm:$0xf]  ;;  %v7573_v13 = vor.u32 %v9895_v63, %v7570_v2  ;;  %3641 = vmatpush.bf16.msrb.mxu3 %v8373_v7 }
 0x188   :  { %v7826_v8 = vld [vmem:[#allocation2 + $0xb28] sm:$0xf0] }
 0x189   :  { %v10023_v9 = vld [vmem:[#allocation2 + $0xd0c] sm:$0xf]  ;;  %v7829_v16 = vor.u32 %v9959_v3, %v7826_v8  ;;  %3603 = vmatpush.bf16.msrb.mxu0 %v7573_v13 }
 0x18a   :  { %v8082_v10 = vld [vmem:[#allocation2 + $0xd28] sm:$0xf0] }
 0x18b   :  { %v10087_v11 = vld [vmem:[#allocation2 + $0xf0c] sm:$0xf]  ;;  %v8085_v17 = vor.u32 %v10023_v9, %v8082_v10  ;;  %3616 = vmatpush.bf16.msrb.mxu1 %v7829_v16 }
 0x18c   :  { %v8338_v12 = vld [vmem:[#allocation2 + $0xf28] sm:$0xf0] }
 0x18d   :  { %v9887_v18 = vld [vmem:[#allocation2 + $0x8cc] sm:$0xf]  ;;  %v8341_v22 = vor.u32 %v10087_v11, %v8338_v12  ;;  %3629 = vmatpush.bf16.msrb.mxu2 %v8085_v17  ;;  %v3377_v12 = vpop.f32.mrf.mxu2 }
 0x18e   :  { %v7538_v19 = vld [vmem:[#allocation2 + $0x8e8] sm:$0xf0] }
 0x18f   :  { %v9951_v23 = vld [vmem:[#allocation2 + $0xacc] sm:$0xf]  ;;  %v7541_v32 = vor.u32 %v9887_v18, %v7538_v19  ;;  %3642 = vmatpush.bf16.msrb.mxu3 %v8341_v22  ;;  %v3390_v18 = vpop.f32.mrf.mxu3  ;;  %v6648_v19 = vld [vmem:[#allocation2 + $0x1d0] sm:$0xf] }
 0x190   :  { %v7794_v26 = vld [vmem:[#allocation2 + $0xae8] sm:$0xf0]  ;;  %v9732_v22 = vld [vmem:[#allocation2 + $0x3ec] sm:$0xf0] }
 0x191   :  { %v10015_v27 = vld [vmem:[#allocation2 + $0xccc] sm:$0xf]  ;;  %v7797_v33 = vor.u32 %v9951_v23, %v7794_v26  ;;  %3604 = vmatpush.bf16.msrb.mxu0 %v7541_v32  ;;  %v9668_v23 = vld [vmem:[#allocation2 + $0x1ec] sm:$0xf0] }
 0x192   :  { %v8050_v28 = vld [vmem:[#allocation2 + $0xce8] sm:$0xf0]  ;;  %v7160_v26 = vld [vmem:[#allocation2 + $0x5d0] sm:$0xf] }
 0x193   :  { %v10079_v29 = vld [vmem:[#allocation2 + $0xecc] sm:$0xf]  ;;  %v8053_v34 = vor.u32 %v10015_v27, %v8050_v28  ;;  %3617 = vmatpush.bf16.msrb.mxu1 %v7797_v33  ;;  %v9796_v27 = vld [vmem:[#allocation2 + $0x5ec] sm:$0xf0]  ;;  %v6649_v33 = vor.u32 %v9668_v23, %v6648_v19 }
 0x194   :  { %v8306_v30 = vld [vmem:[#allocation2 + $0xee8] sm:$0xf0]  ;;  %v9636_v18 = vld [vmem:[#allocation2 + $0xec] sm:$0xf0] }
 0x195   :  { %v9879_v35 = vld [vmem:[#allocation2 + $0x88c] sm:$0xf]  ;;  %v8309_v40 = vor.u32 %v10079_v29, %v8306_v30  ;;  %3630 = vmatpush.bf16.msrb.mxu2 %v8053_v34  ;;  %v7416_v30 = vld [vmem:[#allocation2 + $0x7d0] sm:$0xf]  ;;  %v6905_v34 = vor.u32 %v9732_v22, %v6904_v24  ;;  %v3414_v24 = vpop.f32.mrf.mxu1 }
 0x196   :  { %v7506_v36 = vld [vmem:[#allocation2 + $0x8a8] sm:$0xf0]  ;;  %v6776_v19 = vld [vmem:[#allocation2 + $0x2d0] sm:$0xf] }
 0x197   :  { %v9943_v37 = vld [vmem:[#allocation2 + $0xa8c] sm:$0xf]  ;;  %v7509_v50 = vor.u32 %v9879_v35, %v7506_v36  ;;  %3643 = vmatpush.bf16.msrb.mxu3 %v8309_v40  ;;  %v7161_v35 = vor.u32 %v9796_v27, %v7160_v26  ;;  %v6616_v36 = vld [vmem:[#allocation2 + $0x190] sm:$0xf]  ;;  %v7417_v40 = vor.u32 %v9860_v31, %v7416_v30 }
 0x198   :  { %v7762_v15 = vld [vmem:[#allocation2 + $0xaa8] sm:$0xf0]  ;;  %v9700_v22 = vld [vmem:[#allocation2 + $0x2ec] sm:$0xf0] }
 0x199   :  { %v10007_v43 = vld [vmem:[#allocation2 + $0xc8c] sm:$0xf]  ;;  %v7765_v54 = vor.u32 %v9943_v37, %v7762_v15  ;;  %3605 = vmatpush.bf16.msrb.mxu0 %v7509_v50  ;;  %v9660_v37 = vld [vmem:[#allocation2 + $0x1ac] sm:$0xf0] }
 0x19a   :  { %v8018_v45 = vld [vmem:[#allocation2 + $0xca8] sm:$0xf0]  ;;  %v9724_v15 = vld [vmem:[#allocation2 + $0x3ac] sm:$0xf0] }
 0x19b   :  { %v10071_v48 = vld [vmem:[#allocation2 + $0xe8c] sm:$0xf]  ;;  %v8021_v55 = vor.u32 %v10007_v43, %v8018_v45  ;;  %3618 = vmatpush.bf16.msrb.mxu1 %v7765_v54  ;;  %v7128_v43 = vld [vmem:[#allocation2 + $0x590] sm:$0xf] }
 0x19c   :  { %v8274_v49 = vld [vmem:[#allocation2 + $0xea8] sm:$0xf0]  ;;  %v9788_v45 = vld [vmem:[#allocation2 + $0x5ac] sm:$0xf0] }
 0x19d   :  { %v9871_v56 = vld [vmem:[#allocation2 + $0x84c] sm:$0xf]  ;;  %v8277_v60 = vor.u32 %v10071_v48, %v8274_v49  ;;  %3631 = vmatpush.bf16.msrb.mxu2 %v8021_v55  ;;  %v6617_v48 = vor.u32 %v9660_v37, %v6616_v36  ;;  %v6873_v49 = vor.u32 %v9724_v15, %v6872_v39  ;;  %v7129_v50 = vor.u32 %v9788_v45, %v7128_v43  ;;  %v9652_v54 = vld [vmem:[#allocation2 + $0x16c] sm:$0xf0]  ;;  %v3427_v37 = vpop.f32.mrf.mxu2  ;;  %v3440_v45 = vpop.f32.mrf.mxu3 }
 0x19e   :  { %v7474_v57 = vld [vmem:[#allocation2 + $0x868] sm:$0xf0]  ;;  %v6840_v55 = vld [vmem:[#allocation2 + $0x350] sm:$0xf] }
 0x19f   :  { %v9935_v58 = vld [vmem:[#allocation2 + $0xa4c] sm:$0xf]  ;;  %v7477_v2 = vor.u32 %v9871_v56, %v7474_v57  ;;  %3644 = vmatpush.bf16.msrb.mxu3 %v8277_v60  ;;  %v7385_v56 = vor.u32 %v9852_v47, %v7384_v46  ;;  %v9716_v57 = vld [vmem:[#allocation2 + $0x36c] sm:$0xf0] }
 0x1a0   :  { %v7730_v61 = vld [vmem:[#allocation2 + $0xa68] sm:$0xf0]  ;;  %v7352_v60 = vld [vmem:[#allocation2 + $0x750] sm:$0xf] }
 0x1a1   :  { %v9999_v62 = vld [vmem:[#allocation2 + $0xc4c] sm:$0xf]  ;;  %v7733_v7 = vor.u32 %v9935_v58, %v7730_v61  ;;  %3606 = vmatpush.bf16.msrb.mxu0 %v7477_v2  ;;  %v7096_v58 = vld [vmem:[#allocation2 + $0x550] sm:$0xf] }
 0x1a2   :  { %v7986_v63 = vld [vmem:[#allocation2 + $0xc68] sm:$0xf0]  ;;  %v9844_v61 = vld [vmem:[#allocation2 + $0x76c] sm:$0xf0] }
 0x1a3   :  { %v10063_v0 = vld [vmem:[#allocation2 + $0xe4c] sm:$0xf]  ;;  %v7989_v8 = vor.u32 %v9999_v62, %v7986_v63  ;;  %3619 = vmatpush.bf16.msrb.mxu1 %v7733_v7  ;;  %v6585_v62 = vor.u32 %v9652_v54, %v6584_v53  ;;  %v6841_v63 = vor.u32 %v9716_v57, %v6840_v55  ;;  %v9644_v2 = vld [vmem:[#allocation2 + $0x12c] sm:$0xf0] }
 0x1a4   :  { %v8242_v1 = vld [vmem:[#allocation2 + $0xe68] sm:$0xf0]  ;;  %v9708_v7 = vld [vmem:[#allocation2 + $0x32c] sm:$0xf0] }
 0x1a5   :  { %v9863_v3 = vld [vmem:[#allocation2 + $0x80c] sm:$0xf]  ;;  %v8245_v13 = vor.u32 %v10063_v0, %v8242_v1  ;;  %3632 = vmatpush.bf16.msrb.mxu2 %v7989_v8  ;;  %v7097_v0 = vor.u32 %v9780_v59, %v7096_v58  ;;  %v6552_v1 = vld [vmem:[#allocation2 + $0x110] sm:$0xf]  ;;  %v3416_v58 = vpop.f32.mrf.mxu1 }
 0x1a6   :  { %v7442_v5 = vld [vmem:[#allocation2 + $0x828] sm:$0xf0]  ;;  %v7064_v8 = vld [vmem:[#allocation2 + $0x510] sm:$0xf]  ;;  %v6553_v12 = vor.u32 %v9644_v2, %v6552_v1 }
 0x1a7   :  { %v9927_v9 = vld [vmem:[#allocation2 + $0xa0c] sm:$0xf]  ;;  %v7445_v25 = vor.u32 %v9863_v3, %v7442_v5  ;;  %3645 = vmatpush.bf16.msrb.mxu3 %v8245_v13  ;;  %v6808_v3 = vld [vmem:[#allocation2 + $0x310] sm:$0xf]  ;;  %v7353_v5 = vor.u32 %v9844_v61, %v7352_v60  ;;  %v3401_v13 = vpop.f32.mrf.mxu0 }
 0x1a8   :  { %v7698_v10 = vld [vmem:[#allocation2 + $0xa28] sm:$0xf0]  ;;  %v3402_v23 = vadd.f32 %v3401_v13, %v10714_v51  ;;  %v7032_v26 = vld [vmem:[#allocation2 + $0x4d0] sm:$0xf] }
 0x1a9   :  { %v9991_v11 = vld [vmem:[#allocation2 + $0xc0c] sm:$0xf]  ;;  %v7701_v28 = vor.u32 %v9927_v9, %v7698_v10  ;;  %3607 = vmatpush.bf16.msrb.mxu0 %v7445_v25  ;;  %v9772_v9 = vld [vmem:[#allocation2 + $0x52c] sm:$0xf0] }
 0x1aa   :  { %v7954_v14 = vld [vmem:[#allocation2 + $0xc28] sm:$0xf0]  ;;  %v7320_v10 = vld [vmem:[#allocation2 + $0x710] sm:$0xf]  ;;  %v3415_v30 = vadd.f32 %v3414_v24, %v3402_v23 }
 0x1ab   :  { %v10055_v16 = vld [vmem:[#allocation2 + $0xe0c] sm:$0xf]  ;;  %v7957_v29 = vor.u32 %v9991_v11, %v7954_v14  ;;  %3620 = vmatpush.bf16.msrb.mxu1 %v7701_v28  ;;  %v9836_v11 = vld [vmem:[#allocation2 + $0x72c] sm:$0xf0]  ;;  %v6809_v14 = vor.u32 %v9708_v7, %v6808_v3 }
 0x1ac   :  { %v8210_v17 = vld [vmem:[#allocation2 + $0xe28] sm:$0xf0]  ;;  %3608 = vmatmul.bf16.vlgmr.msrb.gmra.mxu0 %v10675_v41  ;;  %v7321_v25 = vor.u32 %v9836_v11, %v7320_v10  ;;  %v9764_v27 = vld [vmem:[#allocation2 + $0x4ec] sm:$0xf0]  ;;  %v3428_v43 = vadd.f32 %v3427_v37, %v3415_v30  ;;  %v3429_v11 = vpop.f32.mrf.mxu2 }
 0x1ad   :  { %v8213_v32 = vor.u32 %v10055_v16, %v8210_v17  ;;  %3633 = vmatpush.bf16.msrb.mxu2 %v7957_v29  ;;  %3652 = vmatpush.bf16.msra.mxu0 %v6649_v33  ;;  %v7065_v16 = vor.u32 %v9772_v9, %v7064_v8  ;;  %v6520_v17 = vld [vmem:[#allocation2 + $0xd0] sm:$0xf]  ;;  %v7033_v33 = vor.u32 %v9764_v27, %v7032_v26 }
 0x1ae   :  { %3621 = vmatmul.bf16.vlgmr.msrb.gmra.mxu1 %v10679_v44  ;;  %v7288_v28 = vld [vmem:[#allocation2 + $0x6d0] sm:$0xf]  ;;  %v6521_v31 = vor.u32 %v9636_v18, %v6520_v17  ;;  %v3442_v17 = vpop.f32.mrf.mxu3 }
 0x1af   :  { %3646 = vmatpush.bf16.msrb.mxu3 %v8213_v32  ;;  %3665 = vmatpush.bf16.msra.mxu1 %v6905_v34  ;;  %v9828_v29 = vld [vmem:[#allocation2 + $0x6ec] sm:$0xf0]  ;;  %v6777_v32 = vor.u32 %v9700_v22, %v6776_v19 }
 0x1b0   :  { %3634 = vmatmul.bf16.vlgmr.msrb.gmra.mxu2 %v10673_v38  ;;  %v6488_v34 = vld [vmem:[#allocation2 + $0x90] sm:$0xf]  ;;  %v7289_v51 = vor.u32 %v9828_v29, %v7288_v28 }
 0x1b1   :  { %3678 = vmatpush.bf16.msra.mxu2 %v7161_v35  ;;  %3653 = vmatpush.bf16.msra.mxu0 %v6617_v48  ;;  %v9628_v35 = vld [vmem:[#allocation2 + $0xac] sm:$0xf0] }
 0x1b2   :  { %3647 = vmatmul.bf16.vlgmr.msrb.gmra.mxu3 %v10677_v42  ;;  %v6744_v36 = vld [vmem:[#allocation2 + $0x290] sm:$0xf]  ;;  %v6489_v48 = vor.u32 %v9628_v35, %v6488_v34 }
 0x1b3   :  { %3691 = vmatpush.bf16.msra.mxu3 %v7417_v40  ;;  %3666 = vmatpush.bf16.msra.mxu1 %v6873_v49  ;;  %v9692_v39 = vld [vmem:[#allocation2 + $0x2ac] sm:$0xf0]  ;;  %v10721_v49 = vadd.f32 %v3440_v45, %v3428_v43 }
 0x1b4   :  { %v7000_v40 = vld [vmem:[#allocation2 + $0x490] sm:$0xf]  ;;  %v6745_v53 = vor.u32 %v9692_v39, %v6744_v36 }
 0x1b5   :  { %3679 = vmatpush.bf16.msra.mxu2 %v7129_v50  ;;  %3654 = vmatpush.bf16.msra.mxu0 %v6585_v62  ;;  %v9756_v15 = vld [vmem:[#allocation2 + $0x4ac] sm:$0xf0]  ;;  %v3403_v50 = vpop.f32.mrf.mxu0  ;;  %vm4069_vm1 = vcmp.gt.f32.partialorder %v10721_v49, 0.0 }
 0x1b6   :  { %v7256_v46 = vld [vmem:[#allocation2 + $0x690] sm:$0xf]  ;;  %v7001_v54 = vor.u32 %v9756_v15, %v7000_v40 }
 0x1b7   :  { %3692 = vmatpush.bf16.msra.mxu3 %v7385_v56  ;;  %3667 = vmatpush.bf16.msra.mxu1 %v6841_v63  ;;  %v9820_v47 = vld [vmem:[#allocation2 + $0x6ac] sm:$0xf0] }
 0x1b8   :  { %v6456_v55 = vld [vmem:[#allocation2 + $0x50] sm:$0xf]  ;;  %v7257_v59 = vor.u32 %v9820_v47, %v7256_v46 }
 0x1b9   :  { %3680 = vmatpush.bf16.msra.mxu2 %v7097_v0  ;;  %3655 = vmatpush.bf16.msra.mxu0 %v6553_v12  ;;  %v9620_v56 = vld [vmem:[#allocation2 + $0x6c] sm:$0xf0] }
 0x1ba   :  { %v6712_v57 = vld [vmem:[#allocation2 + $0x250] sm:$0xf]  ;;  %v6457_v1 = vor.u32 %v9620_v56, %v6456_v55 }
 0x1bb   :  { %3693 = vmatpush.bf16.msra.mxu3 %v7353_v5  ;;  %3668 = vmatpush.bf16.msra.mxu1 %v6809_v14  ;;  %v9684_v60 = vld [vmem:[#allocation2 + $0x26c] sm:$0xf0] }
 0x1bc   :  { %v6968_v61 = vld [vmem:[#allocation2 + $0x450] sm:$0xf]  ;;  %v6713_v5 = vor.u32 %v9684_v60, %v6712_v57 }
 0x1bd   :  { %3681 = vmatpush.bf16.msra.mxu2 %v7065_v16  ;;  %3656 = vmatpush.bf16.msra.mxu0 %v6521_v31  ;;  %v9748_v62 = vld [vmem:[#allocation2 + $0x46c] sm:$0xf0] }
 0x1be   :  { %v7224_v63 = vld [vmem:[#allocation2 + $0x650] sm:$0xf]  ;;  %v6969_v7 = vor.u32 %v9748_v62, %v6968_v61 }
 0x1bf   :  { %3694 = vmatpush.bf16.msra.mxu3 %v7321_v25  ;;  %3669 = vmatpush.bf16.msra.mxu1 %v6777_v32  ;;  %v9812_v0 = vld [vmem:[#allocation2 + $0x66c] sm:$0xf0] }
 0x1c0   :  { %v6424_v2 = vld [vmem:[#allocation2 + $0x10] sm:$0xf]  ;;  %v7225_v12 = vor.u32 %v9812_v0, %v7224_v63 }
 0x1c1   :  { %3682 = vmatpush.bf16.msra.mxu2 %v7033_v33  ;;  %3657 = vmatpush.bf16.msra.mxu0 %v6489_v48  ;;  %v9612_v3 = vld [vmem:[#allocation2 + $0x2c] sm:$0xf0] }
 0x1c2   :  { %v6680_v8 = vld [vmem:[#allocation2 + $0x210] sm:$0xf]  ;;  %v6425_v24 = vor.u32 %v9612_v3, %v6424_v2  ;;  %v10727_v3 = vld [vmem:[#allocation4] sm:$0xff] }
 0x1c3   :  { %3695 = vmatpush.bf16.msra.mxu3 %v7289_v51  ;;  %3670 = vmatpush.bf16.msra.mxu1 %v6745_v53  ;;  %v9676_v9 = vld [vmem:[#allocation2 + $0x22c] sm:$0xf0] }
 0x1c4   :  { %v6936_v10 = vld [vmem:[#allocation2 + $0x410] sm:$0xf]  ;;  %v6681_v27 = vor.u32 %v9676_v9, %v6680_v8 }
 0x1c5   :  { %3683 = vmatpush.bf16.msra.mxu2 %v7001_v54  ;;  %v9740_v13 = vld [vmem:[#allocation2 + $0x42c] sm:$0xf0]  ;;  %3658 = vmatpush.bf16.msra.mxu0 %v6457_v1 }
 0x1c6   :  { %v7192_v14 = vld [vmem:[#allocation2 + $0x610] sm:$0xf]  ;;  %v6937_v28 = vor.u32 %v9740_v13, %v6936_v10 }
 0x1c7   :  { %3696 = vmatpush.bf16.msra.mxu3 %v7257_v59  ;;  %v9804_v16 = vld [vmem:[#allocation2 + $0x62c] sm:$0xf0]  ;;  %3671 = vmatpush.bf16.msra.mxu1 %v6713_v5  ;;  %v634_v5 = vperm.slane %v10727_v3, 2 }
 0x1c8   :  { %v7672_v18 = vld [vmem:[#allocation2 + $0x9d0] sm:$0xf]  ;;  %v7193_v31 = vor.u32 %v9804_v16, %v7192_v14  ;;  %v3453_v14 = vpop.f32.mrf.mxu0 }
 0x1c9   :  { %v9924_v19 = vld [vmem:[#allocation2 + $0x9ec] sm:$0xf0]  ;;  %3684 = vmatpush.bf16.msra.mxu2 %v6969_v7  ;;  %3659 = vmatpush.bf16.msra.mxu0 %v6425_v24  ;;  %v3454_v24 = vadd.f32 %v3453_v14, %v634_v5 }
 0x1ca   :  { %v7928_v23 = vld [vmem:[#allocation2 + $0xbd0] sm:$0xf]  ;;  %v7673_v32 = vor.u32 %v9924_v19, %v7672_v18 }
 0x1cb   :  { %v9988_v25 = vld [vmem:[#allocation2 + $0xbec] sm:$0xf0]  ;;  %3697 = vmatpush.bf16.msra.mxu3 %v7225_v12  ;;  %3672 = vmatpush.bf16.msra.mxu1 %v6681_v27 }
 0x1cc   :  { %v8184_v22 = vld [vmem:[#allocation2 + $0xdd0] sm:$0xf]  ;;  %v7929_v33 = vor.u32 %v9988_v25, %v7928_v23  ;;  %3660 = vmatmul.bf16.vlgmr.msra.gmra.mxu0 %v10660_v20  ;;  %v3466_v25 = vpop.f32.mrf.mxu1 }
 0x1cd   :  { %v10052_v26 = vld [vmem:[#allocation2 + $0xdec] sm:$0xf0]  ;;  %3685 = vmatpush.bf16.msra.mxu2 %v6937_v28  ;;  %3704 = vmatpush.bf16.msrb.mxu0 %v7673_v32 }
 0x1ce   :  { %v8440_v29 = vld [vmem:[#allocation2 + $0xfd0] sm:$0xf]  ;;  %v8185_v34 = vor.u32 %v10052_v26, %v8184_v22  ;;  %3673 = vmatmul.bf16.vlgmr.msra.gmra.mxu1 %v10663_v21 }
 0x1cf   :  { %v10116_v30 = vld [vmem:[#allocation2 + $0xfec] sm:$0xf0]  ;;  %3698 = vmatpush.bf16.msra.mxu3 %v7193_v31  ;;  %3717 = vmatpush.bf16.msrb.mxu1 %v7929_v33  ;;  %v3467_v31 = vadd.f32 %v3466_v25, %v3454_v24  ;;  %v9664_v24 = vld [vmem:[#allocation2 + $0x1d4] sm:$0xf] }
 0x1d0   :  { %v7640_v35 = vld [vmem:[#allocation2 + $0x990] sm:$0xf]  ;;  %v8441_v51 = vor.u32 %v10116_v30, %v8440_v29  ;;  %3686 = vmatmul.bf16.vlgmr.msra.gmra.mxu2 %v10652_v4  ;;  %v6650_v25 = vld [vmem:[#allocation2 + $0x1f0] sm:$0xf0] }
 0x1d1   :  { %v9916_v36 = vld [vmem:[#allocation2 + $0x9ac] sm:$0xf0]  ;;  %3730 = vmatpush.bf16.msrb.mxu2 %v8185_v34 }
 0x1d2   :  { %v7896_v37 = vld [vmem:[#allocation2 + $0xb90] sm:$0xf]  ;;  %v7641_v46 = vor.u32 %v9916_v36, %v7640_v35  ;;  %3699 = vmatmul.bf16.vlgmr.msra.gmra.mxu3 %v10657_v6 }
 0x1d3   :  { %v9980_v39 = vld [vmem:[#allocation2 + $0xbac] sm:$0xf0]  ;;  %3743 = vmatpush.bf16.msrb.mxu3 %v8441_v51  ;;  %v3479_v51 = vpop.f32.mrf.mxu2 }
 0x1d4   :  { %v8152_v40 = vld [vmem:[#allocation2 + $0xd90] sm:$0xf]  ;;  %v7897_v47 = vor.u32 %v9980_v39, %v7896_v37  ;;  %3705 = vmatpush.bf16.msrb.mxu0 %v7641_v46  ;;  %v3492_v46 = vpop.f32.mrf.mxu3 }
 0x1d5   :  { %v10044_v15 = vld [vmem:[#allocation2 + $0xdac] sm:$0xf0] }
 0x1d6   :  { %v8408_v43 = vld [vmem:[#allocation2 + $0xf90] sm:$0xf]  ;;  %v8153_v48 = vor.u32 %v10044_v15, %v8152_v40  ;;  %3718 = vmatpush.bf16.msrb.mxu1 %v7897_v47 }
 0x1d7   :  { %v10108_v45 = vld [vmem:[#allocation2 + $0xfac] sm:$0xf0] }
 0x1d8   :  { %v7608_v50 = vld [vmem:[#allocation2 + $0x950] sm:$0xf]  ;;  %v8409_v55 = vor.u32 %v10108_v45, %v8408_v43  ;;  %3731 = vmatpush.bf16.msrb.mxu2 %v8153_v48  ;;  %v3480_v45 = vadd.f32 %v3479_v51, %v3467_v31  ;;  %v9656_v51 = vld [vmem:[#allocation2 + $0x194] sm:$0xf] }
 0x1d9   :  { %v9908_v53 = vld [vmem:[#allocation2 + $0x96c] sm:$0xf0] }
 0x1da   :  { %v7864_v54 = vld [vmem:[#allocation2 + $0xb50] sm:$0xf]  ;;  %v7609_v61 = vor.u32 %v9908_v53, %v7608_v50  ;;  %3744 = vmatpush.bf16.msrb.mxu3 %v8409_v55  ;;  %v10730_v53 = vadd.f32 %v3492_v46, %v3480_v45  ;;  %v9784_v45 = vld [vmem:[#allocation2 + $0x594] sm:$0xf] }
 0x1db   :  { %v9972_v56 = vld [vmem:[#allocation2 + $0xb6c] sm:$0xf0]  ;;  %v3481_v14 = vpop.f32.mrf.mxu2  ;;  %v7130_v46 = vld [vmem:[#allocation2 + $0x5b0] sm:$0xf0] }
 0x1dc   :  { %v8120_v57 = vld [vmem:[#allocation2 + $0xd50] sm:$0xf]  ;;  %v7865_v63 = vor.u32 %v9972_v56, %v7864_v54  ;;  %3706 = vmatpush.bf16.msrb.mxu0 %v7609_v61  ;;  %v3455_v54 = vpop.f32.mrf.mxu0  ;;  %v9832_v14 = vld [vmem:[#allocation2 + $0x714] sm:$0xf] }
 0x1dd   :  { %v10036_v58 = vld [vmem:[#allocation2 + $0xd6c] sm:$0xf0] }
 0x1de   :  { %v8376_v59 = vld [vmem:[#allocation2 + $0xf50] sm:$0xf]  ;;  %v8121_v0 = vor.u32 %v10036_v58, %v8120_v57  ;;  %3719 = vmatpush.bf16.msrb.mxu1 %v7865_v63 }
 0x1df   :  { %v10100_v60 = vld [vmem:[#allocation2 + $0xf6c] sm:$0xf0] }
 0x1e0   :  { %v7576_v62 = vld [vmem:[#allocation2 + $0x910] sm:$0xf]  ;;  %v8377_v7 = vor.u32 %v10100_v60, %v8376_v59  ;;  %3732 = vmatpush.bf16.msrb.mxu2 %v8121_v0  ;;  %v3468_v60 = vpop.f32.mrf.mxu1 }
 0x1e1   :  { %v9900_v1 = vld [vmem:[#allocation2 + $0x92c] sm:$0xf0]  ;;  %v6842_v60 = vld [vmem:[#allocation2 + $0x370] sm:$0xf0] }
 0x1e2   :  { %v7832_v2 = vld [vmem:[#allocation2 + $0xb10] sm:$0xf]  ;;  %v7577_v13 = vor.u32 %v9900_v1, %v7576_v62  ;;  %3745 = vmatpush.bf16.msrb.mxu3 %v8377_v7 }
 0x1e3   :  { %v9964_v8 = vld [vmem:[#allocation2 + $0xb2c] sm:$0xf0] }
 0x1e4   :  { %v8088_v9 = vld [vmem:[#allocation2 + $0xd10] sm:$0xf]  ;;  %v7833_v16 = vor.u32 %v9964_v8, %v7832_v2  ;;  %3707 = vmatpush.bf16.msrb.mxu0 %v7577_v13 }
 0x1e5   :  { %v10028_v10 = vld [vmem:[#allocation2 + $0xd2c] sm:$0xf0] }
 0x1e6   :  { %v8344_v11 = vld [vmem:[#allocation2 + $0xf10] sm:$0xf]  ;;  %v8089_v17 = vor.u32 %v10028_v10, %v8088_v9  ;;  %3720 = vmatpush.bf16.msrb.mxu1 %v7833_v16 }
 0x1e7   :  { %v10092_v12 = vld [vmem:[#allocation2 + $0xf2c] sm:$0xf0] }
 0x1e8   :  { %v7544_v18 = vld [vmem:[#allocation2 + $0x8d0] sm:$0xf]  ;;  %v8345_v22 = vor.u32 %v10092_v12, %v8344_v11  ;;  %3733 = vmatpush.bf16.msrb.mxu2 %v8089_v17 }
 0x1e9   :  { %v9892_v19 = vld [vmem:[#allocation2 + $0x8ec] sm:$0xf0] }
 0x1ea   :  { %v7800_v23 = vld [vmem:[#allocation2 + $0xad0] sm:$0xf]  ;;  %v7545_v32 = vor.u32 %v9892_v19, %v7544_v18  ;;  %3746 = vmatpush.bf16.msrb.mxu3 %v8345_v22  ;;  %v9728_v22 = vld [vmem:[#allocation2 + $0x3d4] sm:$0xf] }
 0x1eb   :  { %v9956_v26 = vld [vmem:[#allocation2 + $0xaec] sm:$0xf0] }
 0x1ec   :  { %v8056_v27 = vld [vmem:[#allocation2 + $0xcd0] sm:$0xf]  ;;  %v7801_v33 = vor.u32 %v9956_v26, %v7800_v23  ;;  %3708 = vmatpush.bf16.msrb.mxu0 %v7545_v32  ;;  %v3494_v23 = vpop.f32.mrf.mxu3  ;;  %v9856_v32 = vld [vmem:[#allocation2 + $0x7d4] sm:$0xf] }
 0x1ed   :  { %v10020_v28 = vld [vmem:[#allocation2 + $0xcec] sm:$0xf0] }
 0x1ee   :  { %v8312_v29 = vld [vmem:[#allocation2 + $0xed0] sm:$0xf]  ;;  %v8057_v34 = vor.u32 %v10020_v28, %v8056_v27  ;;  %3721 = vmatpush.bf16.msrb.mxu1 %v7801_v33  ;;  %v6906_v27 = vld [vmem:[#allocation2 + $0x3f0] sm:$0xf0] }
 0x1ef   :  { %v10084_v30 = vld [vmem:[#allocation2 + $0xeec] sm:$0xf0]  ;;  %v9792_v28 = vld [vmem:[#allocation2 + $0x5d4] sm:$0xf] }
 0x1f0   :  { %v7512_v35 = vld [vmem:[#allocation2 + $0x890] sm:$0xf]  ;;  %v8313_v39 = vor.u32 %v10084_v30, %v8312_v29  ;;  %3734 = vmatpush.bf16.msrb.mxu2 %v8057_v34  ;;  %v7162_v29 = vld [vmem:[#allocation2 + $0x5f0] sm:$0xf0] }
 0x1f1   :  { %v9884_v36 = vld [vmem:[#allocation2 + $0x8ac] sm:$0xf0]  ;;  %v7418_v33 = vld [vmem:[#allocation2 + $0x7f0] sm:$0xf0] }
 0x1f2   :  { %v7768_v37 = vld [vmem:[#allocation2 + $0xa90] sm:$0xf]  ;;  %v7513_v50 = vor.u32 %v9884_v36, %v7512_v35  ;;  %3747 = vmatpush.bf16.msrb.mxu3 %v8313_v39  ;;  %v6653_v35 = vor.u32 %v9664_v24, %v6650_v25  ;;  %v6909_v36 = vor.u32 %v9728_v22, %v6906_v27  ;;  %v6618_v39 = vld [vmem:[#allocation2 + $0x1b0] sm:$0xf0]  ;;  %v3518_v27 = vpop.f32.mrf.mxu1 }
 0x1f3   :  { %v9948_v40 = vld [vmem:[#allocation2 + $0xaac] sm:$0xf0]  ;;  %v9632_v24 = vld [vmem:[#allocation2 + $0xd4] sm:$0xf] }
 0x1f4   :  { %v8024_v15 = vld [vmem:[#allocation2 + $0xc90] sm:$0xf]  ;;  %v7769_v55 = vor.u32 %v9948_v40, %v7768_v37  ;;  %3709 = vmatpush.bf16.msrb.mxu0 %v7513_v50  ;;  %v7165_v37 = vor.u32 %v9792_v28, %v7162_v29  ;;  %v9720_v40 = vld [vmem:[#allocation2 + $0x394] sm:$0xf]  ;;  %v6621_v50 = vor.u32 %v9656_v51, %v6618_v39 }
 0x1f5   :  { %v10012_v43 = vld [vmem:[#allocation2 + $0xcac] sm:$0xf0]  ;;  %v6522_v25 = vld [vmem:[#allocation2 + $0xf0] sm:$0xf0] }
 0x1f6   :  { %v8280_v47 = vld [vmem:[#allocation2 + $0xe90] sm:$0xf]  ;;  %v8025_v56 = vor.u32 %v10012_v43, %v8024_v15  ;;  %3722 = vmatpush.bf16.msrb.mxu1 %v7769_v55  ;;  %v7421_v15 = vor.u32 %v9856_v32, %v7418_v33  ;;  %v6874_v43 = vld [vmem:[#allocation2 + $0x3b0] sm:$0xf0]  ;;  %v7133_v55 = vor.u32 %v9784_v45, %v7130_v46 }
 0x1f7   :  { %v10076_v48 = vld [vmem:[#allocation2 + $0xeac] sm:$0xf0]  ;;  %v6877_v54 = vor.u32 %v9720_v40, %v6874_v43  ;;  %v9696_v22 = vld [vmem:[#allocation2 + $0x2d4] sm:$0xf] }
 0x1f8   :  { %v7480_v57 = vld [vmem:[#allocation2 + $0x850] sm:$0xf]  ;;  %v8281_v61 = vor.u32 %v10076_v48, %v8280_v47  ;;  %3735 = vmatpush.bf16.msrb.mxu2 %v8025_v56  ;;  %v9848_v47 = vld [vmem:[#allocation2 + $0x794] sm:$0xf] }
 0x1f9   :  { %v9876_v58 = vld [vmem:[#allocation2 + $0x86c] sm:$0xf0]  ;;  %v7386_v48 = vld [vmem:[#allocation2 + $0x7b0] sm:$0xf0] }
 0x1fa   :  { %v7736_v59 = vld [vmem:[#allocation2 + $0xa50] sm:$0xf]  ;;  %v7481_v5 = vor.u32 %v9876_v58, %v7480_v57  ;;  %3748 = vmatpush.bf16.msrb.mxu3 %v8281_v61  ;;  %v9648_v56 = vld [vmem:[#allocation2 + $0x154] sm:$0xf] }
 0x1fb   :  { %v9940_v62 = vld [vmem:[#allocation2 + $0xa6c] sm:$0xf0]  ;;  %v6586_v57 = vld [vmem:[#allocation2 + $0x170] sm:$0xf0] }
 0x1fc   :  { %v7992_v63 = vld [vmem:[#allocation2 + $0xc50] sm:$0xf]  ;;  %v7737_v9 = vor.u32 %v9940_v62, %v7736_v59  ;;  %3710 = vmatpush.bf16.msrb.mxu0 %v7481_v5  ;;  %v9712_v58 = vld [vmem:[#allocation2 + $0x354] sm:$0xf]  ;;  %v7389_v59 = vor.u32 %v9848_v47, %v7386_v48  ;;  %v3544_v48 = vpop.f32.mrf.mxu3 }
 0x1fd   :  { %v10004_v0 = vld [vmem:[#allocation2 + $0xc6c] sm:$0xf0]  ;;  %v9776_v61 = vld [vmem:[#allocation2 + $0x554] sm:$0xf] }
 0x1fe   :  { %v8248_v1 = vld [vmem:[#allocation2 + $0xe50] sm:$0xf]  ;;  %v7993_v10 = vor.u32 %v10004_v0, %v7992_v63  ;;  %3723 = vmatpush.bf16.msrb.mxu1 %v7737_v9  ;;  %v7098_v62 = vld [vmem:[#allocation2 + $0x570] sm:$0xf0] }
 0x1ff   :  { %v10068_v2 = vld [vmem:[#allocation2 + $0xe6c] sm:$0xf0]  ;;  %v9840_v63 = vld [vmem:[#allocation2 + $0x754] sm:$0xf]  ;;  %v7101_v5 = vor.u32 %v9776_v61, %v7098_v62 }
 0x200   :  { %v7448_v7 = vld [vmem:[#allocation2 + $0x810] sm:$0xf]  ;;  %v8249_v16 = vor.u32 %v10068_v2, %v8248_v1  ;;  %3736 = vmatpush.bf16.msrb.mxu2 %v7993_v10  ;;  %v7354_v0 = vld [vmem:[#allocation2 + $0x770] sm:$0xf0]  ;;  %v6589_v1 = vor.u32 %v9648_v56, %v6586_v57  ;;  %v6845_v2 = vor.u32 %v9712_v58, %v6842_v60 }
 0x201   :  { %v9868_v8 = vld [vmem:[#allocation2 + $0x82c] sm:$0xf0]  ;;  %v9704_v9 = vld [vmem:[#allocation2 + $0x314] sm:$0xf]  ;;  %v7357_v10 = vor.u32 %v9840_v63, %v7354_v0  ;;  %v3520_v63 = vpop.f32.mrf.mxu1 }
 0x202   :  { %v7704_v11 = vld [vmem:[#allocation2 + $0xa10] sm:$0xf]  ;;  %v7449_v26 = vor.u32 %v9868_v8, %v7448_v7  ;;  %3749 = vmatpush.bf16.msrb.mxu3 %v8249_v16  ;;  %v9640_v7 = vld [vmem:[#allocation2 + $0x114] sm:$0xf] }
 0x203   :  { %v9932_v12 = vld [vmem:[#allocation2 + $0xa2c] sm:$0xf0]  ;;  %v6554_v8 = vld [vmem:[#allocation2 + $0x130] sm:$0xf0] }
 0x204   :  { %v7960_v13 = vld [vmem:[#allocation2 + $0xc10] sm:$0xf]  ;;  %v7705_v30 = vor.u32 %v9932_v12, %v7704_v11  ;;  %3711 = vmatpush.bf16.msrb.mxu0 %v7449_v26  ;;  %v6810_v11 = vld [vmem:[#allocation2 + $0x330] sm:$0xf0] }
 0x205   :  { %v9996_v17 = vld [vmem:[#allocation2 + $0xc2c] sm:$0xf0]  ;;  %v9768_v12 = vld [vmem:[#allocation2 + $0x514] sm:$0xf] }
 0x206   :  { %v8216_v18 = vld [vmem:[#allocation2 + $0xe10] sm:$0xf]  ;;  %v7961_v31 = vor.u32 %v9996_v17, %v7960_v13  ;;  %3724 = vmatpush.bf16.msrb.mxu1 %v7705_v30  ;;  %v7066_v13 = vld [vmem:[#allocation2 + $0x530] sm:$0xf0]  ;;  %v6557_v17 = vor.u32 %v9640_v7, %v6554_v8 }
 0x207   :  { %v10060_v19 = vld [vmem:[#allocation2 + $0xe2c] sm:$0xf0]  ;;  %3712 = vmatmul.bf16.vlgmr.msrb.gmra.mxu0 %v10675_v41  ;;  %v7322_v16 = vld [vmem:[#allocation2 + $0x730] sm:$0xf0]  ;;  %v7069_v23 = vor.u32 %v9768_v12, %v7066_v13 }
 0x208   :  { %v8217_v34 = vor.u32 %v10060_v19, %v8216_v18  ;;  %3737 = vmatpush.bf16.msrb.mxu2 %v7961_v31  ;;  %3756 = vmatpush.bf16.msra.mxu0 %v6653_v35  ;;  %v3505_v18 = vpop.f32.mrf.mxu0  ;;  %v6813_v19 = vor.u32 %v9704_v9, %v6810_v11  ;;  %v7325_v28 = vor.u32 %v9832_v14, %v7322_v16  ;;  %v6778_v29 = vld [vmem:[#allocation2 + $0x2f0] sm:$0xf0] }
 0x209   :  { %3725 = vmatmul.bf16.vlgmr.msrb.gmra.mxu1 %v10679_v44  ;;  %v3506_v26 = vadd.f32 %v3505_v18, %v10730_v53  ;;  %v9760_v30 = vld [vmem:[#allocation2 + $0x4d4] sm:$0xf]  ;;  %v6525_v35 = vor.u32 %v9632_v24, %v6522_v25 }
 0x20a   :  { %3750 = vmatpush.bf16.msrb.mxu3 %v8217_v34  ;;  %3769 = vmatpush.bf16.msra.mxu1 %v6909_v36  ;;  %v7034_v31 = vld [vmem:[#allocation2 + $0x4f0] sm:$0xf0]  ;;  %v6781_v36 = vor.u32 %v9696_v22, %v6778_v29  ;;  %v3546_v22 = vpop.f32.mrf.mxu3 }
 0x20b   :  { %3738 = vmatmul.bf16.vlgmr.msrb.gmra.mxu2 %v10673_v38  ;;  %v9824_v32 = vld [vmem:[#allocation2 + $0x6d4] sm:$0xf]  ;;  %v3519_v34 = vadd.f32 %v3518_v27, %v3506_v26 }
 0x20c   :  { %3782 = vmatpush.bf16.msra.mxu2 %v7165_v37  ;;  %3757 = vmatpush.bf16.msra.mxu0 %v6621_v50  ;;  %v7290_v33 = vld [vmem:[#allocation2 + $0x6f0] sm:$0xf0]  ;;  %v7037_v37 = vor.u32 %v9760_v30, %v7034_v31 }
 0x20d   :  { %3751 = vmatmul.bf16.vlgmr.msrb.gmra.mxu3 %v10677_v42  ;;  %v9624_v51 = vld [vmem:[#allocation2 + $0x94] sm:$0xf]  ;;  %v7293_v53 = vor.u32 %v9824_v32, %v7290_v33 }
 0x20e   :  { %3795 = vmatpush.bf16.msra.mxu3 %v7421_v15  ;;  %3770 = vmatpush.bf16.msra.mxu1 %v6877_v54  ;;  %v6490_v39 = vld [vmem:[#allocation2 + $0xb0] sm:$0xf0]  ;;  %v3531_v15 = vpop.f32.mrf.mxu2 }
 0x20f   :  { %v9688_v40 = vld [vmem:[#allocation2 + $0x294] sm:$0xf]  ;;  %v3532_v47 = vadd.f32 %v3531_v15, %v3519_v34 }
 0x210   :  { %3783 = vmatpush.bf16.msra.mxu2 %v7133_v55  ;;  %3758 = vmatpush.bf16.msra.mxu0 %v6589_v1  ;;  %v6746_v43 = vld [vmem:[#allocation2 + $0x2b0] sm:$0xf0]  ;;  %v6493_v55 = vor.u32 %v9624_v51, %v6490_v39  ;;  %v3507_v57 = vpop.f32.mrf.mxu0 }
 0x211   :  { %v9752_v45 = vld [vmem:[#allocation2 + $0x494] sm:$0xf]  ;;  %v10737_v56 = vadd.f32 %v3544_v48, %v3532_v47  ;;  %v6749_v58 = vor.u32 %v9688_v40, %v6746_v43 }
 0x212   :  { %3796 = vmatpush.bf16.msra.mxu3 %v7389_v59  ;;  %3771 = vmatpush.bf16.msra.mxu1 %v6845_v2  ;;  %v7002_v46 = vld [vmem:[#allocation2 + $0x4b0] sm:$0xf0] }
 0x213   :  { %v9816_v50 = vld [vmem:[#allocation2 + $0x694] sm:$0xf]  ;;  %v7005_v59 = vor.u32 %v9752_v45, %v7002_v46  ;;  %vm4070_vm2 = vcmp.gt.f32.partialorder %v10737_v56, 0.0 }
 0x214   :  { %3784 = vmatpush.bf16.msra.mxu2 %v7101_v5  ;;  %3759 = vmatpush.bf16.msra.mxu0 %v6557_v17  ;;  %v7258_v54 = vld [vmem:[#allocation2 + $0x6b0] sm:$0xf0] }
 0x215   :  { %v9616_v60 = vld [vmem:[#allocation2 + $0x54] sm:$0xf]  ;;  %v7261_v0 = vor.u32 %v9816_v50, %v7258_v54 }
 0x216   :  { %3797 = vmatpush.bf16.msra.mxu3 %v7357_v10  ;;  %3772 = vmatpush.bf16.msra.mxu1 %v6813_v19  ;;  %v6458_v61 = vld [vmem:[#allocation2 + $0x70] sm:$0xf0]  ;;  %v3533_v18 = vpop.f32.mrf.mxu2 }
 0x217   :  { %v9680_v62 = vld [vmem:[#allocation2 + $0x254] sm:$0xf]  ;;  %v6461_v9 = vor.u32 %v9616_v60, %v6458_v61 }
 0x218   :  { %3785 = vmatpush.bf16.msra.mxu2 %v7069_v23  ;;  %3760 = vmatpush.bf16.msra.mxu0 %v6525_v35  ;;  %v6714_v1 = vld [vmem:[#allocation2 + $0x270] sm:$0xf0] }
 0x219   :  { %v9744_v2 = vld [vmem:[#allocation2 + $0x454] sm:$0xf]  ;;  %v6717_v12 = vor.u32 %v9680_v62, %v6714_v1 }
 0x21a   :  { %3798 = vmatpush.bf16.msra.mxu3 %v7325_v28  ;;  %3773 = vmatpush.bf16.msra.mxu1 %v6781_v36  ;;  %v6970_v5 = vld [vmem:[#allocation2 + $0x470] sm:$0xf0] }
 0x21b   :  { %v9808_v7 = vld [vmem:[#allocation2 + $0x654] sm:$0xf]  ;;  %v6973_v13 = vor.u32 %v9744_v2, %v6970_v5 }
 0x21c   :  { %3786 = vmatpush.bf16.msra.mxu2 %v7037_v37  ;;  %v7226_v8 = vld [vmem:[#allocation2 + $0x670] sm:$0xf0]  ;;  %3761 = vmatpush.bf16.msra.mxu0 %v6493_v55 }
 0x21d   :  { %v9608_v10 = vld [vmem:[#allocation2 + $0x14] sm:$0xf]  ;;  %v7229_v19 = vor.u32 %v9808_v7, %v7226_v8 }
 0x21e   :  { %3799 = vmatpush.bf16.msra.mxu3 %v7293_v53  ;;  %v6426_v11 = vld [vmem:[#allocation2 + $0x30] sm:$0xf0]  ;;  %3774 = vmatpush.bf16.msra.mxu1 %v6749_v58 }
 0x21f   :  { %v9672_v14 = vld [vmem:[#allocation2 + $0x214] sm:$0xf]  ;;  %v6429_v29 = vor.u32 %v9608_v10, %v6426_v11 }
 0x220   :  { %3787 = vmatpush.bf16.msra.mxu2 %v7005_v59  ;;  %v6682_v16 = vld [vmem:[#allocation2 + $0x230] sm:$0xf0]  ;;  %3762 = vmatpush.bf16.msra.mxu0 %v6461_v9 }
 0x221   :  { %v9736_v17 = vld [vmem:[#allocation2 + $0x414] sm:$0xf]  ;;  %v6685_v33 = vor.u32 %v9672_v14, %v6682_v16 }
 0x222   :  { %3800 = vmatpush.bf16.msra.mxu3 %v7261_v0  ;;  %v6938_v23 = vld [vmem:[#allocation2 + $0x430] sm:$0xf0]  ;;  %3775 = vmatpush.bf16.msra.mxu1 %v6717_v12 }
 0x223   :  { %v9800_v24 = vld [vmem:[#allocation2 + $0x614] sm:$0xf]  ;;  %v6941_v34 = vor.u32 %v9736_v17, %v6938_v23 }
 0x224   :  { %v7194_v25 = vld [vmem:[#allocation2 + $0x630] sm:$0xf0]  ;;  %3788 = vmatpush.bf16.msra.mxu2 %v6973_v13  ;;  %3763 = vmatpush.bf16.msra.mxu0 %v6429_v29  ;;  %v635_v13 = vperm.slane %v10727_v3, 3 }
 0x225   :  { %v9920_v26 = vld [vmem:[#allocation2 + $0x9d4] sm:$0xf]  ;;  %v7197_v37 = vor.u32 %v9800_v24, %v7194_v25  ;;  %v3557_v25 = vpop.f32.mrf.mxu0 }
 0x226   :  { %v7674_v27 = vld [vmem:[#allocation2 + $0x9f0] sm:$0xf0]  ;;  %3801 = vmatpush.bf16.msra.mxu3 %v7229_v19  ;;  %3776 = vmatpush.bf16.msra.mxu1 %v6685_v33 }
 0x227   :  { %v9984_v28 = vld [vmem:[#allocation2 + $0xbd4] sm:$0xf]  ;;  %v7677_v51 = vor.u32 %v9920_v26, %v7674_v27  ;;  %3764 = vmatmul.bf16.vlgmr.msra.gmra.mxu0 %v10660_v20 }
 0x228   :  { %v7930_v30 = vld [vmem:[#allocation2 + $0xbf0] sm:$0xf0]  ;;  %3789 = vmatpush.bf16.msra.mxu2 %v6941_v34 }
 0x229   :  { %v10048_v31 = vld [vmem:[#allocation2 + $0xdd4] sm:$0xf]  ;;  %v7933_v39 = vor.u32 %v9984_v28, %v7930_v30  ;;  %3808 = vmatpush.bf16.msrb.mxu0 %v7677_v51  ;;  %3777 = vmatmul.bf16.vlgmr.msra.gmra.mxu1 %v10663_v21  ;;  %v3558_v30 = vadd.f32 %v3557_v25, %v635_v13 }
 0x22a   :  { %v8186_v32 = vld [vmem:[#allocation2 + $0xdf0] sm:$0xf0]  ;;  %3802 = vmatpush.bf16.msra.mxu3 %v7197_v37 }
 0x22b   :  { %v10112_v35 = vld [vmem:[#allocation2 + $0xfd4] sm:$0xf]  ;;  %v8189_v40 = vor.u32 %v10048_v31, %v8186_v32  ;;  %3821 = vmatpush.bf16.msrb.mxu1 %v7933_v39  ;;  %3790 = vmatmul.bf16.vlgmr.msra.gmra.mxu2 %v10652_v4  ;;  %v3570_v31 = vpop.f32.mrf.mxu1 }
 0x22c   :  { %v8442_v36 = vld [vmem:[#allocation2 + $0xff0] sm:$0xf0]  ;;  %v3571_v37 = vadd.f32 %v3570_v31, %v3558_v30  ;;  %v6656_v30 = vld [vmem:[#allocation2 + $0x1d8] sm:$0xf] }
 0x22d   :  { %v9912_v15 = vld [vmem:[#allocation2 + $0x994] sm:$0xf]  ;;  %v8445_v45 = vor.u32 %v10112_v35, %v8442_v36  ;;  %3834 = vmatpush.bf16.msrb.mxu2 %v8189_v40  ;;  %3803 = vmatmul.bf16.vlgmr.msra.gmra.mxu3 %v10657_v6  ;;  %v9669_v31 = vld [vmem:[#allocation2 + $0x1f4] sm:$0xf0] }
 0x22e   :  { %v7642_v53 = vld [vmem:[#allocation2 + $0x9b0] sm:$0xf0] }
 0x22f   :  { %v9976_v43 = vld [vmem:[#allocation2 + $0xb94] sm:$0xf]  ;;  %v7645_v55 = vor.u32 %v9912_v15, %v7642_v53  ;;  %3847 = vmatpush.bf16.msrb.mxu3 %v8445_v45  ;;  %v3583_v45 = vpop.f32.mrf.mxu2 }
 0x230   :  { %v7898_v46 = vld [vmem:[#allocation2 + $0xbb0] sm:$0xf0] }
 0x231   :  { %v10040_v47 = vld [vmem:[#allocation2 + $0xd94] sm:$0xf]  ;;  %v7901_v57 = vor.u32 %v9976_v43, %v7898_v46  ;;  %3809 = vmatpush.bf16.msrb.mxu0 %v7645_v55  ;;  %v3596_v55 = vpop.f32.mrf.mxu3 }
 0x232   :  { %v8154_v48 = vld [vmem:[#allocation2 + $0xdb0] sm:$0xf0] }
 0x233   :  { %v10104_v50 = vld [vmem:[#allocation2 + $0xf94] sm:$0xf]  ;;  %v8157_v58 = vor.u32 %v10040_v47, %v8154_v48  ;;  %3822 = vmatpush.bf16.msrb.mxu1 %v7901_v57 }
 0x234   :  { %v8410_v54 = vld [vmem:[#allocation2 + $0xfb0] sm:$0xf0] }
 0x235   :  { %v9904_v59 = vld [vmem:[#allocation2 + $0x954] sm:$0xf]  ;;  %v8413_v62 = vor.u32 %v10104_v50, %v8410_v54  ;;  %3835 = vmatpush.bf16.msrb.mxu2 %v8157_v58  ;;  %v3584_v54 = vadd.f32 %v3583_v45, %v3571_v37  ;;  %v6624_v45 = vld [vmem:[#allocation2 + $0x198] sm:$0xf] }
 0x236   :  { %v7610_v60 = vld [vmem:[#allocation2 + $0x970] sm:$0xf0] }
 0x237   :  { %v9968_v61 = vld [vmem:[#allocation2 + $0xb54] sm:$0xf]  ;;  %v7613_v7 = vor.u32 %v9904_v59, %v7610_v60  ;;  %3848 = vmatpush.bf16.msrb.mxu3 %v8413_v62  ;;  %v10744_v60 = vadd.f32 %v3596_v55, %v3584_v54  ;;  %v3585_v25 = vpop.f32.mrf.mxu2  ;;  %v7136_v54 = vld [vmem:[#allocation2 + $0x598] sm:$0xf] }
 0x238   :  { %v7866_v63 = vld [vmem:[#allocation2 + $0xb70] sm:$0xf0]  ;;  %v9789_v55 = vld [vmem:[#allocation2 + $0x5b4] sm:$0xf0] }
 0x239   :  { %v10032_v0 = vld [vmem:[#allocation2 + $0xd54] sm:$0xf]  ;;  %v7869_v9 = vor.u32 %v9968_v61, %v7866_v63  ;;  %3810 = vmatpush.bf16.msrb.mxu0 %v7613_v7  ;;  %v3559_v61 = vpop.f32.mrf.mxu0  ;;  %v7328_v25 = vld [vmem:[#allocation2 + $0x718] sm:$0xf] }
 0x23a   :  { %v8122_v1 = vld [vmem:[#allocation2 + $0xd70] sm:$0xf0] }
 0x23b   :  { %v10096_v2 = vld [vmem:[#allocation2 + $0xf54] sm:$0xf]  ;;  %v8125_v10 = vor.u32 %v10032_v0, %v8122_v1  ;;  %3823 = vmatpush.bf16.msrb.mxu1 %v7869_v9 }
 0x23c   :  { %v8378_v5 = vld [vmem:[#allocation2 + $0xf70] sm:$0xf0] }
 0x23d   :  { %v9896_v8 = vld [vmem:[#allocation2 + $0x914] sm:$0xf]  ;;  %v8381_v14 = vor.u32 %v10096_v2, %v8378_v5  ;;  %3836 = vmatpush.bf16.msrb.mxu2 %v8125_v10  ;;  %v3572_v5 = vpop.f32.mrf.mxu1 }
 0x23e   :  { %v7578_v11 = vld [vmem:[#allocation2 + $0x930] sm:$0xf0]  ;;  %v9717_v5 = vld [vmem:[#allocation2 + $0x374] sm:$0xf0] }
 0x23f   :  { %v9960_v12 = vld [vmem:[#allocation2 + $0xb14] sm:$0xf]  ;;  %v7581_v24 = vor.u32 %v9896_v8, %v7578_v11  ;;  %3849 = vmatpush.bf16.msrb.mxu3 %v8381_v14 }
 0x240   :  { %v7834_v16 = vld [vmem:[#allocation2 + $0xb30] sm:$0xf0] }
 0x241   :  { %v10024_v17 = vld [vmem:[#allocation2 + $0xd14] sm:$0xf]  ;;  %v7837_v22 = vor.u32 %v9960_v12, %v7834_v16  ;;  %3811 = vmatpush.bf16.msrb.mxu0 %v7581_v24 }
 0x242   :  { %v8090_v18 = vld [vmem:[#allocation2 + $0xd30] sm:$0xf0] }
 0x243   :  { %v10088_v19 = vld [vmem:[#allocation2 + $0xf14] sm:$0xf]  ;;  %v8093_v26 = vor.u32 %v10024_v17, %v8090_v18  ;;  %3824 = vmatpush.bf16.msrb.mxu1 %v7837_v22 }
 0x244   :  { %v8346_v23 = vld [vmem:[#allocation2 + $0xf30] sm:$0xf0] }
 0x245   :  { %v9888_v27 = vld [vmem:[#allocation2 + $0x8d4] sm:$0xf]  ;;  %v8349_v3 = vor.u32 %v10088_v19, %v8346_v23  ;;  %3837 = vmatpush.bf16.msrb.mxu2 %v8093_v26 }
 0x246   :  { %v7546_v28 = vld [vmem:[#allocation2 + $0x8f0] sm:$0xf0] }
 0x247   :  { %v9952_v29 = vld [vmem:[#allocation2 + $0xad4] sm:$0xf]  ;;  %v7549_v51 = vor.u32 %v9888_v27, %v7546_v28  ;;  %3850 = vmatpush.bf16.msrb.mxu3 %v8349_v3  ;;  %v6912_v3 = vld [vmem:[#allocation2 + $0x3d8] sm:$0xf] }
 0x248   :  { %v7802_v32 = vld [vmem:[#allocation2 + $0xaf0] sm:$0xf0] }
 0x249   :  { %v10016_v33 = vld [vmem:[#allocation2 + $0xcd4] sm:$0xf]  ;;  %v7805_v39 = vor.u32 %v9952_v29, %v7802_v32  ;;  %3812 = vmatpush.bf16.msrb.mxu0 %v7549_v51  ;;  %v3598_v29 = vpop.f32.mrf.mxu3  ;;  %v7424_v51 = vld [vmem:[#allocation2 + $0x7d8] sm:$0xf] }
 0x24a   :  { %v8058_v34 = vld [vmem:[#allocation2 + $0xcf0] sm:$0xf0] }
 0x24b   :  { %v10080_v35 = vld [vmem:[#allocation2 + $0xed4] sm:$0xf]  ;;  %v8061_v40 = vor.u32 %v10016_v33, %v8058_v34  ;;  %3825 = vmatpush.bf16.msrb.mxu1 %v7805_v39  ;;  %v9733_v33 = vld [vmem:[#allocation2 + $0x3f4] sm:$0xf0] }
 0x24c   :  { %v8314_v36 = vld [vmem:[#allocation2 + $0xef0] sm:$0xf0]  ;;  %v7168_v34 = vld [vmem:[#allocation2 + $0x5d8] sm:$0xf] }
 0x24d   :  { %v9880_v15 = vld [vmem:[#allocation2 + $0x894] sm:$0xf]  ;;  %v8317_v46 = vor.u32 %v10080_v35, %v8314_v36  ;;  %3838 = vmatpush.bf16.msrb.mxu2 %v8061_v40  ;;  %v9797_v35 = vld [vmem:[#allocation2 + $0x5f4] sm:$0xf0] }
 0x24e   :  { %v7514_v53 = vld [vmem:[#allocation2 + $0x8b0] sm:$0xf0]  ;;  %v9861_v39 = vld [vmem:[#allocation2 + $0x7f4] sm:$0xf0] }
 0x24f   :  { %v9944_v43 = vld [vmem:[#allocation2 + $0xa94] sm:$0xf]  ;;  %v7517_v59 = vor.u32 %v9880_v15, %v7514_v53  ;;  %3851 = vmatpush.bf16.msrb.mxu3 %v8317_v46  ;;  %v6657_v15 = vor.u32 %v9669_v31, %v6656_v30  ;;  %v6913_v53 = vor.u32 %v9733_v33, %v6912_v3  ;;  %v9661_v46 = vld [vmem:[#allocation2 + $0x1b4] sm:$0xf0]  ;;  %v3622_v33 = vpop.f32.mrf.mxu1 }
 0x250   :  { %v7770_v47 = vld [vmem:[#allocation2 + $0xab0] sm:$0xf0]  ;;  %v6528_v30 = vld [vmem:[#allocation2 + $0xd8] sm:$0xf] }
 0x251   :  { %v10008_v48 = vld [vmem:[#allocation2 + $0xc94] sm:$0xf]  ;;  %v7773_v62 = vor.u32 %v9944_v43, %v7770_v47  ;;  %3813 = vmatpush.bf16.msrb.mxu0 %v7517_v59  ;;  %v7169_v43 = vor.u32 %v9797_v35, %v7168_v34  ;;  %v6880_v47 = vld [vmem:[#allocation2 + $0x398] sm:$0xf]  ;;  %v6625_v59 = vor.u32 %v9661_v46, %v6624_v45 }
 0x252   :  { %v8026_v50 = vld [vmem:[#allocation2 + $0xcb0] sm:$0xf0]  ;;  %v9637_v31 = vld [vmem:[#allocation2 + $0xf4] sm:$0xf0] }
 0x253   :  { %v10072_v57 = vld [vmem:[#allocation2 + $0xe94] sm:$0xf]  ;;  %v8029_v63 = vor.u32 %v10008_v48, %v8026_v50  ;;  %3826 = vmatpush.bf16.msrb.mxu1 %v7773_v62  ;;  %v7425_v48 = vor.u32 %v9861_v39, %v7424_v51  ;;  %v9725_v50 = vld [vmem:[#allocation2 + $0x3b4] sm:$0xf0]  ;;  %v7137_v62 = vor.u32 %v9789_v55, %v7136_v54 }
 0x254   :  { %v8282_v58 = vld [vmem:[#allocation2 + $0xeb0] sm:$0xf0]  ;;  %v6881_v61 = vor.u32 %v9725_v50, %v6880_v47  ;;  %v6784_v3 = vld [vmem:[#allocation2 + $0x2d8] sm:$0xf] }
 0x255   :  { %v9872_v0 = vld [vmem:[#allocation2 + $0x854] sm:$0xf]  ;;  %v8285_v7 = vor.u32 %v10072_v57, %v8282_v58  ;;  %3839 = vmatpush.bf16.msrb.mxu2 %v8029_v63  ;;  %v7392_v57 = vld [vmem:[#allocation2 + $0x798] sm:$0xf] }
 0x256   :  { %v7482_v1 = vld [vmem:[#allocation2 + $0x870] sm:$0xf0]  ;;  %v9853_v58 = vld [vmem:[#allocation2 + $0x7b4] sm:$0xf0] }
 0x257   :  { %v9936_v2 = vld [vmem:[#allocation2 + $0xa54] sm:$0xf]  ;;  %v7485_v13 = vor.u32 %v9872_v0, %v7482_v1  ;;  %3852 = vmatpush.bf16.msrb.mxu3 %v8285_v7  ;;  %v6592_v63 = vld [vmem:[#allocation2 + $0x158] sm:$0xf] }
 0x258   :  { %v7738_v8 = vld [vmem:[#allocation2 + $0xa70] sm:$0xf0]  ;;  %v9653_v0 = vld [vmem:[#allocation2 + $0x174] sm:$0xf0] }
 0x259   :  { %v10000_v9 = vld [vmem:[#allocation2 + $0xc54] sm:$0xf]  ;;  %v7741_v17 = vor.u32 %v9936_v2, %v7738_v8  ;;  %3814 = vmatpush.bf16.msrb.mxu0 %v7485_v13  ;;  %v6848_v1 = vld [vmem:[#allocation2 + $0x358] sm:$0xf]  ;;  %v7393_v2 = vor.u32 %v9853_v58, %v7392_v57  ;;  %v3648_v58 = vpop.f32.mrf.mxu3 }
 0x25a   :  { %v7994_v10 = vld [vmem:[#allocation2 + $0xc70] sm:$0xf0]  ;;  %v7104_v7 = vld [vmem:[#allocation2 + $0x558] sm:$0xf] }
 0x25b   :  { %v10064_v11 = vld [vmem:[#allocation2 + $0xe54] sm:$0xf]  ;;  %v7997_v18 = vor.u32 %v10000_v9, %v7994_v10  ;;  %3827 = vmatpush.bf16.msrb.mxu1 %v7741_v17  ;;  %v9781_v8 = vld [vmem:[#allocation2 + $0x574] sm:$0xf0] }
 0x25c   :  { %v8250_v12 = vld [vmem:[#allocation2 + $0xe70] sm:$0xf0]  ;;  %v7360_v9 = vld [vmem:[#allocation2 + $0x758] sm:$0xf]  ;;  %v7105_v13 = vor.u32 %v9781_v8, %v7104_v7 }
 0x25d   :  { %v9864_v14 = vld [vmem:[#allocation2 + $0x814] sm:$0xf]  ;;  %v8253_v22 = vor.u32 %v10064_v11, %v8250_v12  ;;  %3840 = vmatpush.bf16.msrb.mxu2 %v7997_v18  ;;  %v9845_v10 = vld [vmem:[#allocation2 + $0x774] sm:$0xf0]  ;;  %v6593_v11 = vor.u32 %v9653_v0, %v6592_v63  ;;  %v6849_v12 = vor.u32 %v9717_v5, %v6848_v1 }
 0x25e   :  { %v7450_v16 = vld [vmem:[#allocation2 + $0x830] sm:$0xf0]  ;;  %v6816_v17 = vld [vmem:[#allocation2 + $0x318] sm:$0xf]  ;;  %v7361_v18 = vor.u32 %v9845_v10, %v7360_v9  ;;  %v3624_v9 = vpop.f32.mrf.mxu1 }
 0x25f   :  { %v9928_v19 = vld [vmem:[#allocation2 + $0xa14] sm:$0xf]  ;;  %v7453_v32 = vor.u32 %v9864_v14, %v7450_v16  ;;  %3853 = vmatpush.bf16.msrb.mxu3 %v8253_v22  ;;  %v6560_v14 = vld [vmem:[#allocation2 + $0x118] sm:$0xf] }
 0x260   :  { %v7706_v23 = vld [vmem:[#allocation2 + $0xa30] sm:$0xf0]  ;;  %v9645_v16 = vld [vmem:[#allocation2 + $0x134] sm:$0xf0] }
 0x261   :  { %v9992_v24 = vld [vmem:[#allocation2 + $0xc14] sm:$0xf]  ;;  %v7709_v36 = vor.u32 %v9928_v19, %v7706_v23  ;;  %3815 = vmatpush.bf16.msrb.mxu0 %v7453_v32  ;;  %v9709_v19 = vld [vmem:[#allocation2 + $0x334] sm:$0xf0] }
 0x262   :  { %v7962_v26 = vld [vmem:[#allocation2 + $0xc30] sm:$0xf0]  ;;  %v7072_v23 = vld [vmem:[#allocation2 + $0x518] sm:$0xf] }
 0x263   :  { %v10056_v27 = vld [vmem:[#allocation2 + $0xe14] sm:$0xf]  ;;  %v7965_v37 = vor.u32 %v9992_v24, %v7962_v26  ;;  %3828 = vmatpush.bf16.msrb.mxu1 %v7709_v36  ;;  %v9773_v24 = vld [vmem:[#allocation2 + $0x534] sm:$0xf0]  ;;  %v6561_v26 = vor.u32 %v9645_v16, %v6560_v14 }
 0x264   :  { %v8218_v28 = vld [vmem:[#allocation2 + $0xe30] sm:$0xf0]  ;;  %3816 = vmatmul.bf16.vlgmr.msrb.gmra.mxu0 %v10675_v41  ;;  %v9837_v22 = vld [vmem:[#allocation2 + $0x734] sm:$0xf0]  ;;  %v7073_v29 = vor.u32 %v9773_v24, %v7072_v23 }
 0x265   :  { %v8221_v40 = vor.u32 %v10056_v27, %v8218_v28  ;;  %3841 = vmatpush.bf16.msrb.mxu2 %v7965_v37  ;;  %3860 = vmatpush.bf16.msra.mxu0 %v6657_v15  ;;  %v3609_v27 = vpop.f32.mrf.mxu0  ;;  %v6817_v28 = vor.u32 %v9709_v19, %v6816_v17  ;;  %v7329_v34 = vor.u32 %v9837_v22, %v7328_v25  ;;  %v9701_v35 = vld [vmem:[#allocation2 + $0x2f4] sm:$0xf0] }
 0x266   :  { %3829 = vmatmul.bf16.vlgmr.msrb.gmra.mxu1 %v10679_v44  ;;  %v3610_v32 = vadd.f32 %v3609_v27, %v10744_v60  ;;  %v7040_v36 = vld [vmem:[#allocation2 + $0x4d8] sm:$0xf]  ;;  %v6529_v15 = vor.u32 %v9637_v31, %v6528_v30 }
 0x267   :  { %3854 = vmatpush.bf16.msrb.mxu3 %v8221_v40  ;;  %3873 = vmatpush.bf16.msra.mxu1 %v6913_v53  ;;  %v9765_v37 = vld [vmem:[#allocation2 + $0x4f4] sm:$0xf0]  ;;  %v6785_v53 = vor.u32 %v9701_v35, %v6784_v3  ;;  %v3650_v3 = vpop.f32.mrf.mxu3 }
 0x268   :  { %3842 = vmatmul.bf16.vlgmr.msrb.gmra.mxu2 %v10673_v38  ;;  %v7296_v51 = vld [vmem:[#allocation2 + $0x6d8] sm:$0xf]  ;;  %v3623_v40 = vadd.f32 %v3622_v33, %v3610_v32 }
 0x269   :  { %3886 = vmatpush.bf16.msra.mxu2 %v7169_v43  ;;  %3861 = vmatpush.bf16.msra.mxu0 %v6625_v59  ;;  %v9829_v39 = vld [vmem:[#allocation2 + $0x6f4] sm:$0xf0]  ;;  %v7041_v43 = vor.u32 %v9765_v37, %v7040_v36 }
 0x26a   :  { %3855 = vmatmul.bf16.vlgmr.msrb.gmra.mxu3 %v10677_v42  ;;  %v6496_v45 = vld [vmem:[#allocation2 + $0x98] sm:$0xf]  ;;  %v7297_v60 = vor.u32 %v9829_v39, %v7296_v51 }
 0x26b   :  { %3899 = vmatpush.bf16.msra.mxu3 %v7425_v48  ;;  %3874 = vmatpush.bf16.msra.mxu1 %v6881_v61  ;;  %v9629_v46 = vld [vmem:[#allocation2 + $0xb4] sm:$0xf0]  ;;  %v3635_v48 = vpop.f32.mrf.mxu2 }
 0x26c   :  { %v6752_v47 = vld [vmem:[#allocation2 + $0x298] sm:$0xf]  ;;  %v3636_v57 = vadd.f32 %v3635_v48, %v3623_v40 }
 0x26d   :  { %3887 = vmatpush.bf16.msra.mxu2 %v7137_v62  ;;  %3862 = vmatpush.bf16.msra.mxu0 %v6593_v11  ;;  %v9693_v50 = vld [vmem:[#allocation2 + $0x2b4] sm:$0xf0]  ;;  %v6497_v62 = vor.u32 %v9629_v46, %v6496_v45  ;;  %v3611_v0 = vpop.f32.mrf.mxu0 }
 0x26e   :  { %v7008_v54 = vld [vmem:[#allocation2 + $0x498] sm:$0xf]  ;;  %v10751_v63 = vadd.f32 %v3648_v58, %v3636_v57  ;;  %v6753_v1 = vor.u32 %v9693_v50, %v6752_v47 }
 0x26f   :  { %3900 = vmatpush.bf16.msra.mxu3 %v7393_v2  ;;  %3875 = vmatpush.bf16.msra.mxu1 %v6849_v12  ;;  %v9757_v55 = vld [vmem:[#allocation2 + $0x4b4] sm:$0xf0] }
 0x270   :  { %v7264_v59 = vld [vmem:[#allocation2 + $0x698] sm:$0xf]  ;;  %v7009_v2 = vor.u32 %v9757_v55, %v7008_v54  ;;  %vm4071_vm3 = vcmp.gt.f32.partialorder %v10751_v63, 0.0 }
 0x271   :  { %3888 = vmatpush.bf16.msra.mxu2 %v7105_v13  ;;  %3863 = vmatpush.bf16.msra.mxu0 %v6561_v26  ;;  %v9821_v61 = vld [vmem:[#allocation2 + $0x6b4] sm:$0xf0] }
 0x272   :  { %v6464_v5 = vld [vmem:[#allocation2 + $0x58] sm:$0xf]  ;;  %v7265_v10 = vor.u32 %v9821_v61, %v7264_v59 }
 0x273   :  { %3901 = vmatpush.bf16.msra.mxu3 %v7361_v18  ;;  %3876 = vmatpush.bf16.msra.mxu1 %v6817_v28  ;;  %v9621_v7 = vld [vmem:[#allocation2 + $0x74] sm:$0xf0]  ;;  %v3637_v27 = vpop.f32.mrf.mxu2 }
 0x274   :  { %v6720_v8 = vld [vmem:[#allocation2 + $0x258] sm:$0xf]  ;;  %v6465_v17 = vor.u32 %v9621_v7, %v6464_v5 }
 0x275   :  { %3889 = vmatpush.bf16.msra.mxu2 %v7073_v29  ;;  %3864 = vmatpush.bf16.msra.mxu0 %v6529_v15  ;;  %v9685_v11 = vld [vmem:[#allocation2 + $0x274] sm:$0xf0]  ;;  %v3661_v3 = vpop.f32.mrf.mxu0 }
 0x276   :  { %v6976_v12 = vld [vmem:[#allocation2 + $0x458] sm:$0xf]  ;;  %v6721_v23 = vor.u32 %v9685_v11, %v6720_v8 }
 0x277   :  { %3902 = vmatpush.bf16.msra.mxu3 %v7329_v34  ;;  %3877 = vmatpush.bf16.msra.mxu1 %v6785_v53  ;;  %v9749_v13 = vld [vmem:[#allocation2 + $0x474] sm:$0xf0] }
 0x278   :  { %v7232_v14 = vld [vmem:[#allocation2 + $0x658] sm:$0xf]  ;;  %v6977_v24 = vor.u32 %v9749_v13, %v6976_v12 }
 0x279   :  { %3890 = vmatpush.bf16.msra.mxu2 %v7041_v43  ;;  %v9813_v16 = vld [vmem:[#allocation2 + $0x674] sm:$0xf0]  ;;  %3865 = vmatpush.bf16.msra.mxu0 %v6497_v62 }
 0x27a   :  { %v6432_v18 = vld [vmem:[#allocation2 + $0x18] sm:$0xf]  ;;  %v7233_v28 = vor.u32 %v9813_v16, %v7232_v14 }
 0x27b   :  { %3903 = vmatpush.bf16.msra.mxu3 %v7297_v60  ;;  %v9613_v19 = vld [vmem:[#allocation2 + $0x34] sm:$0xf0]  ;;  %3878 = vmatpush.bf16.msra.mxu1 %v6753_v1 }
 0x27c   :  { %v6688_v25 = vld [vmem:[#allocation2 + $0x218] sm:$0xf]  ;;  %v6433_v35 = vor.u32 %v9613_v19, %v6432_v18 }
 0x27d   :  { %3891 = vmatpush.bf16.msra.mxu2 %v7009_v2  ;;  %v9677_v22 = vld [vmem:[#allocation2 + $0x234] sm:$0xf0]  ;;  %3866 = vmatpush.bf16.msra.mxu0 %v6465_v17 }
 0x27e   :  { %v6944_v26 = vld [vmem:[#allocation2 + $0x418] sm:$0xf]  ;;  %v6689_v39 = vor.u32 %v9677_v22, %v6688_v25 }
 0x27f   :  { %3904 = vmatpush.bf16.msra.mxu3 %v7265_v10  ;;  %v9741_v29 = vld [vmem:[#allocation2 + $0x434] sm:$0xf0]  ;;  %3879 = vmatpush.bf16.msra.mxu1 %v6721_v23 }
 0x280   :  { %v7200_v30 = vld [vmem:[#allocation2 + $0x618] sm:$0xf]  ;;  %v6945_v40 = vor.u32 %v9741_v29, %v6944_v26 }
 0x281   :  { %v9805_v31 = vld [vmem:[#allocation2 + $0x634] sm:$0xf0]  ;;  %3892 = vmatpush.bf16.msra.mxu2 %v6977_v24  ;;  %3867 = vmatpush.bf16.msra.mxu0 %v6433_v35  ;;  %v10757_v24 = vld [vmem:[#allocation4] sm:$0xff] }
 0x282   :  { %v7680_v32 = vld [vmem:[#allocation2 + $0x9d8] sm:$0xf]  ;;  %v7201_v43 = vor.u32 %v9805_v31, %v7200_v30  ;;  %v636_v25 = vperm.slane %v10757_v24, 4 }
 0x283   :  { %v9925_v33 = vld [vmem:[#allocation2 + $0x9f4] sm:$0xf0]  ;;  %3905 = vmatpush.bf16.msra.mxu3 %v7233_v28  ;;  %3880 = vmatpush.bf16.msra.mxu1 %v6689_v39 }
 0x284   :  { %v7936_v34 = vld [vmem:[#allocation2 + $0xbd8] sm:$0xf]  ;;  %v7681_v45 = vor.u32 %v9925_v33, %v7680_v32  ;;  %3868 = vmatmul.bf16.vlgmr.msra.gmra.mxu0 %v10660_v20 }
 0x285   :  { %v9989_v36 = vld [vmem:[#allocation2 + $0xbf4] sm:$0xf0]  ;;  %3893 = vmatpush.bf16.msra.mxu2 %v6945_v40 }
 0x286   :  { %v8192_v37 = vld [vmem:[#allocation2 + $0xdd8] sm:$0xf]  ;;  %v7937_v46 = vor.u32 %v9989_v36, %v7936_v34  ;;  %3912 = vmatpush.bf16.msrb.mxu0 %v7681_v45  ;;  %3881 = vmatmul.bf16.vlgmr.msra.gmra.mxu1 %v10663_v21 }
 0x287   :  { %v10053_v51 = vld [vmem:[#allocation2 + $0xdf4] sm:$0xf0]  ;;  %3906 = vmatpush.bf16.msra.mxu3 %v7201_v43 }
 0x288   :  { %v8448_v15 = vld [vmem:[#allocation2 + $0xfd8] sm:$0xf]  ;;  %v8193_v47 = vor.u32 %v10053_v51, %v8192_v37  ;;  %3925 = vmatpush.bf16.msrb.mxu1 %v7937_v46  ;;  %3894 = vmatmul.bf16.vlgmr.msra.gmra.mxu2 %v10652_v4  ;;  %v3662_v37 = vadd.f32 %v3661_v3, %v636_v25  ;;  %v3674_v51 = vpop.f32.mrf.mxu1 }
 0x289   :  { %v10117_v53 = vld [vmem:[#allocation2 + $0xff4] sm:$0xf0] }
 0x28a   :  { %v7648_v48 = vld [vmem:[#allocation2 + $0x998] sm:$0xf]  ;;  %v8449_v54 = vor.u32 %v10117_v53, %v8448_v15  ;;  %3938 = vmatpush.bf16.msrb.mxu2 %v8193_v47  ;;  %3907 = vmatmul.bf16.vlgmr.msra.gmra.mxu3 %v10657_v6  ;;  %v3675_v46 = vadd.f32 %v3674_v51, %v3662_v37 }
 0x28b   :  { %v9917_v60 = vld [vmem:[#allocation2 + $0x9b4] sm:$0xf0] }
 0x28c   :  { %v7904_v50 = vld [vmem:[#allocation2 + $0xb98] sm:$0xf]  ;;  %v7649_v62 = vor.u32 %v9917_v60, %v7648_v48  ;;  %3951 = vmatpush.bf16.msrb.mxu3 %v8449_v54 }
 0x28d   :  { %v9981_v55 = vld [vmem:[#allocation2 + $0xbb4] sm:$0xf0] }
 0x28e   :  { %v8160_v57 = vld [vmem:[#allocation2 + $0xd98] sm:$0xf]  ;;  %v7905_v0 = vor.u32 %v9981_v55, %v7904_v50  ;;  %3913 = vmatpush.bf16.msrb.mxu0 %v7649_v62 }
 0x28f   :  { %v10045_v58 = vld [vmem:[#allocation2 + $0xdb4] sm:$0xf0] }
 0x290   :  { %v8416_v59 = vld [vmem:[#allocation2 + $0xf98] sm:$0xf]  ;;  %v8161_v1 = vor.u32 %v10045_v58, %v8160_v57  ;;  %3926 = vmatpush.bf16.msrb.mxu1 %v7905_v0  ;;  %v3687_v57 = vpop.f32.mrf.mxu2 }
 0x291   :  { %v10109_v61 = vld [vmem:[#allocation2 + $0xfb4] sm:$0xf0]  ;;  %v3688_v0 = vadd.f32 %v3687_v57, %v3675_v46  ;;  %v7170_v46 = vld [vmem:[#allocation2 + $0x5f8] sm:$0xf0] }
 0x292   :  { %v7616_v2 = vld [vmem:[#allocation2 + $0x958] sm:$0xf]  ;;  %v8417_v8 = vor.u32 %v10109_v61, %v8416_v59  ;;  %3939 = vmatpush.bf16.msrb.mxu2 %v8161_v1  ;;  %v3700_v1 = vpop.f32.mrf.mxu3 }
 0x293   :  { %v9909_v5 = vld [vmem:[#allocation2 + $0x974] sm:$0xf0] }
 0x294   :  { %v7872_v7 = vld [vmem:[#allocation2 + $0xb58] sm:$0xf]  ;;  %v7617_v14 = vor.u32 %v9909_v5, %v7616_v2  ;;  %3952 = vmatpush.bf16.msrb.mxu3 %v8417_v8  ;;  %v10760_v8 = vadd.f32 %v3700_v1, %v3688_v0  ;;  %v6882_v1 = vld [vmem:[#allocation2 + $0x3b8] sm:$0xf0] }
 0x295   :  { %v9973_v9 = vld [vmem:[#allocation2 + $0xb74] sm:$0xf0] }
 0x296   :  { %v8128_v10 = vld [vmem:[#allocation2 + $0xd58] sm:$0xf]  ;;  %v7873_v17 = vor.u32 %v9973_v9, %v7872_v7  ;;  %3914 = vmatpush.bf16.msrb.mxu0 %v7617_v14  ;;  %v3663_v9 = vpop.f32.mrf.mxu0 }
 0x297   :  { %v10037_v11 = vld [vmem:[#allocation2 + $0xd74] sm:$0xf0]  ;;  %v7394_v9 = vld [vmem:[#allocation2 + $0x7b8] sm:$0xf0] }
 0x298   :  { %v8384_v12 = vld [vmem:[#allocation2 + $0xf58] sm:$0xf]  ;;  %v8129_v18 = vor.u32 %v10037_v11, %v8128_v10  ;;  %3927 = vmatpush.bf16.msrb.mxu1 %v7873_v17 }
 0x299   :  { %v10101_v13 = vld [vmem:[#allocation2 + $0xf74] sm:$0xf0] }
 0x29a   :  { %v7584_v16 = vld [vmem:[#allocation2 + $0x918] sm:$0xf]  ;;  %v8385_v22 = vor.u32 %v10101_v13, %v8384_v12  ;;  %3940 = vmatpush.bf16.msrb.mxu2 %v8129_v18  ;;  %v3702_v51 = vpop.f32.mrf.mxu3 }
 0x29b   :  { %v9901_v19 = vld [vmem:[#allocation2 + $0x934] sm:$0xf0] }
 0x29c   :  { %v7840_v23 = vld [vmem:[#allocation2 + $0xb18] sm:$0xf]  ;;  %v7585_v31 = vor.u32 %v9901_v19, %v7584_v16  ;;  %3953 = vmatpush.bf16.msrb.mxu3 %v8385_v22  ;;  %v3676_v16 = vpop.f32.mrf.mxu1 }
 0x29d   :  { %v9965_v26 = vld [vmem:[#allocation2 + $0xb34] sm:$0xf0]  ;;  %v9713_v16 = vld [vmem:[#allocation2 + $0x35c] sm:$0xf] }
 0x29e   :  { %v8096_v27 = vld [vmem:[#allocation2 + $0xd18] sm:$0xf]  ;;  %v7841_v32 = vor.u32 %v9965_v26, %v7840_v23  ;;  %3915 = vmatpush.bf16.msrb.mxu0 %v7585_v31  ;;  %v3713_v51 = vpop.f32.mrf.mxu0 }
 0x29f   :  { %v10029_v28 = vld [vmem:[#allocation2 + $0xd34] sm:$0xf0] }
 0x2a0   :  { %v8352_v29 = vld [vmem:[#allocation2 + $0xf18] sm:$0xf]  ;;  %v8097_v33 = vor.u32 %v10029_v28, %v8096_v27  ;;  %3928 = vmatpush.bf16.msrb.mxu1 %v7841_v32 }
 0x2a1   :  { %v10093_v30 = vld [vmem:[#allocation2 + $0xf34] sm:$0xf0] }
 0x2a2   :  { %v7552_v34 = vld [vmem:[#allocation2 + $0x8d8] sm:$0xf]  ;;  %v8353_v39 = vor.u32 %v10093_v30, %v8352_v29  ;;  %3941 = vmatpush.bf16.msrb.mxu2 %v8097_v33  ;;  %v3689_v33 = vpop.f32.mrf.mxu2 }
 0x2a3   :  { %v9893_v35 = vld [vmem:[#allocation2 + $0x8f4] sm:$0xf0]  ;;  %v9769_v33 = vld [vmem:[#allocation2 + $0x51c] sm:$0xf] }
 0x2a4   :  { %v7808_v36 = vld [vmem:[#allocation2 + $0xad8] sm:$0xf]  ;;  %v7553_v47 = vor.u32 %v9893_v35, %v7552_v34  ;;  %3954 = vmatpush.bf16.msrb.mxu3 %v8353_v39  ;;  %v9665_v39 = vld [vmem:[#allocation2 + $0x1dc] sm:$0xf] }
 0x2a5   :  { %v9957_v40 = vld [vmem:[#allocation2 + $0xaf4] sm:$0xf0] }
 0x2a6   :  { %v8064_v15 = vld [vmem:[#allocation2 + $0xcd8] sm:$0xf]  ;;  %v7809_v48 = vor.u32 %v9957_v40, %v7808_v36  ;;  %3916 = vmatpush.bf16.msrb.mxu0 %v7553_v47  ;;  %v6658_v40 = vld [vmem:[#allocation2 + $0x1f8] sm:$0xf0] }
 0x2a7   :  { %v10021_v53 = vld [vmem:[#allocation2 + $0xcf4] sm:$0xf0] }
 0x2a8   :  { %v8320_v43 = vld [vmem:[#allocation2 + $0xed8] sm:$0xf]  ;;  %v8065_v60 = vor.u32 %v10021_v53, %v8064_v15  ;;  %3929 = vmatpush.bf16.msrb.mxu1 %v7809_v48  ;;  %v9729_v15 = vld [vmem:[#allocation2 + $0x3dc] sm:$0xf] }
 0x2a9   :  { %v10085_v45 = vld [vmem:[#allocation2 + $0xef4] sm:$0xf0] }
 0x2aa   :  { %v7520_v50 = vld [vmem:[#allocation2 + $0x898] sm:$0xf]  ;;  %v8321_v58 = vor.u32 %v10085_v45, %v8320_v43  ;;  %3942 = vmatpush.bf16.msrb.mxu2 %v8065_v60  ;;  %v6914_v43 = vld [vmem:[#allocation2 + $0x3f8] sm:$0xf0] }
 0x2ab   :  { %v9885_v54 = vld [vmem:[#allocation2 + $0x8b4] sm:$0xf0]  ;;  %v9793_v45 = vld [vmem:[#allocation2 + $0x5dc] sm:$0xf]  ;;  %v6917_v57 = vor.u32 %v9729_v15, %v6914_v43 }
 0x2ac   :  { %v7776_v55 = vld [vmem:[#allocation2 + $0xa98] sm:$0xf]  ;;  %v7521_v7 = vor.u32 %v9885_v54, %v7520_v50  ;;  %3955 = vmatpush.bf16.msrb.mxu3 %v8321_v58  ;;  %v9857_v60 = vld [vmem:[#allocation2 + $0x7dc] sm:$0xf]  ;;  %v7173_v58 = vor.u32 %v9793_v45, %v7170_v46  ;;  %v3714_v45 = vadd.f32 %v3713_v51, %v10760_v8  ;;  %v3726_v46 = vpop.f32.mrf.mxu1 }
 0x2ad   :  { %v9949_v59 = vld [vmem:[#allocation2 + $0xab4] sm:$0xf0]  ;;  %v7426_v50 = vld [vmem:[#allocation2 + $0x7f8] sm:$0xf0] }
 0x2ae   :  { %v8032_v61 = vld [vmem:[#allocation2 + $0xc98] sm:$0xf]  ;;  %v7777_v10 = vor.u32 %v9949_v59, %v7776_v55  ;;  %3917 = vmatpush.bf16.msrb.mxu0 %v7521_v7  ;;  %v6661_v55 = vor.u32 %v9665_v39, %v6658_v40  ;;  %v9657_v59 = vld [vmem:[#allocation2 + $0x19c] sm:$0xf]  ;;  %v7429_v0 = vor.u32 %v9857_v60, %v7426_v50 }
 0x2af   :  { %v10013_v62 = vld [vmem:[#allocation2 + $0xcb4] sm:$0xf0]  ;;  %v9849_v7 = vld [vmem:[#allocation2 + $0x79c] sm:$0xf] }
 0x2b0   :  { %v8288_v2 = vld [vmem:[#allocation2 + $0xe98] sm:$0xf]  ;;  %v8033_v11 = vor.u32 %v10013_v62, %v8032_v61  ;;  %3930 = vmatpush.bf16.msrb.mxu1 %v7777_v10  ;;  %v6626_v61 = vld [vmem:[#allocation2 + $0x1b8] sm:$0xf0] }
 0x2b1   :  { %v10077_v5 = vld [vmem:[#allocation2 + $0xeb4] sm:$0xf0]  ;;  %v9721_v62 = vld [vmem:[#allocation2 + $0x39c] sm:$0xf]  ;;  %v6629_v10 = vor.u32 %v9657_v59, %v6626_v61 }
 0x2b2   :  { %v7488_v12 = vld [vmem:[#allocation2 + $0x858] sm:$0xf]  ;;  %v8289_v17 = vor.u32 %v10077_v5, %v8288_v2  ;;  %3943 = vmatpush.bf16.msrb.mxu2 %v8033_v11  ;;  %v9785_v2 = vld [vmem:[#allocation2 + $0x59c] sm:$0xf]  ;;  %v6885_v11 = vor.u32 %v9721_v62, %v6882_v1 }
 0x2b3   :  { %v9877_v13 = vld [vmem:[#allocation2 + $0x874] sm:$0xf0]  ;;  %v7138_v5 = vld [vmem:[#allocation2 + $0x5b8] sm:$0xf0] }
 0x2b4   :  { %v7744_v14 = vld [vmem:[#allocation2 + $0xa58] sm:$0xf]  ;;  %v7489_v26 = vor.u32 %v9877_v13, %v7488_v12  ;;  %3956 = vmatpush.bf16.msrb.mxu3 %v8289_v17  ;;  %v7141_v12 = vor.u32 %v9785_v2, %v7138_v5  ;;  %v9649_v13 = vld [vmem:[#allocation2 + $0x15c] sm:$0xf]  ;;  %v7397_v17 = vor.u32 %v9849_v7, %v7394_v9  ;;  %v3739_v2 = vpop.f32.mrf.mxu2 }
 0x2b5   :  { %v9941_v18 = vld [vmem:[#allocation2 + $0xa74] sm:$0xf0]  ;;  %v9633_v15 = vld [vmem:[#allocation2 + $0xdc] sm:$0xf] }
 0x2b6   :  { %v8000_v19 = vld [vmem:[#allocation2 + $0xc58] sm:$0xf]  ;;  %v7745_v29 = vor.u32 %v9941_v18, %v7744_v14  ;;  %3918 = vmatpush.bf16.msrb.mxu0 %v7489_v26  ;;  %v6594_v14 = vld [vmem:[#allocation2 + $0x178] sm:$0xf0] }
 0x2b7   :  { %v10005_v23 = vld [vmem:[#allocation2 + $0xc74] sm:$0xf0]  ;;  %v6850_v18 = vld [vmem:[#allocation2 + $0x378] sm:$0xf0]  ;;  %v6597_v26 = vor.u32 %v9649_v13, %v6594_v14 }
 0x2b8   :  { %v8256_v25 = vld [vmem:[#allocation2 + $0xe58] sm:$0xf]  ;;  %v8001_v30 = vor.u32 %v10005_v23, %v8000_v19  ;;  %3931 = vmatpush.bf16.msrb.mxu1 %v7745_v29  ;;  %v9777_v19 = vld [vmem:[#allocation2 + $0x55c] sm:$0xf] }
 0x2b9   :  { %v10069_v22 = vld [vmem:[#allocation2 + $0xe74] sm:$0xf0]  ;;  %v7106_v23 = vld [vmem:[#allocation2 + $0x578] sm:$0xf0] }
 0x2ba   :  { %v7456_v27 = vld [vmem:[#allocation2 + $0x818] sm:$0xf]  ;;  %v8257_v34 = vor.u32 %v10069_v22, %v8256_v25  ;;  %3944 = vmatpush.bf16.msrb.mxu2 %v8001_v30  ;;  %v9841_v25 = vld [vmem:[#allocation2 + $0x75c] sm:$0xf] }
 0x2bb   :  { %v9869_v28 = vld [vmem:[#allocation2 + $0x834] sm:$0xf0]  ;;  %v7362_v22 = vld [vmem:[#allocation2 + $0x778] sm:$0xf0] }
 0x2bc   :  { %v7712_v31 = vld [vmem:[#allocation2 + $0xa18] sm:$0xf]  ;;  %v7457_v53 = vor.u32 %v9869_v28, %v7456_v27  ;;  %3957 = vmatpush.bf16.msrb.mxu3 %v8257_v34  ;;  %v6853_v27 = vor.u32 %v9713_v16, %v6850_v18  ;;  %v7109_v28 = vor.u32 %v9777_v19, %v7106_v23  ;;  %v9641_v29 = vld [vmem:[#allocation2 + $0x11c] sm:$0xf] }
 0x2bd   :  { %v9933_v3 = vld [vmem:[#allocation2 + $0xa34] sm:$0xf0]  ;;  %v6562_v30 = vld [vmem:[#allocation2 + $0x138] sm:$0xf0] }
 0x2be   :  { %v7968_v32 = vld [vmem:[#allocation2 + $0xc18] sm:$0xf]  ;;  %v7713_v47 = vor.u32 %v9933_v3, %v7712_v31  ;;  %3919 = vmatpush.bf16.msrb.mxu0 %v7457_v53  ;;  %v9705_v31 = vld [vmem:[#allocation2 + $0x31c] sm:$0xf]  ;;  %v7365_v3 = vor.u32 %v9841_v25, %v7362_v22 }
 0x2bf   :  { %v9997_v35 = vld [vmem:[#allocation2 + $0xc34] sm:$0xf0]  ;;  %v7074_v34 = vld [vmem:[#allocation2 + $0x538] sm:$0xf0] }
 0x2c0   :  { %v8224_v36 = vld [vmem:[#allocation2 + $0xe18] sm:$0xf]  ;;  %v7969_v48 = vor.u32 %v9997_v35, %v7968_v32  ;;  %3932 = vmatpush.bf16.msrb.mxu1 %v7713_v47  ;;  %v6818_v32 = vld [vmem:[#allocation2 + $0x338] sm:$0xf0]  ;;  %v7077_v40 = vor.u32 %v9769_v33, %v7074_v34 }
 0x2c1   :  { %v10061_v37 = vld [vmem:[#allocation2 + $0xe34] sm:$0xf0]  ;;  %3920 = vmatmul.bf16.vlgmr.msrb.gmra.mxu0 %v10675_v41  ;;  %v9833_v35 = vld [vmem:[#allocation2 + $0x71c] sm:$0xf]  ;;  %v6821_v39 = vor.u32 %v9705_v31, %v6818_v32 }
 0x2c2   :  { %v8225_v54 = vor.u32 %v10061_v37, %v8224_v36  ;;  %3945 = vmatpush.bf16.msrb.mxu2 %v7969_v48  ;;  %3964 = vmatpush.bf16.msra.mxu0 %v6661_v55  ;;  %v7330_v36 = vld [vmem:[#allocation2 + $0x738] sm:$0xf0]  ;;  %v6565_v37 = vor.u32 %v9641_v29, %v6562_v30 }
 0x2c3   :  { %3933 = vmatmul.bf16.vlgmr.msrb.gmra.mxu1 %v10679_v44  ;;  %v6530_v53 = vld [vmem:[#allocation2 + $0xf8] sm:$0xf0]  ;;  %v7333_v47 = vor.u32 %v9833_v35, %v7330_v36 }
 0x2c4   :  { %3958 = vmatpush.bf16.msrb.mxu3 %v8225_v54  ;;  %3977 = vmatpush.bf16.msra.mxu1 %v6917_v57  ;;  %v9697_v43 = vld [vmem:[#allocation2 + $0x2dc] sm:$0xf]  ;;  %v3727_v57 = vadd.f32 %v3726_v46, %v3714_v45 }
 0x2c5   :  { %3946 = vmatmul.bf16.vlgmr.msrb.gmra.mxu2 %v10673_v38  ;;  %v6786_v48 = vld [vmem:[#allocation2 + $0x2f8] sm:$0xf0] }
 0x2c6   :  { %3990 = vmatpush.bf16.msra.mxu2 %v7173_v58  ;;  %3965 = vmatpush.bf16.msra.mxu0 %v6629_v10  ;;  %v9761_v60 = vld [vmem:[#allocation2 + $0x4dc] sm:$0xf]  ;;  %v6533_v58 = vor.u32 %v9633_v15, %v6530_v53  ;;  %v6789_v59 = vor.u32 %v9697_v43, %v6786_v48  ;;  %v3740_v10 = vadd.f32 %v3739_v2, %v3727_v57 }
 0x2c7   :  { %3959 = vmatmul.bf16.vlgmr.msrb.gmra.mxu3 %v10677_v42  ;;  %v7042_v50 = vld [vmem:[#allocation2 + $0x4f8] sm:$0xf0] }
 0x2c8   :  { %4003 = vmatpush.bf16.msra.mxu3 %v7429_v0  ;;  %3978 = vmatpush.bf16.msra.mxu1 %v6885_v11  ;;  %v9825_v54 = vld [vmem:[#allocation2 + $0x6dc] sm:$0xf]  ;;  %v7045_v61 = vor.u32 %v9761_v60, %v7042_v50  ;;  %v3752_v11 = vpop.f32.mrf.mxu3 }
 0x2c9   :  { %v7298_v55 = vld [vmem:[#allocation2 + $0x6f8] sm:$0xf0]  ;;  %v10767_v16 = vadd.f32 %v3752_v11, %v3740_v10 }
 0x2ca   :  { %3991 = vmatpush.bf16.msra.mxu2 %v7141_v12  ;;  %3966 = vmatpush.bf16.msra.mxu0 %v6597_v26  ;;  %v9625_v62 = vld [vmem:[#allocation2 + $0x9c] sm:$0xf]  ;;  %v7301_v8 = vor.u32 %v9825_v54, %v7298_v55  ;;  %v3728_v26 = vpop.f32.mrf.mxu1 }
 0x2cb   :  { %v6498_v0 = vld [vmem:[#allocation2 + $0xb8] sm:$0xf0]  ;;  %vm4072_vm4 = vcmp.gt.f32.partialorder %v10767_v16, 0.0 }
 0x2cc   :  { %4004 = vmatpush.bf16.msra.mxu3 %v7397_v17  ;;  %3979 = vmatpush.bf16.msra.mxu1 %v6853_v27  ;;  %v9689_v1 = vld [vmem:[#allocation2 + $0x29c] sm:$0xf]  ;;  %v6501_v14 = vor.u32 %v9625_v62, %v6498_v0  ;;  %v3715_v17 = vpop.f32.mrf.mxu0 }
 0x2cd   :  { %v6754_v5 = vld [vmem:[#allocation2 + $0x2b8] sm:$0xf0] }
 0x2ce   :  { %3992 = vmatpush.bf16.msra.mxu2 %v7109_v28  ;;  %3967 = vmatpush.bf16.msra.mxu0 %v6565_v37  ;;  %v9753_v7 = vld [vmem:[#allocation2 + $0x49c] sm:$0xf]  ;;  %v6757_v18 = vor.u32 %v9689_v1, %v6754_v5 }
 0x2cf   :  { %v7010_v9 = vld [vmem:[#allocation2 + $0x4b8] sm:$0xf0] }
 0x2d0   :  { %4005 = vmatpush.bf16.msra.mxu3 %v7365_v3  ;;  %3980 = vmatpush.bf16.msra.mxu1 %v6821_v39  ;;  %v9817_v12 = vld [vmem:[#allocation2 + $0x69c] sm:$0xf]  ;;  %v7013_v19 = vor.u32 %v9753_v7, %v7010_v9  ;;  %v3754_v46 = vpop.f32.mrf.mxu3 }
 0x2d1   :  { %v7266_v13 = vld [vmem:[#allocation2 + $0x6b8] sm:$0xf0] }
 0x2d2   :  { %3993 = vmatpush.bf16.msra.mxu2 %v7077_v40  ;;  %3968 = vmatpush.bf16.msra.mxu0 %v6533_v58  ;;  %v9617_v23 = vld [vmem:[#allocation2 + $0x5c] sm:$0xf]  ;;  %v7269_v27 = vor.u32 %v9817_v12, %v7266_v13  ;;  %v3741_v40 = vpop.f32.mrf.mxu2 }
 0x2d3   :  { %v6466_v25 = vld [vmem:[#allocation2 + $0x78] sm:$0xf0] }
 0x2d4   :  { %4006 = vmatpush.bf16.msra.mxu3 %v7333_v47  ;;  %3981 = vmatpush.bf16.msra.mxu1 %v6789_v59  ;;  %v9681_v22 = vld [vmem:[#allocation2 + $0x25c] sm:$0xf]  ;;  %v6469_v32 = vor.u32 %v9617_v23, %v6466_v25 }
 0x2d5   :  { %v6722_v28 = vld [vmem:[#allocation2 + $0x278] sm:$0xf0] }
 0x2d6   :  { %3994 = vmatpush.bf16.msra.mxu2 %v7045_v61  ;;  %v9745_v29 = vld [vmem:[#allocation2 + $0x45c] sm:$0xf]  ;;  %3969 = vmatpush.bf16.msra.mxu0 %v6501_v14  ;;  %v6725_v35 = vor.u32 %v9681_v22, %v6722_v28 }
 0x2d7   :  { %v6978_v30 = vld [vmem:[#allocation2 + $0x478] sm:$0xf0] }
 0x2d8   :  { %4007 = vmatpush.bf16.msra.mxu3 %v7301_v8  ;;  %v9809_v31 = vld [vmem:[#allocation2 + $0x65c] sm:$0xf]  ;;  %3982 = vmatpush.bf16.msra.mxu1 %v6757_v18  ;;  %v6981_v36 = vor.u32 %v9745_v29, %v6978_v30 }
 0x2d9   :  { %v7234_v3 = vld [vmem:[#allocation2 + $0x678] sm:$0xf0] }
 0x2da   :  { %v9609_v33 = vld [vmem:[#allocation2 + $0x1c] sm:$0xf]  ;;  %3995 = vmatpush.bf16.msra.mxu2 %v7013_v19  ;;  %v7237_v15 = vor.u32 %v9809_v31, %v7234_v3  ;;  %3970 = vmatpush.bf16.msra.mxu0 %v6469_v32 }
 0x2db   :  { %v6434_v34 = vld [vmem:[#allocation2 + $0x38] sm:$0xf0] }
 0x2dc   :  { %v9673_v37 = vld [vmem:[#allocation2 + $0x21c] sm:$0xf]  ;;  %4008 = vmatpush.bf16.msra.mxu3 %v7269_v27  ;;  %v6437_v50 = vor.u32 %v9609_v33, %v6434_v34  ;;  %3983 = vmatpush.bf16.msra.mxu1 %v6725_v35 }
 0x2dd   :  { %v6690_v51 = vld [vmem:[#allocation2 + $0x238] sm:$0xf0] }
 0x2de   :  { %v9737_v39 = vld [vmem:[#allocation2 + $0x41c] sm:$0xf]  ;;  %3996 = vmatpush.bf16.msra.mxu2 %v6981_v36  ;;  %v6693_v58 = vor.u32 %v9673_v37, %v6690_v51  ;;  %3971 = vmatpush.bf16.msra.mxu0 %v6437_v50 }
 0x2df   :  { %v6946_v53 = vld [vmem:[#allocation2 + $0x438] sm:$0xf0] }
 0x2e0   :  { %v9801_v43 = vld [vmem:[#allocation2 + $0x61c] sm:$0xf]  ;;  %v6949_v59 = vor.u32 %v9737_v39, %v6946_v53  ;;  %4009 = vmatpush.bf16.msra.mxu3 %v7237_v15  ;;  %3984 = vmatpush.bf16.msra.mxu1 %v6693_v58  ;;  %v10773_v53 = vpop.f32.mrf.mxu0 }
 0x2e1   :  { %v7202_v45 = vld [vmem:[#allocation2 + $0x638] sm:$0xf0]  ;;  %3972 = vmatmul.bf16.vlgmr.msra.gmra.mxu0 %v10660_v20 }
 0x2e2   :  { %v9921_v47 = vld [vmem:[#allocation2 + $0x9dc] sm:$0xf]  ;;  %v7205_v0 = vor.u32 %v9801_v43, %v7202_v45  ;;  %3997 = vmatpush.bf16.msra.mxu2 %v6949_v59 }
 0x2e3   :  { %v7682_v48 = vld [vmem:[#allocation2 + $0x9f8] sm:$0xf0]  ;;  %3985 = vmatmul.bf16.vlgmr.msra.gmra.mxu1 %v10663_v21 }
 0x2e4   :  { %v9985_v60 = vld [vmem:[#allocation2 + $0xbdc] sm:$0xf]  ;;  %v7685_v1 = vor.u32 %v9921_v47, %v7682_v48  ;;  %4010 = vmatpush.bf16.msra.mxu3 %v7205_v0  ;;  %v10775_v48 = vpop.f32.mrf.mxu1 }
 0x2e5   :  { %v7938_v54 = vld [vmem:[#allocation2 + $0xbf8] sm:$0xf0]  ;;  %3998 = vmatmul.bf16.vlgmr.msra.gmra.mxu2 %v10652_v4 }
 0x2e6   :  { %v10049_v55 = vld [vmem:[#allocation2 + $0xddc] sm:$0xf]  ;;  %v7941_v2 = vor.u32 %v9985_v60, %v7938_v54  ;;  %4016 = vmatpush.bf16.msrb.mxu0 %v7685_v1 }
 0x2e7   :  { %v8194_v57 = vld [vmem:[#allocation2 + $0xdf8] sm:$0xf0]  ;;  %4011 = vmatmul.bf16.vlgmr.msra.gmra.mxu3 %v10657_v6 }
 0x2e8   :  { %v10113_v61 = vld [vmem:[#allocation2 + $0xfdc] sm:$0xf]  ;;  %v8197_v8 = vor.u32 %v10049_v55, %v8194_v57  ;;  %4029 = vmatpush.bf16.msrb.mxu1 %v7941_v2 }
 0x2e9   :  { %v8450_v62 = vld [vmem:[#allocation2 + $0xff8] sm:$0xf0] }
 0x2ea   :  { %v9913_v5 = vld [vmem:[#allocation2 + $0x99c] sm:$0xf]  ;;  %v8453_v10 = vor.u32 %v10113_v61, %v8450_v62  ;;  %4042 = vmatpush.bf16.msrb.mxu2 %v8197_v8  ;;  %v10777_v8 = vpop.f32.mrf.mxu2 }
 0x2eb   :  { %v7650_v7 = vld [vmem:[#allocation2 + $0x9b8] sm:$0xf0] }
 0x2ec   :  { %v9977_v9 = vld [vmem:[#allocation2 + $0xb9c] sm:$0xf]  ;;  %v7653_v18 = vor.u32 %v9913_v5, %v7650_v7  ;;  %4055 = vmatpush.bf16.msrb.mxu3 %v8453_v10 }
 0x2ed   :  { %v7906_v11 = vld [vmem:[#allocation2 + $0xbb8] sm:$0xf0] }
 0x2ee   :  { %v10041_v12 = vld [vmem:[#allocation2 + $0xd9c] sm:$0xf]  ;;  %v7909_v19 = vor.u32 %v9977_v9, %v7906_v11  ;;  %4017 = vmatpush.bf16.msrb.mxu0 %v7653_v18  ;;  %v10779_v11 = vpop.f32.mrf.mxu3 }
 0x2ef   :  { %v8162_v13 = vld [vmem:[#allocation2 + $0xdb8] sm:$0xf0] }
 0x2f0   :  { %v10105_v14 = vld [vmem:[#allocation2 + $0xf9c] sm:$0xf]  ;;  %v8165_v23 = vor.u32 %v10041_v12, %v8162_v13  ;;  %4030 = vmatpush.bf16.msrb.mxu1 %v7909_v19 }
 0x2f1   :  { %v8418_v17 = vld [vmem:[#allocation2 + $0xfb8] sm:$0xf0] }
 0x2f2   :  { %v9905_v25 = vld [vmem:[#allocation2 + $0x95c] sm:$0xf]  ;;  %v8421_v27 = vor.u32 %v10105_v14, %v8418_v17  ;;  %4043 = vmatpush.bf16.msrb.mxu2 %v8165_v23  ;;  %v3767_v17 = vpop.f32.mrf.mxu0 }
 0x2f3   :  { %v7618_v22 = vld [vmem:[#allocation2 + $0x978] sm:$0xf0]  ;;  %v10240_v17 = vld [vmem:[#allocation6 + $0x3cc] sm:$0xf0] }
 0x2f4   :  { %v9969_v26 = vld [vmem:[#allocation2 + $0xb5c] sm:$0xf]  ;;  %v7621_v32 = vor.u32 %v9905_v25, %v7618_v22  ;;  %4056 = vmatpush.bf16.msrb.mxu3 %v8421_v27 }
 0x2f5   :  { %v7874_v28 = vld [vmem:[#allocation2 + $0xb78] sm:$0xf0] }
 0x2f6   :  { %v10033_v29 = vld [vmem:[#allocation2 + $0xd5c] sm:$0xf]  ;;  %v7877_v33 = vor.u32 %v9969_v26, %v7874_v28  ;;  %4018 = vmatpush.bf16.msrb.mxu0 %v7621_v32  ;;  %v3780_v26 = vpop.f32.mrf.mxu1 }
 0x2f7   :  { %v8130_v30 = vld [vmem:[#allocation2 + $0xd78] sm:$0xf0]  ;;  %v8664_v26 = vld [vmem:[#allocation6 + $0x1a0] sm:$0xf] }
 0x2f8   :  { %v10097_v31 = vld [vmem:[#allocation2 + $0xf5c] sm:$0xf]  ;;  %v8133_v34 = vor.u32 %v10033_v29, %v8130_v30  ;;  %4031 = vmatpush.bf16.msrb.mxu1 %v7877_v33 }
 0x2f9   :  { %v8386_v3 = vld [vmem:[#allocation2 + $0xf78] sm:$0xf0] }
 0x2fa   :  { %v9897_v35 = vld [vmem:[#allocation2 + $0x91c] sm:$0xf]  ;;  %v8389_v37 = vor.u32 %v10097_v31, %v8386_v3  ;;  %4044 = vmatpush.bf16.msrb.mxu2 %v8133_v34 }
 0x2fb   :  { %v7586_v36 = vld [vmem:[#allocation2 + $0x938] sm:$0xf0] }
 0x2fc   :  { %v9961_v4 = vld [vmem:[#allocation2 + $0xb1c] sm:$0xf]  ;;  %v7589_v6 = vor.u32 %v9897_v35, %v7586_v36  ;;  %4057 = vmatpush.bf16.msrb.mxu3 %v8389_v37 }
 0x2fd   :  { %v7842_v51 = vld [vmem:[#allocation2 + $0xb38] sm:$0xf0] }
 0x2fe   :  { %v10025_v39 = vld [vmem:[#allocation2 + $0xd1c] sm:$0xf]  ;;  %v7845_v21 = vor.u32 %v9961_v4, %v7842_v51  ;;  %4019 = vmatpush.bf16.msrb.mxu0 %v7589_v6 }
 0x2ff   :  { %v8098_v40 = vld [vmem:[#allocation2 + $0xd38] sm:$0xf0] }
 0x300   :  { %v10089_v15 = vld [vmem:[#allocation2 + $0xf1c] sm:$0xf]  ;;  %v8101_v43 = vor.u32 %v10025_v39, %v8098_v40  ;;  %4032 = vmatpush.bf16.msrb.mxu1 %v7845_v21  ;;  %v3793_v39 = vpop.f32.mrf.mxu2  ;;  %v3806_v21 = vpop.f32.mrf.mxu3 }
 0x301   :  { %v8354_v20 = vld [vmem:[#allocation2 + $0xf38] sm:$0xf0]  ;;  %v8904_v39 = vld [vmem:[#allocation6 + $0x380] sm:$0xf]  ;;  %v10132_v21 = vld [vmem:[#allocation6 + $0x6c] sm:$0xf0] }
 0x302   :  { %v9889_v45 = vld [vmem:[#allocation2 + $0x8dc] sm:$0xf]  ;;  %v8357_v60 = vor.u32 %v10089_v15, %v8354_v20  ;;  %4045 = vmatpush.bf16.msrb.mxu2 %v8101_v43  ;;  %v8568_v43 = vld [vmem:[#allocation6 + $0xe0] sm:$0xf] }
 0x303   :  { %v7554_v46 = vld [vmem:[#allocation2 + $0x8f8] sm:$0xf0] }
 0x304   :  { %v9953_v47 = vld [vmem:[#allocation2 + $0xadc] sm:$0xf]  ;;  %v7557_v59 = vor.u32 %v9889_v45, %v7554_v46  ;;  %4058 = vmatpush.bf16.msrb.mxu3 %v8357_v60  ;;  %v10148_v45 = vld [vmem:[#allocation6 + $0xec] sm:$0xf0]  ;;  %v8696_v46 = vld [vmem:[#allocation6 + $0x1e0] sm:$0xf] }
 0x305   :  { %v7810_v50 = vld [vmem:[#allocation2 + $0xaf8] sm:$0xf0]  ;;  %v10180_v60 = vld [vmem:[#allocation6 + $0x1ec] sm:$0xf0] }
 0x306   :  { %v10017_v54 = vld [vmem:[#allocation2 + $0xcdc] sm:$0xf]  ;;  %v7813_v61 = vor.u32 %v9953_v47, %v7810_v50  ;;  %4020 = vmatpush.bf16.msrb.mxu0 %v7557_v59  ;;  %v8824_v50 = vld [vmem:[#allocation6 + $0x2e0] sm:$0xf]  ;;  %v10244_v59 = vld [vmem:[#allocation6 + $0x3ec] sm:$0xf0] }
 0x307   :  { %v8066_v55 = vld [vmem:[#allocation2 + $0xcf8] sm:$0xf0] }
 0x308   :  { %v10081_v57 = vld [vmem:[#allocation2 + $0xedc] sm:$0xf]  ;;  %v8069_v62 = vor.u32 %v10017_v54, %v8066_v55  ;;  %4033 = vmatpush.bf16.msrb.mxu1 %v7813_v61  ;;  %v10212_v54 = vld [vmem:[#allocation6 + $0x2ec] sm:$0xf0] }
 0x309   :  { %v8322_v58 = vld [vmem:[#allocation2 + $0xef8] sm:$0xf0] }
 0x30a   :  { %v9881_v0 = vld [vmem:[#allocation2 + $0x89c] sm:$0xf]  ;;  %v8325_v5 = vor.u32 %v10081_v57, %v8322_v58  ;;  %4046 = vmatpush.bf16.msrb.mxu2 %v8069_v62  ;;  %v8952_v58 = vld [vmem:[#allocation6 + $0x3e0] sm:$0xf]  ;;  %v8569_v62 = vor.u32 %v10148_v45, %v8568_v43  ;;  %v10787_v45 = vpop.f32.mrf.mxu1 }
 0x30b   :  { %v7522_v1 = vld [vmem:[#allocation2 + $0x8b8] sm:$0xf0]  ;;  %v8632_v43 = vld [vmem:[#allocation6 + $0x160] sm:$0xf] }
 0x30c   :  { %v9945_v2 = vld [vmem:[#allocation2 + $0xa9c] sm:$0xf]  ;;  %v7525_v14 = vor.u32 %v9881_v0, %v7522_v1  ;;  %4059 = vmatpush.bf16.msrb.mxu3 %v8325_v5  ;;  %v8697_v0 = vor.u32 %v10180_v60, %v8696_v46  ;;  %v8825_v1 = vor.u32 %v10212_v54, %v8824_v50  ;;  %v10144_v5 = vld [vmem:[#allocation6 + $0xcc] sm:$0xf0]  ;;  %v8760_v60 = vld [vmem:[#allocation6 + $0x260] sm:$0xf] }
 0x30d   :  { %v7778_v7 = vld [vmem:[#allocation2 + $0xab8] sm:$0xf0]  ;;  %v10196_v50 = vld [vmem:[#allocation6 + $0x26c] sm:$0xf0]  ;;  %v8888_v54 = vld [vmem:[#allocation6 + $0x360] sm:$0xf] }
 0x30e   :  { %v10009_v9 = vld [vmem:[#allocation2 + $0xc9c] sm:$0xf]  ;;  %v7781_v18 = vor.u32 %v9945_v2, %v7778_v7  ;;  %4021 = vmatpush.bf16.msrb.mxu0 %v7525_v14  ;;  %v8552_v2 = vld [vmem:[#allocation6 + $0xc0] sm:$0xf] }
 0x30f   :  { %v8034_v10 = vld [vmem:[#allocation2 + $0xcb8] sm:$0xf0]  ;;  %v8680_v7 = vld [vmem:[#allocation6 + $0x1c0] sm:$0xf] }
 0x310   :  { %v10073_v12 = vld [vmem:[#allocation2 + $0xe9c] sm:$0xf]  ;;  %v8037_v19 = vor.u32 %v10009_v9, %v8034_v10  ;;  %4034 = vmatpush.bf16.msrb.mxu1 %v7781_v18  ;;  %v8953_v9 = vor.u32 %v10244_v59, %v8952_v58  ;;  %v10176_v10 = vld [vmem:[#allocation6 + $0x1cc] sm:$0xf0]  ;;  %v8936_v14 = vld [vmem:[#allocation6 + $0x3c0] sm:$0xf]  ;;  %v8553_v18 = vor.u32 %v10144_v5, %v8552_v2  ;;  %v10790_v2 = vpop.f32.mrf.mxu2 }
 0x311   :  { %v8290_v13 = vld [vmem:[#allocation2 + $0xeb8] sm:$0xf0] }
 0x312   :  { %v9873_v23 = vld [vmem:[#allocation2 + $0x85c] sm:$0xf]  ;;  %v8293_v27 = vor.u32 %v10073_v12, %v8290_v13  ;;  %4047 = vmatpush.bf16.msrb.mxu2 %v8037_v19  ;;  %v8808_v12 = vld [vmem:[#allocation6 + $0x2c0] sm:$0xf]  ;;  %v10208_v13 = vld [vmem:[#allocation6 + $0x2cc] sm:$0xf0]  ;;  %v8681_v19 = vor.u32 %v10176_v10, %v8680_v7 }
 0x313   :  { %v7490_v25 = vld [vmem:[#allocation2 + $0x878] sm:$0xf0]  ;;  %v10160_v7 = vld [vmem:[#allocation6 + $0x14c] sm:$0xf0] }
 0x314   :  { %v9937_v22 = vld [vmem:[#allocation2 + $0xa5c] sm:$0xf]  ;;  %v7493_v32 = vor.u32 %v9873_v23, %v7490_v25  ;;  %4060 = vmatpush.bf16.msrb.mxu3 %v8293_v27  ;;  %v8809_v23 = vor.u32 %v10208_v13, %v8808_v12  ;;  %v8536_v25 = vld [vmem:[#allocation6 + $0xa0] sm:$0xf]  ;;  %v8937_v27 = vor.u32 %v10240_v17, %v8936_v14  ;;  %v10192_v10 = vld [vmem:[#allocation6 + $0x24c] sm:$0xf0]  ;;  %v10792_v12 = vpop.f32.mrf.mxu3 }
 0x315   :  { %v7746_v28 = vld [vmem:[#allocation2 + $0xa78] sm:$0xf0]  ;;  %v8872_v13 = vld [vmem:[#allocation6 + $0x340] sm:$0xf]  ;;  %v10224_v14 = vld [vmem:[#allocation6 + $0x34c] sm:$0xf0] }
 0x316   :  { %v10001_v29 = vld [vmem:[#allocation2 + $0xc5c] sm:$0xf]  ;;  %v7749_v35 = vor.u32 %v9937_v22, %v7746_v28  ;;  %4022 = vmatpush.bf16.msrb.mxu0 %v7493_v32  ;;  %v10140_v22 = vld [vmem:[#allocation6 + $0xac] sm:$0xf0]  ;;  %v4077_v17 = vmul.f32 0.2, %v10721_v49 }
 0x317   :  { %v8002_v30 = vld [vmem:[#allocation2 + $0xc78] sm:$0xf0]  ;;  %v10172_v28 = vld [vmem:[#allocation6 + $0x1ac] sm:$0xf0]  ;;  %v8537_v32 = vor.u32 %v10140_v22, %v8536_v25 }
 0x318   :  { %v10065_v31 = vld [vmem:[#allocation2 + $0xe5c] sm:$0xf]  ;;  %v8005_v36 = vor.u32 %v10001_v29, %v8002_v30  ;;  %4035 = vmatpush.bf16.msrb.mxu1 %v7749_v35  ;;  %v8792_v29 = vld [vmem:[#allocation6 + $0x2a0] sm:$0xf]  ;;  %v10204_v30 = vld [vmem:[#allocation6 + $0x2ac] sm:$0xf0] }
 0x319   :  { %v8258_v3 = vld [vmem:[#allocation2 + $0xe78] sm:$0xf0]  ;;  %v8520_v35 = vld [vmem:[#allocation6 + $0x80] sm:$0xf] }
 0x31a   :  { %v9865_v33 = vld [vmem:[#allocation2 + $0x81c] sm:$0xf]  ;;  %v8261_v40 = vor.u32 %v10065_v31, %v8258_v3  ;;  %4048 = vmatpush.bf16.msrb.mxu2 %v8005_v36  ;;  %v8920_v31 = vld [vmem:[#allocation6 + $0x3a0] sm:$0xf]  ;;  %v10236_v3 = vld [vmem:[#allocation6 + $0x3ac] sm:$0xf0] }
 0x31b   :  { %v7458_v34 = vld [vmem:[#allocation2 + $0x838] sm:$0xf0]  ;;  %v8648_v36 = vld [vmem:[#allocation6 + $0x180] sm:$0xf] }
 0x31c   :  { %v9929_v4 = vld [vmem:[#allocation2 + $0xa1c] sm:$0xf]  ;;  %v7461_v47 = vor.u32 %v9865_v33, %v7458_v34  ;;  %4061 = vmatpush.bf16.msrb.mxu3 %v8261_v40  ;;  %v8665_v33 = vor.u32 %v10172_v28, %v8664_v26  ;;  %v8793_v34 = vor.u32 %v10204_v30, %v8792_v29  ;;  %v8472_v26 = vld [vmem:[#allocation6 + $0x20] sm:$0xf]  ;;  %v3832_v29 = vpop.f32.mrf.mxu1  ;;  %v8873_v30 = vor.u32 %v10224_v14, %v8872_v13  ;;  %v10272_v13 = vld [vmem:[#allocation6 + $0x4cc] sm:$0xf0] }
 0x31d   :  { %v7714_v37 = vld [vmem:[#allocation2 + $0xa38] sm:$0xf0]  ;;  %v8600_v28 = vld [vmem:[#allocation6 + $0x120] sm:$0xf] }
 0x31e   :  { %v9993_v51 = vld [vmem:[#allocation2 + $0xc1c] sm:$0xf]  ;;  %v7717_v55 = vor.u32 %v9929_v4, %v7714_v37  ;;  %4023 = vmatpush.bf16.msrb.mxu0 %v7461_v47  ;;  %v8921_v4 = vor.u32 %v10236_v3, %v8920_v31  ;;  %v10168_v37 = vld [vmem:[#allocation6 + $0x18c] sm:$0xf0]  ;;  %v8728_v3 = vld [vmem:[#allocation6 + $0x220] sm:$0xf] }
 0x31f   :  { %v7970_v15 = vld [vmem:[#allocation2 + $0xc38] sm:$0xf0]  ;;  %v10164_v47 = vld [vmem:[#allocation6 + $0x16c] sm:$0xf0]  ;;  %v9192_v14 = vld [vmem:[#allocation6 + $0x5c0] sm:$0xf] }
 0x320   :  { %v10057_v20 = vld [vmem:[#allocation2 + $0xe1c] sm:$0xf]  ;;  %v7973_v57 = vor.u32 %v9993_v51, %v7970_v15  ;;  %4036 = vmatpush.bf16.msrb.mxu1 %v7717_v55  ;;  %v8776_v51 = vld [vmem:[#allocation6 + $0x280] sm:$0xf]  ;;  %v10785_v15 = vpop.f32.mrf.mxu0  ;;  %v10228_v55 = vld [vmem:[#allocation6 + $0x36c] sm:$0xf0]  ;;  %v8633_v59 = vor.u32 %v10164_v47, %v8632_v43 }
 0x321   :  { %v8226_v6 = vld [vmem:[#allocation2 + $0xe38] sm:$0xf0]  ;;  %4024 = vmatmul.bf16.vlgmr.msrb.gmra.mxu0 %v10675_v41  ;;  %v10136_v41 = vld [vmem:[#allocation6 + $0x8c] sm:$0xf0]  ;;  %v8889_v5 = vor.u32 %v10228_v55, %v8888_v54  ;;  %v9080_v47 = vld [vmem:[#allocation6 + $0x4e0] sm:$0xf] }
 0x322   :  { %v8229_v61 = vor.u32 %v10057_v20, %v8226_v6  ;;  %4049 = vmatpush.bf16.msrb.mxu2 %v7973_v57  ;;  %5646 = vmatpush.bf16.msra.mxu0 %v8569_v62  ;;  %v8521_v40 = vor.u32 %v10136_v41, %v8520_v35  ;;  %v8504_v6 = vld [vmem:[#allocation6 + $0x60] sm:$0xf]  ;;  %v637_v57 = vperm.slane %v10757_v24, 5  ;;  %v4076_v24 = vmul.f32 0.2, %v10707_v52 }
 0x323   :  { %4037 = vmatmul.bf16.vlgmr.msrb.gmra.mxu1 %v10679_v44  ;;  %v10200_v44 = vld [vmem:[#allocation6 + $0x28c] sm:$0xf0]  ;;  %v8505_v58 = vor.u32 %v10132_v21, %v8504_v6  ;;  %v8488_v62 = vld [vmem:[#allocation6 + $0x40] sm:$0xf]  ;;  %v4079_v41 = vmul.f32 0.2, %v10751_v63 }
 0x324   :  { %4062 = vmatpush.bf16.msrb.mxu3 %v8229_v61  ;;  %5659 = vmatpush.bf16.msra.mxu1 %v8697_v0  ;;  %v8777_v20 = vor.u32 %v10200_v44, %v8776_v51  ;;  %v8761_v61 = vor.u32 %v10196_v50, %v8760_v60  ;;  %v10128_v0 = vld [vmem:[#allocation6 + $0x4c] sm:$0xf0]  ;;  %v8840_v21 = vld [vmem:[#allocation6 + $0x300] sm:$0xf] }
 0x325   :  { %4050 = vmatmul.bf16.vlgmr.msrb.gmra.mxu2 %v10673_v38  ;;  %v10232_v38 = vld [vmem:[#allocation6 + $0x38c] sm:$0xf0]  ;;  %v9208_v50 = vld [vmem:[#allocation6 + $0x5e0] sm:$0xf] }
 0x326   :  { %5672 = vmatpush.bf16.msra.mxu2 %v8825_v1  ;;  %5647 = vmatpush.bf16.msra.mxu0 %v8553_v18  ;;  %v8905_v46 = vor.u32 %v10232_v38, %v8904_v39  ;;  %v8616_v1 = vld [vmem:[#allocation6 + $0x140] sm:$0xf]  ;;  %v8489_v18 = vor.u32 %v10128_v0, %v8488_v62  ;;  %v10156_v31 = vld [vmem:[#allocation6 + $0x12c] sm:$0xf0]  ;;  %v4084_v62 = vsel %vm4068_vm0, %v10707_v52, %v4076_v24 }
 0x327   :  { %4063 = vmatmul.bf16.vlgmr.msrb.gmra.mxu3 %v10677_v42  ;;  %v8649_v42 = vor.u32 %v10168_v37, %v8648_v36  ;;  %v8617_v25 = vor.u32 %v10160_v7, %v8616_v1  ;;  %v10220_v35 = vld [vmem:[#allocation6 + $0x32c] sm:$0xf0]  ;;  %v8456_v36 = vld [vmem:[#allocation6] sm:$0xf]  ;;  %v8601_v51 = vor.u32 %v10156_v31, %v8600_v28  ;;  %v4087_v52 = vsel %vm4071_vm3, %v10751_v63, %v4079_v41 }
 0x328   :  { %5685 = vmatpush.bf16.msra.mxu3 %v8953_v9  ;;  %5660 = vmatpush.bf16.msra.mxu1 %v8681_v19  ;;  %v8744_v9 = vld [vmem:[#allocation6 + $0x240] sm:$0xf]  ;;  %v3819_v19 = vpop.f32.mrf.mxu0  ;;  %v10152_v38 = vld [vmem:[#allocation6 + $0x10c] sm:$0xf0] }
 0x329   :  { %v8745_v22 = vor.u32 %v10192_v10, %v8744_v9  ;;  %v8584_v39 = vld [vmem:[#allocation6 + $0x100] sm:$0xf]  ;;  %v10184_v6 = vld [vmem:[#allocation6 + $0x20c] sm:$0xf0] }
 0x32a   :  { %5673 = vmatpush.bf16.msra.mxu2 %v8809_v23  ;;  %5648 = vmatpush.bf16.msra.mxu0 %v8537_v32  ;;  %v3766_v23 = vadd.f32 %v10773_v53, %v637_v57  ;;  %v10188_v32 = vld [vmem:[#allocation6 + $0x22c] sm:$0xf0]  ;;  %v9336_v55 = vld [vmem:[#allocation6 + $0x6e0] sm:$0xf] }
 0x32b   :  { %v8729_v44 = vor.u32 %v10188_v32, %v8728_v3  ;;  %v10216_v43 = vld [vmem:[#allocation6 + $0x30c] sm:$0xf0]  ;;  %v9064_v10 = vld [vmem:[#allocation6 + $0x4c0] sm:$0xf] }
 0x32c   :  { %5686 = vmatpush.bf16.msra.mxu3 %v8937_v27  ;;  %5661 = vmatpush.bf16.msra.mxu1 %v8665_v33  ;;  %v10124_v27 = vld [vmem:[#allocation6 + $0x2c] sm:$0xf0]  ;;  %v4078_v33 = vmul.f32 0.2, %v10737_v56  ;;  %v3779_v37 = vadd.f32 %v10775_v48, %v3766_v23  ;;  %v8841_v0 = vor.u32 %v10216_v43, %v8840_v21  ;;  %v10817_v23 = vpack.c.bf16 %v4084_v62, %v4084_v62  ;;  %v9176_v29 = vld [vmem:[#allocation6 + $0x5a0] sm:$0xf] }
 0x32d   :  { %v8473_v53 = vor.u32 %v10124_v27, %v8472_v26  ;;  %v10276_v60 = vld [vmem:[#allocation6 + $0x4ec] sm:$0xf0]  ;;  %v9048_v27 = vld [vmem:[#allocation6 + $0x4a0] sm:$0xf] }
 0x32e   :  { %5674 = vmatpush.bf16.msra.mxu2 %v8793_v34  ;;  %5649 = vmatpush.bf16.msra.mxu0 %v8521_v40  ;;  %v8856_v34 = vld [vmem:[#allocation6 + $0x320] sm:$0xf]  ;;  %v10308_v48 = vld [vmem:[#allocation6 + $0x5ec] sm:$0xf0]  ;;  %v9081_v1 = vor.u32 %v10276_v60, %v9080_v47  ;;  %v4086_v7 = vsel %vm4070_vm2, %v10737_v56, %v4078_v33 }
 0x32f   :  { %v8712_v40 = vld [vmem:[#allocation6 + $0x200] sm:$0xf]  ;;  %v10340_v57 = vld [vmem:[#allocation6 + $0x6ec] sm:$0xf0] }
 0x330   :  { %5687 = vmatpush.bf16.msra.mxu3 %v8921_v4  ;;  %5662 = vmatpush.bf16.msra.mxu1 %v8649_v42  ;;  %v10120_v4 = vld [vmem:[#allocation6 + $0xc] sm:$0xf0]  ;;  %v3845_v42 = vpop.f32.mrf.mxu2  ;;  %v9337_v9 = vor.u32 %v10340_v57, %v9336_v55  ;;  %v9272_v43 = vld [vmem:[#allocation6 + $0x660] sm:$0xf] }
 0x331   :  { %v8457_v54 = vor.u32 %v10120_v4, %v8456_v36  ;;  %v10304_v24 = vld [vmem:[#allocation6 + $0x5cc] sm:$0xf0]  ;;  %v9288_v4 = vld [vmem:[#allocation6 + $0x680] sm:$0xf] }
 0x332   :  { %5675 = vmatpush.bf16.msra.mxu2 %v8777_v20  ;;  %5650 = vmatpush.bf16.msra.mxu0 %v8505_v58  ;;  %v8857_v20 = vor.u32 %v10220_v35, %v8856_v34  ;;  %v3792_v58 = vadd.f32 %v10777_v8, %v3779_v37  ;;  %v9209_v8 = vor.u32 %v10308_v48, %v9208_v50  ;;  %v10336_v19 = vld [vmem:[#allocation6 + $0x6cc] sm:$0xf0]  ;;  %v9032_v35 = vld [vmem:[#allocation6 + $0x480] sm:$0xf] }
 0x333   :  { %v9193_v63 = vor.u32 %v10304_v24, %v9192_v14  ;;  %v10268_v28 = vld [vmem:[#allocation6 + $0x4ac] sm:$0xf0]  ;;  %v9128_v55 = vld [vmem:[#allocation6 + $0x540] sm:$0xf] }
 0x334   :  { %5688 = vmatpush.bf16.msra.mxu3 %v8905_v46  ;;  %5663 = vmatpush.bf16.msra.mxu1 %v8633_v59  ;;  %v3858_v46 = vpop.f32.mrf.mxu3  ;;  %v8585_v59 = vor.u32 %v10152_v38, %v8584_v39  ;;  %v10332_v31 = vld [vmem:[#allocation6 + $0x6ac] sm:$0xf0]  ;;  %v9049_v32 = vor.u32 %v10268_v28, %v9048_v27  ;;  %v9096_v27 = vld [vmem:[#allocation6 + $0x500] sm:$0xf] }
 0x335   :  { %v10264_v41 = vld [vmem:[#allocation6 + $0x48c] sm:$0xf0] }
 0x336   :  { %5676 = vmatpush.bf16.msra.mxu2 %v8761_v61  ;;  %5651 = vmatpush.bf16.msra.mxu0 %v8489_v18  ;;  %v8713_v61 = vor.u32 %v10184_v6, %v8712_v40  ;;  %v9320_v18 = vld [vmem:[#allocation6 + $0x6c0] sm:$0xf]  ;;  %v10296_v36 = vld [vmem:[#allocation6 + $0x58c] sm:$0xf0]  ;;  %v10834_v6 = vpop.f32.mrf.mxu1 }
 0x337   :  { %v9321_v26 = vor.u32 %v10336_v19, %v9320_v18  ;;  %v10328_v37 = vld [vmem:[#allocation6 + $0x68c] sm:$0xf0]  ;;  %v9016_v40 = vld [vmem:[#allocation6 + $0x460] sm:$0xf]  ;;  %v4080_v18 = vmul.f32 0.2, %v10767_v16 }
 0x338   :  { %5689 = vmatpush.bf16.msra.mxu3 %v8889_v5  ;;  %5664 = vmatpush.bf16.msra.mxu1 %v8617_v25  ;;  %v4085_v5 = vsel %vm4069_vm1, %v10721_v49, %v4077_v17  ;;  %v3805_v49 = vadd.f32 %v10779_v11, %v3792_v58  ;;  %v10822_v17 = vpack.c.bf16 %v4086_v7, %v4086_v7  ;;  %v10300_v11 = vld [vmem:[#allocation6 + $0x5ac] sm:$0xf0]  ;;  %v10837_v57 = vpop.f32.mrf.mxu2 }
 0x339   :  { %v10820_v56 = vpack.c.bf16 %v4085_v5, %v4085_v5  ;;  %v9065_v25 = vor.u32 %v10272_v13, %v9064_v10  ;;  %v9177_v33 = vor.u32 %v10300_v11, %v9176_v29  ;;  %v9289_v38 = vor.u32 %v10328_v37, %v9288_v4  ;;  %v10260_v42 = vld [vmem:[#allocation6 + $0x46c] sm:$0xf0]  ;;  %v9112_v10 = vld [vmem:[#allocation6 + $0x520] sm:$0xf] }
 0x33a   :  { %5677 = vmatpush.bf16.msra.mxu2 %v8745_v22  ;;  %5652 = vmatpush.bf16.msra.mxu0 %v8473_v53  ;;  %v10824_v22 = vpack.c.bf16 %v4087_v52, %v4087_v52  ;;  %v3818_v3 = vadd.f32 %v10785_v15, %v3805_v49  ;;  %v9160_v53 = vld [vmem:[#allocation6 + $0x580] sm:$0xf]  ;;  %v9033_v15 = vor.u32 %v10264_v41, %v9032_v35  ;;  %v10292_v21 = vld [vmem:[#allocation6 + $0x56c] sm:$0xf0] }
 0x33b   :  { %v9161_v39 = vor.u32 %v10296_v36, %v9160_v53  ;;  %v10324_v46 = vld [vmem:[#allocation6 + $0x66c] sm:$0xf0]  ;;  %v9240_v52 = vld [vmem:[#allocation6 + $0x620] sm:$0xf]  ;;  %v8698_v53 = vld [vmem:[#allocation6 + $0x1f0] sm:$0xf0] }
 0x33c   :  { %5690 = vmatpush.bf16.msra.mxu3 %v8873_v30  ;;  %5665 = vmatpush.bf16.msra.mxu1 %v8601_v51  ;;  %v9304_v30 = vld [vmem:[#allocation6 + $0x6a0] sm:$0xf]  ;;  %v3831_v51 = vadd.f32 %v10787_v45, %v3818_v3  ;;  %v9017_v45 = vor.u32 %v10260_v42, %v9016_v40  ;;  %v9273_v50 = vor.u32 %v10324_v46, %v9272_v43  ;;  %v10256_v48 = vld [vmem:[#allocation6 + $0x44c] sm:$0xf0]  ;;  %v10839_v62 = vpop.f32.mrf.mxu3  ;;  %v8554_v43 = vld [vmem:[#allocation6 + $0xd0] sm:$0xf0] }
 0x33d   :  { %v9305_v34 = vor.u32 %v10332_v31, %v9304_v30  ;;  %v10288_v58 = vld [vmem:[#allocation6 + $0x54c] sm:$0xf0]  ;;  %v9224_v30 = vld [vmem:[#allocation6 + $0x600] sm:$0xf]  ;;  %v4088_v42 = vsel %vm4072_vm4, %v10767_v16, %v4080_v18 }
 0x33e   :  { %5678 = vmatpush.bf16.msra.mxu2 %v8729_v44  ;;  %5653 = vmatpush.bf16.msra.mxu0 %v8457_v54  ;;  %v10832_v44 = vpop.f32.mrf.mxu0  ;;  %v3844_v47 = vadd.f32 %v10790_v2, %v3831_v51  ;;  %v9000_v54 = vld [vmem:[#allocation6 + $0x440] sm:$0xf]  ;;  %v9129_v5 = vor.u32 %v10288_v58, %v9128_v55  ;;  %v3884_v13 = vpop.f32.mrf.mxu1  ;;  %v10284_v14 = vld [vmem:[#allocation6 + $0x52c] sm:$0xf0]  ;;  %v10210_v51 = vld [vmem:[#allocation6 + $0x2e4] sm:$0xf] }
 0x33f   :  { %v9001_v2 = vor.u32 %v10256_v48, %v9000_v54  ;;  %v10316_v24 = vld [vmem:[#allocation6 + $0x62c] sm:$0xf0]  ;;  %v9113_v28 = vor.u32 %v10284_v14, %v9112_v10  ;;  %v9464_v36 = vld [vmem:[#allocation6 + $0x7e0] sm:$0xf]  ;;  %v10206_v48 = vld [vmem:[#allocation6 + $0x2c4] sm:$0xf] }
 0x340   :  { %5691 = vmatpush.bf16.msra.mxu3 %v8857_v20  ;;  %5666 = vmatpush.bf16.msra.mxu1 %v8585_v59  ;;  %v9144_v20 = vld [vmem:[#allocation6 + $0x560] sm:$0xf]  ;;  %v9241_v29 = vor.u32 %v10316_v24, %v9240_v52  ;;  %v10280_v11 = vld [vmem:[#allocation6 + $0x50c] sm:$0xf0]  ;;  %v3897_v3 = vpop.f32.mrf.mxu2  ;;  %v8810_v55 = vld [vmem:[#allocation6 + $0x2d0] sm:$0xf0] }
 0x341   :  { %5654 = vmatmul.bf16.vlgmr.msra.gmra.mxu0 %v10817_v23  ;;  %v9145_v60 = vor.u32 %v10292_v21, %v9144_v20  ;;  %v9256_v59 = vld [vmem:[#allocation6 + $0x640] sm:$0xf]  ;;  %v10312_v31 = vld [vmem:[#allocation6 + $0x60c] sm:$0xf0]  ;;  %v10202_v14 = vld [vmem:[#allocation6 + $0x2a4] sm:$0xf] }
 0x342   :  { %5679 = vmatpush.bf16.msra.mxu2 %v8713_v61  ;;  %5698 = vmatpush.bf16.msrb.mxu0 %v9081_v1  ;;  %v10320_v61 = vld [vmem:[#allocation6 + $0x64c] sm:$0xf0]  ;;  %v9225_v40 = vor.u32 %v10312_v31, %v9224_v30  ;;  %v9448_v54 = vld [vmem:[#allocation6 + $0x7c0] sm:$0xf]  ;;  %v8794_v52 = vld [vmem:[#allocation6 + $0x2b0] sm:$0xf0] }
 0x343   :  { %5667 = vmatmul.bf16.vlgmr.msra.gmra.mxu1 %v10820_v56  ;;  %v9257_v7 = vor.u32 %v10320_v61, %v9256_v59  ;;  %v10372_v4 = vld [vmem:[#allocation6 + $0x7ec] sm:$0xf0]  ;;  %v10853_v59 = vpack.c.bf16 %v4088_v42, %v4088_v42  ;;  %v9432_v10 = vld [vmem:[#allocation6 + $0x7a0] sm:$0xf]  ;;  %v8778_v30 = vld [vmem:[#allocation6 + $0x290] sm:$0xf0] }
 0x344   :  { %5692 = vmatpush.bf16.msra.mxu3 %v8841_v0  ;;  %5711 = vmatpush.bf16.msrb.mxu1 %v9209_v8  ;;  %v3857_v0 = vadd.f32 %v10792_v12, %v3844_v47  ;;  %v8984_v8 = vld [vmem:[#allocation6 + $0x420] sm:$0xf]  ;;  %v10844_v12 = vld [vmem:[#allocation4] sm:$0xff]  ;;  %v3910_v35 = vpop.f32.mrf.mxu3  ;;  %v10368_v58 = vld [vmem:[#allocation6 + $0x7cc] sm:$0xf0] }
 0x345   :  { %5680 = vmatmul.bf16.vlgmr.msra.gmra.mxu2 %v10822_v17  ;;  %v638_v49 = vperm.slane %v10844_v12, 6  ;;  %v9449_v16 = vor.u32 %v10368_v58, %v9448_v54  ;;  %v10364_v13 = vld [vmem:[#allocation6 + $0x7ac] sm:$0xf0]  ;;  %v8506_v35 = vld [vmem:[#allocation6 + $0x70] sm:$0xf0] }
 0x346   :  { %5724 = vmatpush.bf16.msrb.mxu2 %v9337_v9  ;;  %5699 = vmatpush.bf16.msrb.mxu0 %v9065_v25  ;;  %v3871_v1 = vpop.f32.mrf.mxu0  ;;  %v10252_v9 = vld [vmem:[#allocation6 + $0x42c] sm:$0xf0]  ;;  %v4081_v19 = vmul.f32 0.2, %v3857_v0  ;;  %vm4073_vm5 = vcmp.gt.f32.partialorder %v3857_v0, 0.0  ;;  %v9433_v24 = vor.u32 %v10364_v13, %v9432_v10 }
 0x347   :  { %5693 = vmatmul.bf16.vlgmr.msra.gmra.mxu3 %v10824_v22  ;;  %v8985_v25 = vor.u32 %v10252_v9, %v8984_v8  ;;  %v3870_v41 = vadd.f32 %v10832_v44, %v638_v49  ;;  %v10142_v44 = vld [vmem:[#allocation6 + $0xc4] sm:$0xf]  ;;  %v8538_v1 = vld [vmem:[#allocation6 + $0xb0] sm:$0xf0]  ;;  %v8813_v8 = vor.u32 %v10206_v48, %v8810_v55 }
 0x348   :  { %5712 = vmatpush.bf16.msrb.mxu1 %v9193_v63  ;;  %v8968_v63 = vld [vmem:[#allocation6 + $0x400] sm:$0xf]  ;;  %v4089_v46 = vsel %vm4073_vm5, %v3857_v0, %v4081_v19  ;;  %v8557_v0 = vor.u32 %v10142_v44, %v8554_v43  ;;  %v8666_v9 = vld [vmem:[#allocation6 + $0x1b0] sm:$0xf0]  ;;  %v10134_v49 = vld [vmem:[#allocation6 + $0x84] sm:$0xf] }
 0x349   :  { %v3883_v47 = vadd.f32 %v10834_v6, %v3870_v41  ;;  %v10855_v61 = vpack.c.bf16 %v4089_v46, %v4089_v46  ;;  %v10138_v6 = vld [vmem:[#allocation6 + $0xa4] sm:$0xf]  ;;  %v8490_v44 = vld [vmem:[#allocation6 + $0x50] sm:$0xf0] }
 0x34a   :  { %5725 = vmatpush.bf16.msrb.mxu2 %v9321_v26  ;;  %5700 = vmatpush.bf16.msrb.mxu0 %v9049_v32  ;;  %v10248_v26 = vld [vmem:[#allocation6 + $0x40c] sm:$0xf0]  ;;  %v10146_v32 = vld [vmem:[#allocation6 + $0xe4] sm:$0xf]  ;;  %v8541_v18 = vor.u32 %v10138_v6, %v8538_v1  ;;  %v8746_v58 = vld [vmem:[#allocation6 + $0x250] sm:$0xf0] }
 0x34b   :  { %v8969_v37 = vor.u32 %v10248_v26, %v8968_v63  ;;  %v10166_v63 = vld [vmem:[#allocation6 + $0x184] sm:$0xf]  ;;  %v8797_v26 = vor.u32 %v10202_v14, %v8794_v52  ;;  %v9368_v52 = vld [vmem:[#allocation6 + $0x720] sm:$0xf] }
 0x34c   :  { %5713 = vmatpush.bf16.msrb.mxu1 %v9177_v33  ;;  %v8570_v33 = vld [vmem:[#allocation6 + $0xf0] sm:$0xf0]  ;;  %v10162_v41 = vld [vmem:[#allocation6 + $0x164] sm:$0xf]  ;;  %v3960_v48 = vpop.f32.mrf.mxu3 }
 0x34d   :  { %v8573_v20 = vor.u32 %v10146_v32, %v8570_v33  ;;  %v10158_v43 = vld [vmem:[#allocation6 + $0x144] sm:$0xf] }
 0x34e   :  { %5726 = vmatpush.bf16.msrb.mxu2 %v9305_v34  ;;  %5701 = vmatpush.bf16.msrb.mxu0 %v9033_v15  ;;  %v10178_v34 = vld [vmem:[#allocation6 + $0x1e4] sm:$0xf]  ;;  %v8826_v15 = vld [vmem:[#allocation6 + $0x2f0] sm:$0xf0]  ;;  %v3921_v33 = vpop.f32.mrf.mxu0 }
 0x34f   :  { %v8701_v21 = vor.u32 %v10178_v34, %v8698_v53  ;;  %v10130_v34 = vld [vmem:[#allocation6 + $0x64] sm:$0xf] }
 0x350   :  { %5714 = vmatpush.bf16.msrb.mxu1 %v9161_v39  ;;  %v9465_v39 = vor.u32 %v10372_v4, %v9464_v36  ;;  %v3934_v36 = vpop.f32.mrf.mxu1  ;;  %v8634_v4 = vld [vmem:[#allocation6 + $0x170] sm:$0xf0]  ;;  %v8509_v42 = vor.u32 %v10130_v34, %v8506_v35  ;;  %v10190_v55 = vld [vmem:[#allocation6 + $0x244] sm:$0xf]  ;;  %v9352_v35 = vld [vmem:[#allocation6 + $0x700] sm:$0xf] }
 0x351   :  { %v8749_v10 = vor.u32 %v10190_v55, %v8746_v58  ;;  %v10186_v13 = vld [vmem:[#allocation6 + $0x224] sm:$0xf]  ;;  %v8938_v55 = vld [vmem:[#allocation6 + $0x3d0] sm:$0xf0] }
 0x352   :  { %5727 = vmatpush.bf16.msrb.mxu2 %v9289_v38  ;;  %5702 = vmatpush.bf16.msrb.mxu0 %v9017_v45  ;;  %v9097_v38 = vor.u32 %v10280_v11, %v9096_v27  ;;  %v8829_v45 = vor.u32 %v10210_v51, %v8826_v15  ;;  %v8650_v27 = vld [vmem:[#allocation6 + $0x190] sm:$0xf0]  ;;  %v10198_v11 = vld [vmem:[#allocation6 + $0x284] sm:$0xf]  ;;  %v10356_v51 = vld [vmem:[#allocation6 + $0x76c] sm:$0xf0] }
 0x353   :  { %5737 = vmatpush.bf16.msrb.mxu3 %v9465_v39  ;;  %v8653_v32 = vor.u32 %v10166_v63, %v8650_v27  ;;  %v8781_v53 = vor.u32 %v10198_v11, %v8778_v30  ;;  %v10194_v15 = vld [vmem:[#allocation6 + $0x264] sm:$0xf]  ;;  %v8762_v39 = vld [vmem:[#allocation6 + $0x270] sm:$0xf0] }
 0x354   :  { %5715 = vmatpush.bf16.msrb.mxu1 %v9145_v60  ;;  %v10174_v60 = vld [vmem:[#allocation6 + $0x1c4] sm:$0xf]  ;;  %v8765_v46 = vor.u32 %v10194_v15, %v8762_v39  ;;  %v8458_v63 = vld [vmem:[#allocation6 + $0x10] sm:$0xf0] }
 0x355   :  { %v10182_v11 = vld [vmem:[#allocation6 + $0x204] sm:$0xf]  ;;  %v8714_v30 = vld [vmem:[#allocation6 + $0x210] sm:$0xf0] }
 0x356   :  { %5728 = vmatpush.bf16.msrb.mxu2 %v9273_v50  ;;  %5703 = vmatpush.bf16.msrb.mxu0 %v9001_v2  ;;  %v8682_v50 = vld [vmem:[#allocation6 + $0x1d0] sm:$0xf0]  ;;  %v10338_v15 = vld [vmem:[#allocation6 + $0x6e4] sm:$0xf] }
 0x357   :  { %v8685_v2 = vor.u32 %v10174_v60, %v8682_v50  ;;  %5738 = vmatpush.bf16.msrb.mxu3 %v9449_v16  ;;  %v9384_v60 = vld [vmem:[#allocation6 + $0x740] sm:$0xf]  ;;  %v10352_v50 = vld [vmem:[#allocation6 + $0x74c] sm:$0xf0]  ;;  %v9338_v39 = vld [vmem:[#allocation6 + $0x6f0] sm:$0xf0] }
 0x358   :  { %5716 = vmatpush.bf16.msrb.mxu1 %v9129_v5  ;;  %v10170_v5 = vld [vmem:[#allocation6 + $0x1a4] sm:$0xf]  ;;  %v9385_v16 = vor.u32 %v10352_v50, %v9384_v60  ;;  %v3936_v14 = vpop.f32.mrf.mxu1  ;;  %v9194_v60 = vld [vmem:[#allocation6 + $0x5d0] sm:$0xf0] }
 0x359   :  { %v8669_v19 = vor.u32 %v10170_v5, %v8666_v9  ;;  %v8474_v5 = vld [vmem:[#allocation6 + $0x30] sm:$0xf0]  ;;  %v3923_v9 = vpop.f32.mrf.mxu0  ;;  %v10334_v50 = vld [vmem:[#allocation6 + $0x6c4] sm:$0xf] }
 0x35a   :  { %5729 = vmatpush.bf16.msrb.mxu2 %v9257_v7  ;;  %5704 = vmatpush.bf16.msrb.mxu0 %v8985_v25  ;;  %v3896_v7 = vadd.f32 %v10837_v57, %v3883_v47  ;;  %v8522_v25 = vld [vmem:[#allocation6 + $0x90] sm:$0xf0]  ;;  %v3947_v47 = vpop.f32.mrf.mxu2 }
 0x35b   :  { %5739 = vmatpush.bf16.msrb.mxu3 %v9433_v24  ;;  %v8525_v3 = vor.u32 %v10134_v49, %v8522_v25  ;;  %v10348_v24 = vld [vmem:[#allocation6 + $0x72c] sm:$0xf0]  ;;  %v10118_v25 = vld [vmem:[#allocation6 + $0x4] sm:$0xf]  ;;  %v9306_v9 = vld [vmem:[#allocation6 + $0x6b0] sm:$0xf0] }
 0x35c   :  { %5717 = vmatpush.bf16.msrb.mxu1 %v9113_v28  ;;  %v3909_v57 = vadd.f32 %v10839_v62, %v3896_v7  ;;  %v9416_v28 = vld [vmem:[#allocation6 + $0x780] sm:$0xf]  ;;  %v10154_v7 = vld [vmem:[#allocation6 + $0x124] sm:$0xf]  ;;  %v9369_v49 = vor.u32 %v10348_v24, %v9368_v52 }
 0x35d   :  { %v10262_v24 = vld [vmem:[#allocation6 + $0x484] sm:$0xf] }
 0x35e   :  { %5730 = vmatpush.bf16.msrb.mxu2 %v9241_v29  ;;  %5705 = vmatpush.bf16.msrb.mxu0 %v8969_v37  ;;  %v10360_v29 = vld [vmem:[#allocation6 + $0x78c] sm:$0xf0]  ;;  %v3922_v62 = vadd.f32 %v3921_v33, %v3909_v57  ;;  %v9400_v37 = vld [vmem:[#allocation6 + $0x760] sm:$0xf]  ;;  %v10150_v57 = vld [vmem:[#allocation6 + $0x104] sm:$0xf] }
 0x35f   :  { %v9417_v31 = vor.u32 %v10360_v29, %v9416_v28  ;;  %v9082_v33 = vld [vmem:[#allocation6 + $0x4f0] sm:$0xf0] }
 0x360   :  { %5718 = vmatpush.bf16.msrb.mxu1 %v9097_v38  ;;  %v9401_v38 = vor.u32 %v10356_v51, %v9400_v37  ;;  %v8954_v37 = vld [vmem:[#allocation6 + $0x3f0] sm:$0xf0] }
 0x361   :  { %5706 = vmatmul.bf16.vlgmr.msrb.gmra.mxu0 %v10853_v59  ;;  %5740 = vmatpush.bf16.msrb.mxu3 %v9417_v31  ;;  %v10274_v31 = vld [vmem:[#allocation6 + $0x4e4] sm:$0xf]  ;;  %v9210_v51 = vld [vmem:[#allocation6 + $0x5f0] sm:$0xf0] }
 0x362   :  { %5731 = vmatpush.bf16.msrb.mxu2 %v9225_v40  ;;  %5750 = vmatpush.bf16.msra.mxu0 %v8573_v20  ;;  %v3935_v40 = vadd.f32 %v3934_v36, %v3922_v62  ;;  %v8637_v20 = vor.u32 %v10162_v41, %v8634_v4  ;;  %v3949_v34 = vpop.f32.mrf.mxu2  ;;  %v10344_v41 = vld [vmem:[#allocation6 + $0x70c] sm:$0xf0]  ;;  %v3962_v62 = vpop.f32.mrf.mxu3  ;;  %v10242_v4 = vld [vmem:[#allocation6 + $0x3e4] sm:$0xf] }
 0x363   :  { %5719 = vmatmul.bf16.vlgmr.msrb.gmra.mxu1 %v10855_v61  ;;  %v9353_v36 = vor.u32 %v10344_v41, %v9352_v35  ;;  %v10290_v34 = vld [vmem:[#allocation6 + $0x564] sm:$0xf]  ;;  %v9146_v35 = vld [vmem:[#allocation6 + $0x570] sm:$0xf0] }
 0x364   :  { %5763 = vmatpush.bf16.msra.mxu1 %v8701_v21  ;;  %v10126_v21 = vld [vmem:[#allocation6 + $0x44] sm:$0xf]  ;;  %v3948_v54 = vadd.f32 %v3947_v47, %v3935_v40  ;;  %v8461_v40 = vor.u32 %v10118_v25, %v8458_v63  ;;  %v9341_v47 = vor.u32 %v10338_v15, %v9338_v39  ;;  %v9162_v63 = vld [vmem:[#allocation6 + $0x590] sm:$0xf0] }
 0x365   :  { %5741 = vmatpush.bf16.msrb.mxu3 %v9401_v38  ;;  %v8493_v6 = vor.u32 %v10126_v21, %v8490_v44  ;;  %v8957_v38 = vor.u32 %v10242_v4, %v8954_v37  ;;  %v9085_v21 = vor.u32 %v10274_v31, %v9082_v33  ;;  %v10270_v44 = vld [vmem:[#allocation6 + $0x4c4] sm:$0xf]  ;;  %v9018_v31 = vld [vmem:[#allocation6 + $0x470] sm:$0xf0] }
 0x366   :  { %5776 = vmatpush.bf16.msra.mxu2 %v8829_v45  ;;  %5751 = vmatpush.bf16.msra.mxu0 %v8557_v0  ;;  %v8618_v45 = vld [vmem:[#allocation6 + $0x150] sm:$0xf0]  ;;  %v10122_v0 = vld [vmem:[#allocation6 + $0x24] sm:$0xf] }
 0x367   :  { %v8621_v1 = vor.u32 %v10158_v43, %v8618_v45  ;;  %v8477_v28 = vor.u32 %v10122_v0, %v8474_v5  ;;  %v9066_v43 = vld [vmem:[#allocation6 + $0x4d0] sm:$0xf0]  ;;  %v10302_v45 = vld [vmem:[#allocation6 + $0x5c4] sm:$0xf] }
 0x368   :  { %5764 = vmatpush.bf16.msra.mxu1 %v8685_v2  ;;  %v3961_v2 = vadd.f32 %v3960_v48, %v3948_v54  ;;  %v9322_v54 = vld [vmem:[#allocation6 + $0x6d0] sm:$0xf0]  ;;  %v10238_v48 = vld [vmem:[#allocation6 + $0x3c4] sm:$0xf] }
 0x369   :  { %5742 = vmatpush.bf16.msrb.mxu3 %v9385_v16  ;;  %v8941_v58 = vor.u32 %v10238_v48, %v8938_v55  ;;  %v9069_v16 = vor.u32 %v10270_v44, %v9066_v43  ;;  %v10266_v0 = vld [vmem:[#allocation6 + $0x4a4] sm:$0xf]  ;;  %v9274_v62 = vld [vmem:[#allocation6 + $0x670] sm:$0xf0] }
 0x36a   :  { %5777 = vmatpush.bf16.msra.mxu2 %v8813_v8  ;;  %5752 = vmatpush.bf16.msra.mxu0 %v8541_v18  ;;  %v8602_v8 = vld [vmem:[#allocation6 + $0x130] sm:$0xf0]  ;;  %vm4074_vm6 = vcmp.gt.f32.partialorder %v3961_v2, 0.0  ;;  %v4082_v18 = vmul.f32 0.2, %v3961_v2 }
 0x36b   :  { %v8605_v29 = vor.u32 %v10154_v7, %v8602_v8  ;;  %v10298_v5 = vld [vmem:[#allocation6 + $0x5a4] sm:$0xf]  ;;  %v9178_v7 = vld [vmem:[#allocation6 + $0x5b0] sm:$0xf0] }
 0x36c   :  { %5765 = vmatpush.bf16.msra.mxu1 %v8669_v19  ;;  %v8730_v19 = vld [vmem:[#allocation6 + $0x230] sm:$0xf0]  ;;  %v4090_v27 = vsel %vm4074_vm6, %v3961_v2, %v4082_v18  ;;  %v10330_v8 = vld [vmem:[#allocation6 + $0x6a4] sm:$0xf] }
 0x36d   :  { %5743 = vmatpush.bf16.msrb.mxu3 %v9369_v49  ;;  %v9050_v2 = vld [vmem:[#allocation6 + $0x4b0] sm:$0xf0]  ;;  %v9309_v49 = vor.u32 %v10330_v8, %v9306_v9  ;;  %v10294_v25 = vld [vmem:[#allocation6 + $0x584] sm:$0xf] }
 0x36e   :  { %5778 = vmatpush.bf16.msra.mxu2 %v8797_v26  ;;  %5753 = vmatpush.bf16.msra.mxu0 %v8525_v3  ;;  %v8586_v26 = vld [vmem:[#allocation6 + $0x110] sm:$0xf0]  ;;  %v10861_v3 = vpack.c.bf16 %v4090_v27, %v4090_v27  ;;  %v9053_v52 = vor.u32 %v10266_v0, %v9050_v2  ;;  %v10230_v27 = vld [vmem:[#allocation6 + $0x384] sm:$0xf] }
 0x36f   :  { %v9034_v18 = vld [vmem:[#allocation6 + $0x490] sm:$0xf0]  ;;  %v10322_v41 = vld [vmem:[#allocation6 + $0x664] sm:$0xf] }
 0x370   :  { %5766 = vmatpush.bf16.msra.mxu1 %v8653_v32  ;;  %v8733_v32 = vor.u32 %v10186_v13, %v8730_v19  ;;  %5732 = vmatmul.bf16.vlgmr.msrb.gmra.mxu2 %v10861_v3  ;;  %v8922_v13 = vld [vmem:[#allocation6 + $0x3b0] sm:$0xf0]  ;;  %v9181_v19 = vor.u32 %v10298_v5, %v9178_v7  ;;  %v10226_v4 = vld [vmem:[#allocation6 + $0x364] sm:$0xf] }
 0x371   :  { %5744 = vmatpush.bf16.msrb.mxu3 %v9353_v36  ;;  %v10869_v36 = vpop.f32.mrf.mxu1  ;;  %v8890_v37 = vld [vmem:[#allocation6 + $0x370] sm:$0xf0]  ;;  %v10254_v39 = vld [vmem:[#allocation6 + $0x444] sm:$0xf] }
 0x372   :  { %5779 = vmatpush.bf16.msra.mxu2 %v8781_v53  ;;  %5754 = vmatpush.bf16.msra.mxu0 %v8509_v42  ;;  %v10306_v53 = vld [vmem:[#allocation6 + $0x5e4] sm:$0xf]  ;;  %v8589_v42 = vor.u32 %v10150_v57, %v8586_v26  ;;  %v9290_v26 = vld [vmem:[#allocation6 + $0x690] sm:$0xf0] }
 0x373   :  { %v10326_v57 = vld [vmem:[#allocation6 + $0x684] sm:$0xf]  ;;  %v9258_v43 = vld [vmem:[#allocation6 + $0x650] sm:$0xf0] }
 0x374   :  { %5767 = vmatpush.bf16.msra.mxu1 %v8637_v20  ;;  %v8717_v20 = vor.u32 %v10182_v11, %v8714_v30  ;;  %v9037_v11 = vor.u32 %v10262_v24, %v9034_v18  ;;  %v10258_v30 = vld [vmem:[#allocation6 + $0x464] sm:$0xf]  ;;  %v9293_v33 = vor.u32 %v10326_v57, %v9290_v26  ;;  %v8986_v55 = vld [vmem:[#allocation6 + $0x430] sm:$0xf0]  ;;  %v8576_v26 = vld [vmem:[#allocation6 + $0xe8] sm:$0xf] }
 0x375   :  { %5789 = vmatpush.bf16.msra.mxu3 %v8957_v38  ;;  %v9021_v15 = vor.u32 %v10258_v30, %v9018_v31  ;;  %v9002_v38 = vld [vmem:[#allocation6 + $0x450] sm:$0xf0]  ;;  %v10318_v44 = vld [vmem:[#allocation6 + $0x644] sm:$0xf]  ;;  %v10181_v30 = vld [vmem:[#allocation6 + $0x1f4] sm:$0xf0] }
 0x376   :  { %5780 = vmatpush.bf16.msra.mxu2 %v8765_v46  ;;  %5755 = vmatpush.bf16.msra.mxu0 %v8493_v6  ;;  %v9213_v46 = vor.u32 %v10306_v53, %v9210_v51  ;;  %v9197_v6 = vor.u32 %v10302_v45, %v9194_v60  ;;  %v10866_v53 = vpop.f32.mrf.mxu0  ;;  %v8893_v51 = vor.u32 %v10226_v4, %v8890_v37  ;;  %v8874_v45 = vld [vmem:[#allocation6 + $0x350] sm:$0xf0]  ;;  %v10873_v60 = vpop.f32.mrf.mxu3  ;;  %v10250_v48 = vld [vmem:[#allocation6 + $0x424] sm:$0xf] }
 0x377   :  { %v10282_v0 = vld [vmem:[#allocation6 + $0x524] sm:$0xf]  ;;  %v9114_v2 = vld [vmem:[#allocation6 + $0x530] sm:$0xf0] }
 0x378   :  { %5768 = vmatpush.bf16.msra.mxu1 %v8621_v1  ;;  %v9325_v1 = vor.u32 %v10334_v50, %v9322_v54  ;;  %v9005_v54 = vor.u32 %v10254_v39, %v9002_v38  ;;  %v9242_v5 = vld [vmem:[#allocation6 + $0x630] sm:$0xf0]  ;;  %v10218_v8 = vld [vmem:[#allocation6 + $0x324] sm:$0xf]  ;;  %v10145_v38 = vld [vmem:[#allocation6 + $0xd4] sm:$0xf0] }
 0x379   :  { %5790 = vmatpush.bf16.msra.mxu3 %v8941_v58  ;;  %v3988_v7 = vpop.f32.mrf.mxu1  ;;  %v8858_v9 = vld [vmem:[#allocation6 + $0x330] sm:$0xf0]  ;;  %v10278_v18 = vld [vmem:[#allocation6 + $0x504] sm:$0xf] }
 0x37a   :  { %5781 = vmatpush.bf16.msra.mxu2 %v8749_v10  ;;  %5756 = vmatpush.bf16.msra.mxu0 %v8477_v28  ;;  %v10234_v10 = vld [vmem:[#allocation6 + $0x3a4] sm:$0xf]  ;;  %v8906_v28 = vld [vmem:[#allocation6 + $0x390] sm:$0xf0]  ;;  %v10169_v7 = vld [vmem:[#allocation6 + $0x194] sm:$0xf0] }
 0x37b   :  { %v8925_v14 = vor.u32 %v10234_v10, %v8922_v13  ;;  %v639_v10 = vperm.slane %v10844_v12, 7  ;;  %v8861_v13 = vor.u32 %v10218_v8, %v8858_v9  ;;  %v8970_v24 = vld [vmem:[#allocation6 + $0x410] sm:$0xf0]  ;;  %v8704_v12 = vld [vmem:[#allocation6 + $0x1e8] sm:$0xf] }
 0x37c   :  { %5769 = vmatpush.bf16.msra.mxu1 %v8605_v29  ;;  %v8909_v29 = vor.u32 %v10230_v27, %v8906_v28  ;;  %v9226_v57 = vld [vmem:[#allocation6 + $0x610] sm:$0xf0]  ;;  %v10214_v28 = vld [vmem:[#allocation6 + $0x304] sm:$0xf]  ;;  %v8784_v8 = vld [vmem:[#allocation6 + $0x288] sm:$0xf] }
 0x37d   :  { %5791 = vmatpush.bf16.msra.mxu3 %v8925_v14  ;;  %v8989_v14 = vor.u32 %v10250_v48, %v8986_v55  ;;  %v3974_v4 = vadd.f32 %v10866_v53, %v639_v10  ;;  %v8544_v53 = vld [vmem:[#allocation6 + $0xa8] sm:$0xf]  ;;  %v10173_v48 = vld [vmem:[#allocation6 + $0x1b4] sm:$0xf0] }
 0x37e   :  { %5782 = vmatpush.bf16.msra.mxu2 %v8733_v32  ;;  %5757 = vmatpush.bf16.msra.mxu0 %v8461_v40  ;;  %v9165_v32 = vor.u32 %v10294_v25, %v9162_v63  ;;  %v9149_v40 = vor.u32 %v10290_v34, %v9146_v35  ;;  %v9098_v25 = vld [vmem:[#allocation6 + $0x510] sm:$0xf0]  ;;  %v10310_v63 = vld [vmem:[#allocation6 + $0x604] sm:$0xf]  ;;  %v4014_v31 = vpop.f32.mrf.mxu3  ;;  %v8832_v34 = vld [vmem:[#allocation6 + $0x2e8] sm:$0xf] }
 0x37f   :  { %v10213_v35 = vld [vmem:[#allocation6 + $0x2f4] sm:$0xf0]  ;;  %v8800_v55 = vld [vmem:[#allocation6 + $0x2a8] sm:$0xf] }
 0x380   :  { %5770 = vmatpush.bf16.msra.mxu1 %v8589_v42  ;;  %v9277_v42 = vor.u32 %v10322_v41, %v9274_v62  ;;  %v9101_v41 = vor.u32 %v10278_v18, %v9098_v25  ;;  %v9229_v62 = vor.u32 %v10310_v63, %v9226_v57  ;;  %v8833_v39 = vor.u32 %v10213_v35, %v8832_v34  ;;  %v10201_v9 = vld [vmem:[#allocation6 + $0x294] sm:$0xf0]  ;;  %v8768_v57 = vld [vmem:[#allocation6 + $0x268] sm:$0xf] }
 0x381   :  { %5758 = vmatmul.bf16.vlgmr.msra.gmra.mxu0 %v10817_v23  ;;  %5792 = vmatpush.bf16.msra.mxu3 %v8909_v29  ;;  %v8842_v29 = vld [vmem:[#allocation6 + $0x310] sm:$0xf0]  ;;  %v8785_v18 = vor.u32 %v10201_v9, %v8784_v8  ;;  %v10165_v25 = vld [vmem:[#allocation6 + $0x174] sm:$0xf0] }
 0x382   :  { %5783 = vmatpush.bf16.msra.mxu2 %v8717_v20  ;;  %5802 = vmatpush.bf16.msrb.mxu0 %v9085_v21  ;;  %v10286_v20 = vld [vmem:[#allocation6 + $0x544] sm:$0xf]  ;;  %v9130_v21 = vld [vmem:[#allocation6 + $0x550] sm:$0xf0] }
 0x383   :  { %5771 = vmatmul.bf16.vlgmr.msra.gmra.mxu1 %v10820_v56  ;;  %v9133_v58 = vor.u32 %v10286_v20, %v9130_v21  ;;  %v8816_v20 = vld [vmem:[#allocation6 + $0x2c8] sm:$0xf]  ;;  %v10209_v21 = vld [vmem:[#allocation6 + $0x2d4] sm:$0xf0] }
 0x384   :  { %5815 = vmatpush.bf16.msrb.mxu1 %v9213_v46  ;;  %v10871_v46 = vpop.f32.mrf.mxu2 }
 0x385   :  { %5784 = vmatmul.bf16.vlgmr.msra.gmra.mxu2 %v10822_v17  ;;  %5793 = vmatpush.bf16.msra.mxu3 %v8893_v51  ;;  %v8705_v51 = vor.u32 %v10181_v30, %v8704_v12  ;;  %v8624_v12 = vld [vmem:[#allocation6 + $0x148] sm:$0xf]  ;;  %v10161_v30 = vld [vmem:[#allocation6 + $0x154] sm:$0xf0] }
 0x386   :  { %5828 = vmatpush.bf16.msrb.mxu2 %v9341_v47  ;;  %5803 = vmatpush.bf16.msrb.mxu0 %v9069_v16  ;;  %v10222_v47 = vld [vmem:[#allocation6 + $0x344] sm:$0xf]  ;;  %v9261_v16 = vor.u32 %v10318_v44, %v9258_v43  ;;  %v3987_v44 = vadd.f32 %v10869_v36, %v3974_v4 }
 0x387   :  { %v8877_v50 = vor.u32 %v10222_v47, %v8874_v45  ;;  %v8817_v45 = vor.u32 %v10209_v21, %v8816_v20  ;;  %v8736_v21 = vld [vmem:[#allocation6 + $0x228] sm:$0xf] }
 0x388   :  { %5816 = vmatpush.bf16.msrb.mxu1 %v9197_v6  ;;  %v10314_v6 = vld [vmem:[#allocation6 + $0x624] sm:$0xf]  ;;  %v4000_v36 = vadd.f32 %v10871_v46, %v3987_v44  ;;  %v8512_v46 = vld [vmem:[#allocation6 + $0x68] sm:$0xf]  ;;  %v10189_v44 = vld [vmem:[#allocation6 + $0x234] sm:$0xf0] }
 0x389   :  { %5794 = vmatpush.bf16.msra.mxu3 %v8877_v50  ;;  %v10141_v50 = vld [vmem:[#allocation6 + $0xb4] sm:$0xf0] }
 0x38a   :  { %5829 = vmatpush.bf16.msrb.mxu2 %v9325_v1  ;;  %5804 = vmatpush.bf16.msrb.mxu0 %v9053_v52  ;;  %v3975_v1 = vpop.f32.mrf.mxu0  ;;  %v10246_v52 = vld [vmem:[#allocation6 + $0x404] sm:$0xf]  ;;  %v4013_v10 = vadd.f32 %v10873_v60, %v4000_v36  ;;  %v8496_v60 = vld [vmem:[#allocation6 + $0x48] sm:$0xf]  ;;  %v10153_v36 = vld [vmem:[#allocation6 + $0x114] sm:$0xf0] }
 0x38b   :  { %v10137_v1 = vld [vmem:[#allocation6 + $0x94] sm:$0xf0] }
 0x38c   :  { %5817 = vmatpush.bf16.msrb.mxu1 %v9181_v19  ;;  %v9117_v19 = vor.u32 %v10282_v0, %v9114_v2  ;;  %v4001_v27 = vpop.f32.mrf.mxu2  ;;  %v8528_v2 = vld [vmem:[#allocation6 + $0x88] sm:$0xf] }
 0x38d   :  { %5795 = vmatpush.bf16.msra.mxu3 %v8861_v13 }
 0x38e   :  { %5830 = vmatpush.bf16.msrb.mxu2 %v9309_v49  ;;  %5805 = vmatpush.bf16.msrb.mxu0 %v9037_v11  ;;  %v9245_v49 = vor.u32 %v10314_v6, %v9242_v5  ;;  %v10149_v11 = vld [vmem:[#allocation6 + $0xf4] sm:$0xf0]  ;;  %v8656_v5 = vld [vmem:[#allocation6 + $0x188] sm:$0xf] }
 0x38f   :  { %v8577_v37 = vor.u32 %v10149_v11, %v8576_v26  ;;  %v10197_v26 = vld [vmem:[#allocation6 + $0x274] sm:$0xf0] }
 0x390   :  { %5818 = vmatpush.bf16.msrb.mxu1 %v9165_v32  ;;  %v8845_v32 = vor.u32 %v10214_v28, %v8842_v29  ;;  %v8769_v29 = vor.u32 %v10197_v26, %v8768_v57  ;;  %v10129_v11 = vld [vmem:[#allocation6 + $0x54] sm:$0xf0]  ;;  %v9072_v26 = vld [vmem:[#allocation6 + $0x4c8] sm:$0xf] }
 0x391   :  { %v8497_v4 = vor.u32 %v10129_v11, %v8496_v60  ;;  %v9328_v11 = vld [vmem:[#allocation6 + $0x6c8] sm:$0xf] }
 0x392   :  { %5831 = vmatpush.bf16.msrb.mxu2 %v9293_v33  ;;  %5806 = vmatpush.bf16.msrb.mxu0 %v9021_v15  ;;  %v8973_v33 = vor.u32 %v10246_v52, %v8970_v24  ;;  %v8560_v15 = vld [vmem:[#allocation6 + $0xc8] sm:$0xf]  ;;  %v8657_v52 = vor.u32 %v10169_v7, %v8656_v5  ;;  %v10277_v5 = vld [vmem:[#allocation6 + $0x4f4] sm:$0xf0] }
 0x393   :  { %5796 = vmatpush.bf16.msra.mxu3 %v8845_v32  ;;  %v8561_v43 = vor.u32 %v10145_v38, %v8560_v15  ;;  %v8752_v32 = vld [vmem:[#allocation6 + $0x248] sm:$0xf]  ;;  %v10125_v38 = vld [vmem:[#allocation6 + $0x34] sm:$0xf0] }
 0x394   :  { %5819 = vmatpush.bf16.msrb.mxu1 %v9149_v40  ;;  %v8688_v40 = vld [vmem:[#allocation6 + $0x1c8] sm:$0xf] }
 0x395   :  { %v9216_v7 = vld [vmem:[#allocation6 + $0x5e8] sm:$0xf] }
 0x396   :  { %5832 = vmatpush.bf16.msrb.mxu2 %v9277_v42  ;;  %5807 = vmatpush.bf16.msrb.mxu0 %v9005_v54  ;;  %v10177_v42 = vld [vmem:[#allocation6 + $0x1d4] sm:$0xf0]  ;;  %v8672_v54 = vld [vmem:[#allocation6 + $0x1a8] sm:$0xf] }
 0x397   :  { %v8689_v47 = vor.u32 %v10177_v42, %v8688_v40  ;;  %v8673_v0 = vor.u32 %v10173_v48, %v8672_v54  ;;  %v8608_v40 = vld [vmem:[#allocation6 + $0x128] sm:$0xf]  ;;  %v10157_v42 = vld [vmem:[#allocation6 + $0x134] sm:$0xf0] }
 0x398   :  { %5820 = vmatpush.bf16.msrb.mxu1 %v9133_v58  ;;  %v10205_v58 = vld [vmem:[#allocation6 + $0x2b4] sm:$0xf0]  ;;  %v8609_v48 = vor.u32 %v10157_v42, %v8608_v40  ;;  %v9418_v40 = vld [vmem:[#allocation6 + $0x790] sm:$0xf0] }
 0x399   :  { %v8801_v6 = vor.u32 %v10205_v58, %v8800_v55  ;;  %v8592_v55 = vld [vmem:[#allocation6 + $0x108] sm:$0xf]  ;;  %v8737_v58 = vor.u32 %v10189_v44, %v8736_v21 }
 0x39a   :  { %5833 = vmatpush.bf16.msrb.mxu2 %v9261_v16  ;;  %5808 = vmatpush.bf16.msrb.mxu0 %v8989_v14  ;;  %v8545_v16 = vor.u32 %v10141_v50, %v8544_v53  ;;  %v8529_v14 = vor.u32 %v10137_v1, %v8528_v2  ;;  %v8464_v53 = vld [vmem:[#allocation6 + $0x8] sm:$0xf] }
 0x39b   :  { %v9088_v1 = vld [vmem:[#allocation6 + $0x4e8] sm:$0xf] }
 0x39c   :  { %5821 = vmatpush.bf16.msrb.mxu1 %v9117_v19  ;;  %v10133_v19 = vld [vmem:[#allocation6 + $0x74] sm:$0xf0] }
 0x39d   :  { %v8513_v27 = vor.u32 %v10133_v19, %v8512_v46  ;;  %v9450_v19 = vld [vmem:[#allocation6 + $0x7d0] sm:$0xf0] }
 0x39e   :  { %5834 = vmatpush.bf16.msrb.mxu2 %v9245_v49  ;;  %5809 = vmatpush.bf16.msrb.mxu0 %v8973_v33  ;;  %v4025_v13 = vpop.f32.mrf.mxu0  ;;  %v8640_v49 = vld [vmem:[#allocation6 + $0x168] sm:$0xf]  ;;  %v10193_v33 = vld [vmem:[#allocation6 + $0x254] sm:$0xf0] }
 0x39f   :  { %v4026_v63 = vadd.f32 %v4025_v13, %v4013_v10  ;;  %v8641_v28 = vor.u32 %v10165_v25, %v8640_v49  ;;  %v10309_v10 = vld [vmem:[#allocation6 + $0x5f4] sm:$0xf0]  ;;  %v9344_v13 = vld [vmem:[#allocation6 + $0x6e8] sm:$0xf]  ;;  %v9089_v25 = vor.u32 %v10277_v5, %v9088_v1 }
 0x3a0   :  { %5822 = vmatpush.bf16.msrb.mxu1 %v9101_v41  ;;  %v4038_v24 = vpop.f32.mrf.mxu1  ;;  %v9024_v1 = vld [vmem:[#allocation6 + $0x468] sm:$0xf]  ;;  %v10261_v5 = vld [vmem:[#allocation6 + $0x474] sm:$0xf0] }
 0x3a1   :  { %5810 = vmatmul.bf16.vlgmr.msrb.gmra.mxu0 %v10853_v59  ;;  %v4039_v31 = vadd.f32 %v4038_v24, %v4026_v63  ;;  %v8593_v24 = vor.u32 %v10153_v36, %v8592_v55  ;;  %v9217_v63 = vor.u32 %v10309_v10, %v9216_v7  ;;  %v10354_v55 = vld [vmem:[#allocation6 + $0x764] sm:$0xf]  ;;  %v9152_v7 = vld [vmem:[#allocation6 + $0x568] sm:$0xf] }
 0x3a2   :  { %5835 = vmatpush.bf16.msrb.mxu2 %v9229_v62  ;;  %5854 = vmatpush.bf16.msra.mxu0 %v8577_v37  ;;  %v8625_v37 = vor.u32 %v10161_v30, %v8624_v12  ;;  %v10337_v12 = vld [vmem:[#allocation6 + $0x6d4] sm:$0xf0]  ;;  %v10362_v30 = vld [vmem:[#allocation6 + $0x7a4] sm:$0xf] }
 0x3a3   :  { %5823 = vmatmul.bf16.vlgmr.msrb.gmra.mxu1 %v10855_v61 }
 0x3a4   :  { %5867 = vmatpush.bf16.msra.mxu1 %v8705_v51  ;;  %v8480_v51 = vld [vmem:[#allocation6 + $0x28] sm:$0xf] }
 0x3a5   :  { %5836 = vmatmul.bf16.vlgmr.msrb.gmra.mxu2 %v10861_v3  ;;  %v8481_v54 = vor.u32 %v10125_v38, %v8480_v51  ;;  %v9312_v51 = vld [vmem:[#allocation6 + $0x6a8] sm:$0xf]  ;;  %v10358_v38 = vld [vmem:[#allocation6 + $0x784] sm:$0xf] }
 0x3a6   :  { %5880 = vmatpush.bf16.msra.mxu2 %v8833_v39  ;;  %5855 = vmatpush.bf16.msra.mxu0 %v8561_v43  ;;  %v4027_v62 = vpop.f32.mrf.mxu0  ;;  %v8753_v39 = vor.u32 %v10193_v33, %v8752_v32  ;;  %v10370_v43 = vld [vmem:[#allocation6 + $0x7e4] sm:$0xf]  ;;  %v9056_v33 = vld [vmem:[#allocation6 + $0x4a8] sm:$0xf] }
 0x3a7   :  { %v9184_v62 = vld [vmem:[#allocation6 + $0x5a8] sm:$0xf] }
 0x3a8   :  { %5868 = vmatpush.bf16.msra.mxu1 %v8689_v47  ;;  %v4051_v34 = vpop.f32.mrf.mxu2  ;;  %v4040_v15 = vpop.f32.mrf.mxu1  ;;  %v9466_v47 = vld [vmem:[#allocation6 + $0x7f0] sm:$0xf0] }
 0x3a9   :  { %v4052_v35 = vadd.f32 %v4051_v34, %v4039_v31  ;;  %v9434_v31 = vld [vmem:[#allocation6 + $0x7b0] sm:$0xf0]  ;;  %v10333_v15 = vld [vmem:[#allocation6 + $0x6b4] sm:$0xf0] }
 0x3aa   :  { %5881 = vmatpush.bf16.msra.mxu2 %v8817_v45  ;;  %5856 = vmatpush.bf16.msra.mxu0 %v8545_v16  ;;  %v4064_v41 = vpop.f32.mrf.mxu3  ;;  %v10121_v45 = vld [vmem:[#allocation6 + $0x14] sm:$0xf0]  ;;  %v8720_v16 = vld [vmem:[#allocation6 + $0x208] sm:$0xf]  ;;  %v9313_v44 = vor.u32 %v10333_v15, %v9312_v51 }
 0x3ab   :  { %v4065_v20 = vadd.f32 %v4064_v41, %v4052_v35  ;;  %v8465_v46 = vor.u32 %v10121_v45, %v8464_v53  ;;  %v9329_v35 = vor.u32 %v10337_v12, %v9328_v11  ;;  %v10269_v41 = vld [vmem:[#allocation6 + $0x4b4] sm:$0xf0]  ;;  %v9168_v53 = vld [vmem:[#allocation6 + $0x588] sm:$0xf]  ;;  %v9421_v45 = vor.u32 %v10358_v38, %v9418_v40  ;;  %v10346_v11 = vld [vmem:[#allocation6 + $0x724] sm:$0xf] }
 0x3ac   :  { %5869 = vmatpush.bf16.msra.mxu1 %v8673_v0  ;;  %v10185_v0 = vld [vmem:[#allocation6 + $0x214] sm:$0xf0]  ;;  %v9057_v42 = vor.u32 %v10269_v41, %v9056_v33  ;;  %v9370_v12 = vld [vmem:[#allocation6 + $0x730] sm:$0xf0]  ;;  %v9120_v51 = vld [vmem:[#allocation6 + $0x528] sm:$0xf] }
 0x3ad   :  { %vm4075_vm7 = vcmp.gt.f32.partialorder %v4065_v20, 0.0  ;;  %v4083_v50 = vmul.f32 0.2, %v4065_v20  ;;  %v8721_v49 = vor.u32 %v10185_v0, %v8720_v16  ;;  %v9373_v15 = vor.u32 %v10346_v11, %v9370_v12  ;;  %v10285_v38 = vld [vmem:[#allocation6 + $0x534] sm:$0xf0] }
 0x3ae   :  { %5882 = vmatpush.bf16.msra.mxu2 %v8801_v6  ;;  %5857 = vmatpush.bf16.msra.mxu0 %v8529_v14  ;;  %v9469_v6 = vor.u32 %v10370_v43, %v9466_v47  ;;  %v10341_v14 = vld [vmem:[#allocation6 + $0x6f4] sm:$0xf0]  ;;  %v9248_v40 = vld [vmem:[#allocation6 + $0x628] sm:$0xf]  ;;  %v8818_v11 = vld [vmem:[#allocation6 + $0x2d8] sm:$0xf0] }
 0x3af   :  { %v4091_v2 = vsel %vm4075_vm7, %v4065_v20, %v4083_v50  ;;  %v9345_v57 = vor.u32 %v10341_v14, %v9344_v13  ;;  %v9040_v20 = vld [vmem:[#allocation6 + $0x488] sm:$0xf]  ;;  %v10265_v47 = vld [vmem:[#allocation6 + $0x494] sm:$0xf0] }
 0x3b0   :  { %5870 = vmatpush.bf16.msra.mxu1 %v8657_v52  ;;  %v10883_v8 = vpack.c.bf16 %v4091_v2, %v4091_v2  ;;  %v4053_v9 = vpop.f32.mrf.mxu2  ;;  %v10297_v50 = vld [vmem:[#allocation6 + $0x594] sm:$0xf0]  ;;  %v9041_v36 = vor.u32 %v10265_v47, %v9040_v20  ;;  %v9280_v14 = vld [vmem:[#allocation6 + $0x668] sm:$0xf] }
 0x3b1   :  { %v9169_v2 = vor.u32 %v10297_v50, %v9168_v53  ;;  %v10293_v13 = vld [vmem:[#allocation6 + $0x574] sm:$0xf0]  ;;  %v8960_v47 = vld [vmem:[#allocation6 + $0x3e8] sm:$0xf]  ;;  %v9121_v50 = vor.u32 %v10285_v38, %v9120_v51  ;;  %v8802_v51 = vld [vmem:[#allocation6 + $0x2b8] sm:$0xf0] }
 0x3b2   :  { %5883 = vmatpush.bf16.msra.mxu2 %v8785_v18  ;;  %5858 = vmatpush.bf16.msra.mxu0 %v8513_v27  ;;  %v4066_v52 = vpop.f32.mrf.mxu3  ;;  %v10366_v18 = vld [vmem:[#allocation6 + $0x7c4] sm:$0xf]  ;;  %v10273_v27 = vld [vmem:[#allocation6 + $0x4d4] sm:$0xf0]  ;;  %v8928_v12 = vld [vmem:[#allocation6 + $0x3a8] sm:$0xf] }
 0x3b3   :  { %5745 = vmatmul.bf16.vlgmr.msrb.gmra.mxu3 %v10883_v8  ;;  %v9453_v60 = vor.u32 %v10366_v18, %v9450_v19  ;;  %v9073_v32 = vor.u32 %v10273_v27, %v9072_v26  ;;  %v10325_v52 = vld [vmem:[#allocation6 + $0x674] sm:$0xf0]  ;;  %v9025_v19 = vor.u32 %v10261_v5, %v9024_v1  ;;  %v9136_v26 = vld [vmem:[#allocation6 + $0x548] sm:$0xf]  ;;  %v8578_v1 = vld [vmem:[#allocation6 + $0xf8] sm:$0xf0] }
 0x3b4   :  { %5871 = vmatpush.bf16.msra.mxu1 %v8641_v28  ;;  %5841 = vmatpush.bf16.msrb.mxu3 %v9469_v6  ;;  %v9200_v28 = vld [vmem:[#allocation6 + $0x5c8] sm:$0xf]  ;;  %v10245_v53 = vld [vmem:[#allocation6 + $0x3f4] sm:$0xf0]  ;;  %v10179_v5 = vld [vmem:[#allocation6 + $0x1ec] sm:$0xf] }
 0x3b5   :  { %v10233_v38 = vld [vmem:[#allocation6 + $0x394] sm:$0xf0] }
 0x3b6   :  { %5884 = vmatpush.bf16.msra.mxu2 %v8769_v29  ;;  %5859 = vmatpush.bf16.msra.mxu0 %v8497_v4  ;;  %v10305_v29 = vld [vmem:[#allocation6 + $0x5d4] sm:$0xf0] }
 0x3b7   :  { %v9201_v34 = vor.u32 %v10305_v29, %v9200_v28  ;;  %v10301_v4 = vld [vmem:[#allocation6 + $0x5b4] sm:$0xf0] }
 0x3b8   :  { %5872 = vmatpush.bf16.msra.mxu1 %v8625_v37  ;;  %5842 = vmatpush.bf16.msrb.mxu3 %v9453_v60  ;;  %v9437_v37 = vor.u32 %v10362_v30, %v9434_v31  ;;  %v9185_v21 = vor.u32 %v10301_v4, %v9184_v62  ;;  %v10289_v28 = vld [vmem:[#allocation6 + $0x554] sm:$0xf0]  ;;  %v9264_v60 = vld [vmem:[#allocation6 + $0x648] sm:$0xf] }
 0x3b9   :  { %v10321_v29 = vld [vmem:[#allocation6 + $0x654] sm:$0xf0]  ;;  %v9137_v41 = vor.u32 %v10289_v28, %v9136_v26  ;;  %v8992_v4 = vld [vmem:[#allocation6 + $0x428] sm:$0xf]  ;;  %v8562_v26 = vld [vmem:[#allocation6 + $0xd8] sm:$0xf0] }
 0x3ba   :  { %5885 = vmatpush.bf16.msra.mxu2 %v8753_v39  ;;  %5860 = vmatpush.bf16.msra.mxu0 %v8481_v54  ;;  %v10887_v39 = vld [vmem:[#allocation7] sm:$0xf]  ;;  %v9296_v54 = vld [vmem:[#allocation6 + $0x688] sm:$0xf]  ;;  %v9265_v62 = vor.u32 %v10321_v29, %v9264_v60  ;;  %v8690_v28 = vld [vmem:[#allocation6 + $0x1d8] sm:$0xf0] }
 0x3bb   :  { %v4358_v43 = vperm.slane %v10887_v39, 0  ;;  %v10207_v29 = vld [vmem:[#allocation6 + $0x2cc] sm:$0xf] }
 0x3bc   :  { %5873 = vmatpush.bf16.msra.mxu1 %v8609_v48  ;;  %5843 = vmatpush.bf16.msrb.mxu3 %v9437_v37  ;;  %v10329_v48 = vld [vmem:[#allocation6 + $0x694] sm:$0xf0] }
 0x3bd   :  { %v9297_v6 = vor.u32 %v10329_v48, %v9296_v54  ;;  %v10253_v37 = vld [vmem:[#allocation6 + $0x434] sm:$0xf0] }
 0x3be   :  { %5886 = vmatpush.bf16.msra.mxu2 %v8737_v58  ;;  %5861 = vmatpush.bf16.msra.mxu0 %v8465_v46  ;;  %v9402_v58 = vld [vmem:[#allocation6 + $0x770] sm:$0xf0]  ;;  %v5655_v16 = vpop.f32.mrf.mxu0  ;;  %v10350_v46 = vld [vmem:[#allocation6 + $0x744] sm:$0xf]  ;;  %v10249_v48 = vld [vmem:[#allocation6 + $0x414] sm:$0xf0] }
 0x3bf   :  { %v5656_v9 = vadd.f32 %v5655_v16, %v4358_v43  ;;  %v9405_v10 = vor.u32 %v10354_v55, %v9402_v58  ;;  %v8993_v43 = vor.u32 %v10253_v37, %v8992_v4  ;;  %v9104_v55 = vld [vmem:[#allocation6 + $0x508] sm:$0xf]  ;;  %v10281_v58 = vld [vmem:[#allocation6 + $0x514] sm:$0xf0]  ;;  %v10203_v37 = vld [vmem:[#allocation6 + $0x2ac] sm:$0xf] }
 0x3c0   :  { %5874 = vmatpush.bf16.msra.mxu1 %v8593_v24  ;;  %v5668_v0 = vpop.f32.mrf.mxu1  ;;  %5844 = vmatpush.bf16.msrb.mxu3 %v9421_v45  ;;  %v9386_v24 = vld [vmem:[#allocation6 + $0x750] sm:$0xf0]  ;;  %v8976_v45 = vld [vmem:[#allocation6 + $0x408] sm:$0xf] }
 0x3c1   :  { %5862 = vmatmul.bf16.vlgmr.msra.gmra.mxu0 %v10817_v23  ;;  %v5669_v18 = vadd.f32 %v5668_v0, %v5656_v9  ;;  %v9389_v27 = vor.u32 %v10350_v46, %v9386_v24  ;;  %v9232_v16 = vld [vmem:[#allocation6 + $0x608] sm:$0xf]  ;;  %v10313_v0 = vld [vmem:[#allocation6 + $0x614] sm:$0xf0]  ;;  %v9105_v46 = vor.u32 %v10281_v58, %v9104_v55 }
 0x3c2   :  { %5887 = vmatpush.bf16.msra.mxu2 %v8721_v49  ;;  %5906 = vmatpush.bf16.msrb.mxu0 %v9089_v25  ;;  %v9153_v49 = vor.u32 %v10293_v13, %v9152_v7  ;;  %v9281_v25 = vor.u32 %v10325_v52, %v9280_v14  ;;  %v8706_v7 = vld [vmem:[#allocation6 + $0x1f8] sm:$0xf0]  ;;  %v8977_v13 = vor.u32 %v10249_v48, %v8976_v45  ;;  %v10211_v14 = vld [vmem:[#allocation6 + $0x2ec] sm:$0xf]  ;;  %v8896_v48 = vld [vmem:[#allocation6 + $0x368] sm:$0xf] }
 0x3c3   :  { %5875 = vmatmul.bf16.vlgmr.msra.gmra.mxu1 %v10820_v56  ;;  %5797 = vmatmul.bf16.vlgmr.msra.gmra.mxu3 %v10824_v22  ;;  %v8834_v52 = vld [vmem:[#allocation6 + $0x2f8] sm:$0xf0]  ;;  %v9233_v24 = vor.u32 %v10313_v0, %v9232_v16  ;;  %v10229_v55 = vld [vmem:[#allocation6 + $0x374] sm:$0xf0]  ;;  %v10131_v0 = vld [vmem:[#allocation6 + $0x6c] sm:$0xf] }
 0x3c4   :  { %5919 = vmatpush.bf16.msrb.mxu1 %v9217_v63  ;;  %v9008_v63 = vld [vmem:[#allocation6 + $0x448] sm:$0xf]  ;;  %5845 = vmatpush.bf16.msrb.mxu3 %v9405_v10 }
 0x3c5   :  { %5888 = vmatmul.bf16.vlgmr.msra.gmra.mxu2 %v10822_v17 }
 0x3c6   :  { %5932 = vmatpush.bf16.msrb.mxu2 %v9345_v57  ;;  %5907 = vmatpush.bf16.msrb.mxu0 %v9073_v32  ;;  %v10257_v57 = vld [vmem:[#allocation6 + $0x454] sm:$0xf0] }
 0x3c7   :  { %v9009_v32 = vor.u32 %v10257_v57, %v9008_v63  ;;  %v10143_v63 = vld [vmem:[#allocation6 + $0xcc] sm:$0xf]  ;;  %v8837_v57 = vor.u32 %v10211_v14, %v8834_v52  ;;  %v8770_v14 = vld [vmem:[#allocation6 + $0x278] sm:$0xf0] }
 0x3c8   :  { %5920 = vmatpush.bf16.msrb.mxu1 %v9201_v34  ;;  %v5681_v30 = vpop.f32.mrf.mxu2  ;;  %v5657_v34 = vpop.f32.mrf.mxu0  ;;  %5846 = vmatpush.bf16.msrb.mxu3 %v9389_v27  ;;  %v10175_v27 = vld [vmem:[#allocation6 + $0x1cc] sm:$0xf] }
 0x3c9   :  { %v5682_v33 = vadd.f32 %v5681_v30, %v5669_v18  ;;  %v8944_v18 = vld [vmem:[#allocation6 + $0x3c8] sm:$0xf]  ;;  %v10237_v30 = vld [vmem:[#allocation6 + $0x3b4] sm:$0xf0]  ;;  %v8821_v34 = vor.u32 %v10207_v29, %v8818_v11 }
 0x3ca   :  { %5933 = vmatpush.bf16.msrb.mxu2 %v9329_v35  ;;  %5908 = vmatpush.bf16.msrb.mxu0 %v9057_v42  ;;  %v5694_v31 = vpop.f32.mrf.mxu3  ;;  %v5670_v35 = vpop.f32.mrf.mxu1  ;;  %v10317_v42 = vld [vmem:[#allocation6 + $0x634] sm:$0xf0]  ;;  %v8929_v4 = vor.u32 %v10237_v30, %v8928_v12 }
 0x3cb   :  { %v10893_v20 = vadd.f32 %v5694_v31, %v5682_v33  ;;  %v9249_v54 = vor.u32 %v10317_v42, %v9248_v40  ;;  %v8565_v31 = vor.u32 %v10143_v63, %v8562_v26  ;;  %v10139_v33 = vld [vmem:[#allocation6 + $0xac] sm:$0xf]  ;;  %v8546_v35 = vld [vmem:[#allocation6 + $0xb8] sm:$0xf0]  ;;  %v10221_v29 = vld [vmem:[#allocation6 + $0x334] sm:$0xf0] }
 0x3cc   :  { %5921 = vmatpush.bf16.msrb.mxu1 %v9185_v21  ;;  %v10342_v21 = vld [vmem:[#allocation6 + $0x704] sm:$0xf]  ;;  %5847 = vmatpush.bf16.msrb.mxu3 %v9373_v15  ;;  %v8912_v15 = vld [vmem:[#allocation6 + $0x388] sm:$0xf]  ;;  %v8549_v40 = vor.u32 %v10139_v33, %v8546_v35  ;;  %v10159_v63 = vld [vmem:[#allocation6 + $0x14c] sm:$0xf] }
 0x3cd   :  { %v8913_v45 = vor.u32 %v10233_v38, %v8912_v15  ;;  %v10155_v35 = vld [vmem:[#allocation6 + $0x12c] sm:$0xf]  ;;  %v10217_v15 = vld [vmem:[#allocation6 + $0x314] sm:$0xf0]  ;;  %v9472_v38 = vld [vmem:[#allocation6 + $0x7e8] sm:$0xf] }
 0x3ce   :  { %5934 = vmatpush.bf16.msrb.mxu2 %v9313_v44  ;;  %5909 = vmatpush.bf16.msrb.mxu0 %v9041_v36  ;;  %v9354_v44 = vld [vmem:[#allocation6 + $0x710] sm:$0xf0] }
 0x3cf   :  { %v9357_v36 = vor.u32 %v10342_v21, %v9354_v44  ;;  %v10135_v21 = vld [vmem:[#allocation6 + $0x8c] sm:$0xf]  ;;  %v8805_v44 = vor.u32 %v10203_v37, %v8802_v51  ;;  %v8738_v37 = vld [vmem:[#allocation6 + $0x238] sm:$0xf0]  ;;  %v8848_v51 = vld [vmem:[#allocation6 + $0x308] sm:$0xf] }
 0x3d0   :  { %5922 = vmatpush.bf16.msrb.mxu1 %v9169_v2  ;;  %v10147_v2 = vld [vmem:[#allocation6 + $0xec] sm:$0xf]  ;;  %v5683_v9 = vpop.f32.mrf.mxu2 }
 0x3d1   :  { %5848 = vmatpush.bf16.msrb.mxu3 %v9357_v36  ;;  %v8642_v9 = vld [vmem:[#allocation6 + $0x178] sm:$0xf0] }
 0x3d2   :  { %5935 = vmatpush.bf16.msrb.mxu2 %v9297_v6  ;;  %5910 = vmatpush.bf16.msrb.mxu0 %v9025_v19  ;;  %v8961_v6 = vor.u32 %v10245_v53, %v8960_v47  ;;  %v5696_v10 = vpop.f32.mrf.mxu3  ;;  %v10241_v19 = vld [vmem:[#allocation6 + $0x3d4] sm:$0xf0]  ;;  %v10167_v47 = vld [vmem:[#allocation6 + $0x18c] sm:$0xf]  ;;  %v8658_v53 = vld [vmem:[#allocation6 + $0x198] sm:$0xf0] }
 0x3d3   :  { %v8945_v60 = vor.u32 %v10241_v19, %v8944_v18  ;;  %v8661_v16 = vor.u32 %v10167_v47, %v8658_v53  ;;  %v8897_v10 = vor.u32 %v10229_v55, %v8896_v48  ;;  %v10151_v53 = vld [vmem:[#allocation6 + $0x10c] sm:$0xf]  ;;  %v8722_v48 = vld [vmem:[#allocation6 + $0x218] sm:$0xf0] }
 0x3d4   :  { %5923 = vmatpush.bf16.msrb.mxu1 %v9153_v49  ;;  %v8581_v49 = vor.u32 %v10147_v2, %v8578_v1  ;;  %5849 = vmatmul.bf16.vlgmr.msrb.gmra.mxu3 %v10883_v8  ;;  %v10275_v55 = vld [vmem:[#allocation6 + $0x4ec] sm:$0xf] }
 0x3d5   :  { %5893 = vmatpush.bf16.msra.mxu3 %v8961_v6 }
 0x3d6   :  { %5936 = vmatpush.bf16.msrb.mxu2 %v9281_v25  ;;  %5911 = vmatpush.bf16.msrb.mxu0 %v9009_v32  ;;  %v8709_v25 = vor.u32 %v10179_v5, %v8706_v7  ;;  %v8693_v32 = vor.u32 %v10175_v27, %v8690_v28  ;;  %v8514_v5 = vld [vmem:[#allocation6 + $0x78] sm:$0xf0]  ;;  %v10163_v7 = vld [vmem:[#allocation6 + $0x16c] sm:$0xf] }
 0x3d7   :  { %v8517_v18 = vor.u32 %v10131_v0, %v8514_v5  ;;  %v8645_v19 = vor.u32 %v10163_v7, %v8642_v9  ;;  %v10191_v27 = vld [vmem:[#allocation6 + $0x24c] sm:$0xf]  ;;  %v8754_v28 = vld [vmem:[#allocation6 + $0x258] sm:$0xf0]  ;;  %v9456_v7 = vld [vmem:[#allocation6 + $0x7c8] sm:$0xf] }
 0x3d8   :  { %5924 = vmatpush.bf16.msrb.mxu1 %v9137_v41  ;;  %v10171_v41 = vld [vmem:[#allocation6 + $0x1ac] sm:$0xf]  ;;  %v8757_v33 = vor.u32 %v10191_v27, %v8754_v28  ;;  %v9218_v0 = vld [vmem:[#allocation6 + $0x5f8] sm:$0xf0]  ;;  %v10369_v9 = vld [vmem:[#allocation6 + $0x7d4] sm:$0xf0] }
 0x3d9   :  { %5894 = vmatpush.bf16.msra.mxu3 %v8945_v60  ;;  %v8864_v60 = vld [vmem:[#allocation6 + $0x328] sm:$0xf]  ;;  %v9346_v5 = vld [vmem:[#allocation6 + $0x6f8] sm:$0xf0] }
 0x3da   :  { %5937 = vmatpush.bf16.msrb.mxu2 %v9265_v62  ;;  %5912 = vmatpush.bf16.msrb.mxu0 %v8993_v43  ;;  %v8674_v62 = vld [vmem:[#allocation6 + $0x1b8] sm:$0xf0] }
 0x3db   :  { %v8677_v42 = vor.u32 %v10171_v41, %v8674_v62  ;;  %v8530_v43 = vld [vmem:[#allocation6 + $0x98] sm:$0xf0]  ;;  %v8865_v62 = vor.u32 %v10221_v29, %v8864_v60  ;;  %v10267_v60 = vld [vmem:[#allocation6 + $0x4ac] sm:$0xf] }
 0x3dc   :  { %5925 = vmatpush.bf16.msrb.mxu1 %v9121_v50  ;;  %v10199_v50 = vld [vmem:[#allocation6 + $0x28c] sm:$0xf]  ;;  %v8533_v36 = vor.u32 %v10135_v21, %v8530_v43  ;;  %v8610_v41 = vld [vmem:[#allocation6 + $0x138] sm:$0xf0]  ;;  %v10373_v21 = vld [vmem:[#allocation6 + $0x7f4] sm:$0xf0] }
 0x3dd   :  { %5895 = vmatpush.bf16.msra.mxu3 %v8929_v4  ;;  %v10187_v4 = vld [vmem:[#allocation6 + $0x22c] sm:$0xf]  ;;  %v8466_v43 = vld [vmem:[#allocation6 + $0x18] sm:$0xf0] }
 0x3de   :  { %5938 = vmatpush.bf16.msrb.mxu2 %v9249_v54  ;;  %5913 = vmatpush.bf16.msrb.mxu0 %v8977_v13  ;;  %v8786_v54 = vld [vmem:[#allocation6 + $0x298] sm:$0xf0]  ;;  %v5707_v58 = vpop.f32.mrf.mxu0  ;;  %v10195_v13 = vld [vmem:[#allocation6 + $0x26c] sm:$0xf]  ;;  %v8741_v47 = vor.u32 %v10187_v4, %v8738_v37  ;;  %v4359_v4 = vperm.slane %v10887_v39, 1 }
 0x3df   :  { %v5708_v2 = vadd.f32 %v5707_v58, %v10893_v20  ;;  %v8789_v1 = vor.u32 %v10199_v50, %v8786_v54  ;;  %v8773_v20 = vor.u32 %v10195_v13, %v8770_v14  ;;  %v10183_v50 = vld [vmem:[#allocation6 + $0x20c] sm:$0xf]  ;;  %v8849_v54 = vor.u32 %v10217_v15, %v8848_v51  ;;  %v9090_v58 = vld [vmem:[#allocation6 + $0x4f8] sm:$0xf0] }
 0x3e0   :  { %5926 = vmatpush.bf16.msrb.mxu1 %v9105_v46  ;;  %v5720_v6 = vpop.f32.mrf.mxu1  ;;  %v8880_v46 = vld [vmem:[#allocation6 + $0x348] sm:$0xf]  ;;  %v9093_v13 = vor.u32 %v10275_v55, %v9090_v58  ;;  %v9058_v29 = vld [vmem:[#allocation6 + $0x4b8] sm:$0xf0]  ;;  %v10263_v37 = vld [vmem:[#allocation6 + $0x48c] sm:$0xf] }
 0x3e1   :  { %5914 = vmatmul.bf16.vlgmr.msrb.gmra.mxu0 %v10853_v59  ;;  %5896 = vmatpush.bf16.msra.mxu3 %v8913_v45  ;;  %v10900_v52 = vadd.f32 %v5720_v6, %v5708_v2  ;;  %v8594_v45 = vld [vmem:[#allocation6 + $0x118] sm:$0xf0]  ;;  %v10339_v2 = vld [vmem:[#allocation6 + $0x6ec] sm:$0xf] }
 0x3e2   :  { %5939 = vmatpush.bf16.msrb.mxu2 %v9233_v24  ;;  %5958 = vmatpush.bf16.msra.mxu0 %v8581_v49  ;;  %v10225_v24 = vld [vmem:[#allocation6 + $0x354] sm:$0xf0]  ;;  %v10127_v49 = vld [vmem:[#allocation6 + $0x4c] sm:$0xf]  ;;  %v9042_v51 = vld [vmem:[#allocation6 + $0x498] sm:$0xf0] }
 0x3e3   :  { %5927 = vmatmul.bf16.vlgmr.msrb.gmra.mxu1 %v10855_v61  ;;  %v8881_v26 = vor.u32 %v10225_v24, %v8880_v46  ;;  %v10271_v46 = vld [vmem:[#allocation6 + $0x4cc] sm:$0xf]  ;;  %v9074_v24 = vld [vmem:[#allocation6 + $0x4d8] sm:$0xf0] }
 0x3e4   :  { %5971 = vmatpush.bf16.msra.mxu1 %v8709_v25  ;;  %v8498_v25 = vld [vmem:[#allocation6 + $0x58] sm:$0xf0]  ;;  %v9077_v27 = vor.u32 %v10271_v46, %v9074_v24  ;;  %v10287_v24 = vld [vmem:[#allocation6 + $0x54c] sm:$0xf] }
 0x3e5   :  { %5940 = vmatmul.bf16.vlgmr.msrb.gmra.mxu2 %v10861_v3  ;;  %5897 = vmatpush.bf16.msra.mxu3 %v8897_v10  ;;  %v8501_v12 = vor.u32 %v10127_v49, %v8498_v25  ;;  %v8725_v10 = vor.u32 %v10183_v50, %v8722_v48  ;;  %v10303_v49 = vld [vmem:[#allocation6 + $0x5cc] sm:$0xf] }
 0x3e6   :  { %5984 = vmatpush.bf16.msra.mxu2 %v8837_v57  ;;  %5959 = vmatpush.bf16.msra.mxu0 %v8565_v31  ;;  %v8626_v57 = vld [vmem:[#allocation6 + $0x158] sm:$0xf0]  ;;  %v5709_v11 = vpop.f32.mrf.mxu0  ;;  %v10123_v31 = vld [vmem:[#allocation6 + $0x2c] sm:$0xf] }
 0x3e7   :  { %v8629_v30 = vor.u32 %v10159_v63, %v8626_v57  ;;  %v10335_v25 = vld [vmem:[#allocation6 + $0x6cc] sm:$0xf]  ;;  %v9330_v63 = vld [vmem:[#allocation6 + $0x6d8] sm:$0xf0]  ;;  %v9440_v57 = vld [vmem:[#allocation6 + $0x7a8] sm:$0xf] }
 0x3e8   :  { %5972 = vmatpush.bf16.msra.mxu1 %v8693_v32  ;;  %v5722_v32 = vpop.f32.mrf.mxu1  ;;  %v9333_v11 = vor.u32 %v10335_v25, %v9330_v63  ;;  %v10259_v50 = vld [vmem:[#allocation6 + $0x46c] sm:$0xf]  ;;  %v9376_v25 = vld [vmem:[#allocation6 + $0x728] sm:$0xf]  ;;  %v10349_v63 = vld [vmem:[#allocation6 + $0x734] sm:$0xf0] }
 0x3e9   :  { %5898 = vmatpush.bf16.msra.mxu3 %v8881_v26  ;;  %v10365_v26 = vld [vmem:[#allocation6 + $0x7b4] sm:$0xf0]  ;;  %v10331_v32 = vld [vmem:[#allocation6 + $0x6ac] sm:$0xf] }
 0x3ea   :  { %5985 = vmatpush.bf16.msra.mxu2 %v8821_v34  ;;  %5960 = vmatpush.bf16.msra.mxu0 %v8549_v40  ;;  %v8482_v34 = vld [vmem:[#allocation6 + $0x38] sm:$0xf0] }
 0x3eb   :  { %v8485_v40 = vor.u32 %v10123_v31, %v8482_v34  ;;  %v9186_v31 = vld [vmem:[#allocation6 + $0x5b8] sm:$0xf0]  ;;  %v9424_v34 = vld [vmem:[#allocation6 + $0x788] sm:$0xf] }
 0x3ec   :  { %5973 = vmatpush.bf16.msra.mxu1 %v8677_v42  ;;  %v8613_v42 = vor.u32 %v10155_v35, %v8610_v41  ;;  %v10361_v35 = vld [vmem:[#allocation6 + $0x794] sm:$0xf0]  ;;  %v9061_v41 = vor.u32 %v10267_v60, %v9058_v29  ;;  %v10251_v60 = vld [vmem:[#allocation6 + $0x42c] sm:$0xf]  ;;  %v8994_v29 = vld [vmem:[#allocation6 + $0x438] sm:$0xf0] }
 0x3ed   :  { %5899 = vmatpush.bf16.msra.mxu3 %v8865_v62 }
 0x3ee   :  { %5986 = vmatpush.bf16.msra.mxu2 %v8805_v44  ;;  %5961 = vmatpush.bf16.msra.mxu0 %v8533_v36  ;;  %v10119_v44 = vld [vmem:[#allocation6 + $0xc] sm:$0xf]  ;;  %v9473_v36 = vor.u32 %v10373_v21, %v9472_v38  ;;  %v9425_v38 = vor.u32 %v10361_v35, %v9424_v34  ;;  %v9360_v34 = vld [vmem:[#allocation6 + $0x708] sm:$0xf]  ;;  %v10345_v35 = vld [vmem:[#allocation6 + $0x714] sm:$0xf0] }
 0x3ef   :  { %v8469_v6 = vor.u32 %v10119_v44, %v8466_v43  ;;  %v9408_v44 = vld [vmem:[#allocation6 + $0x768] sm:$0xf] }
 0x3f0   :  { %5974 = vmatpush.bf16.msra.mxu1 %v8661_v16  ;;  %v10307_v16 = vld [vmem:[#allocation6 + $0x5ec] sm:$0xf] }
 0x3f1   :  { %5900 = vmatpush.bf16.msra.mxu3 %v8849_v54  ;;  %v9221_v14 = vor.u32 %v10307_v16, %v9218_v0  ;;  %v9026_v54 = vld [vmem:[#allocation6 + $0x478] sm:$0xf0]  ;;  %v10323_v0 = vld [vmem:[#allocation6 + $0x66c] sm:$0xf] }
 0x3f2   :  { %5987 = vmatpush.bf16.msra.mxu2 %v8789_v1  ;;  %5962 = vmatpush.bf16.msra.mxu0 %v8517_v18  ;;  %v8597_v1 = vor.u32 %v10151_v53, %v8594_v45  ;;  %v9349_v18 = vor.u32 %v10339_v2, %v9346_v5  ;;  %v9045_v53 = vor.u32 %v10263_v37, %v9042_v51  ;;  %v9154_v16 = vld [vmem:[#allocation6 + $0x578] sm:$0xf0]  ;;  %v10247_v51 = vld [vmem:[#allocation6 + $0x40c] sm:$0xf] }
 0x3f3   :  { %v10907_v21 = vpop.f32.mrf.mxu2  ;;  %v9282_v2 = vld [vmem:[#allocation6 + $0x678] sm:$0xf0] }
 0x3f4   :  { %5975 = vmatpush.bf16.msra.mxu1 %v8645_v19  ;;  %v9457_v19 = vor.u32 %v10369_v9, %v9456_v7  ;;  %5901 = vmatmul.bf16.vlgmr.msra.gmra.mxu3 %v10824_v22  ;;  %v9029_v7 = vor.u32 %v10259_v50, %v9026_v54 }
 0x3f5   :  { %5945 = vmatpush.bf16.msrb.mxu3 %v9473_v36  ;;  %v10291_v36 = vld [vmem:[#allocation6 + $0x56c] sm:$0xf] }
 0x3f6   :  { %5988 = vmatpush.bf16.msra.mxu2 %v8773_v20  ;;  %5963 = vmatpush.bf16.msra.mxu0 %v8501_v12  ;;  %v9202_v20 = vld [vmem:[#allocation6 + $0x5d8] sm:$0xf0]  ;;  %v9441_v12 = vor.u32 %v10365_v26, %v9440_v57  ;;  %v9157_v9 = vor.u32 %v10291_v36, %v9154_v16  ;;  %v10235_v36 = vld [vmem:[#allocation6 + $0x3ac] sm:$0xf] }
 0x3f7   :  { %v9205_v28 = vor.u32 %v10303_v49, %v9202_v20  ;;  %v9266_v49 = vld [vmem:[#allocation6 + $0x658] sm:$0xf0] }
 0x3f8   :  { %5976 = vmatpush.bf16.msra.mxu1 %v8629_v30  ;;  %v10299_v30 = vld [vmem:[#allocation6 + $0x5ac] sm:$0xf]  ;;  %v8930_v16 = vld [vmem:[#allocation6 + $0x3b8] sm:$0xf0] }
 0x3f9   :  { %5946 = vmatpush.bf16.msrb.mxu3 %v9457_v19  ;;  %v9189_v62 = vor.u32 %v10299_v30, %v9186_v31  ;;  %v10319_v19 = vld [vmem:[#allocation6 + $0x64c] sm:$0xf]  ;;  %v9122_v31 = vld [vmem:[#allocation6 + $0x538] sm:$0xf0] }
 0x3fa   :  { %5989 = vmatpush.bf16.msra.mxu2 %v8757_v33  ;;  %5964 = vmatpush.bf16.msra.mxu0 %v8485_v40  ;;  %v9314_v33 = vld [vmem:[#allocation6 + $0x6b8] sm:$0xf0]  ;;  %v10283_v30 = vld [vmem:[#allocation6 + $0x52c] sm:$0xf] }
 0x3fb   :  { %v9317_v15 = vor.u32 %v10331_v32, %v9314_v33  ;;  %v9170_v40 = vld [vmem:[#allocation6 + $0x598] sm:$0xf0]  ;;  %v5735_v20 = vpop.f32.mrf.mxu2  ;;  %v10315_v32 = vld [vmem:[#allocation6 + $0x62c] sm:$0xf]  ;;  %v9125_v37 = vor.u32 %v10283_v30, %v9122_v31 }
 0x3fc   :  { %5977 = vmatpush.bf16.msra.mxu1 %v8613_v42  ;;  %v9298_v42 = vld [vmem:[#allocation6 + $0x698] sm:$0xf0]  ;;  %v10375_v31 = vld [vmem:[#allocation9 + $0x8] sm:$0xff] }
 0x3fd   :  { %5947 = vmatpush.bf16.msrb.mxu3 %v9441_v12  ;;  %v9377_v12 = vor.u32 %v10349_v63, %v9376_v25  ;;  %v9250_v33 = vld [vmem:[#allocation6 + $0x638] sm:$0xf0] }
 0x3fe   :  { %5990 = vmatpush.bf16.msra.mxu2 %v8741_v47  ;;  %5965 = vmatpush.bf16.msra.mxu0 %v8469_v6  ;;  %v5759_v43 = vpop.f32.mrf.mxu0  ;;  %v9392_v6 = vld [vmem:[#allocation6 + $0x748] sm:$0xf]  ;;  %v8866_v20 = vld [vmem:[#allocation6 + $0x338] sm:$0xf0] }
 0x3ff   :  { %v5760_v48 = vadd.f32 %v5759_v43, %v4359_v4  ;;  %v8997_v4 = vor.u32 %v10251_v60, %v8994_v29  ;;  %v8850_v60 = vld [vmem:[#allocation6 + $0x318] sm:$0xf0] }
 0x400   :  { %5978 = vmatpush.bf16.msra.mxu1 %v8597_v1  ;;  %v5772_v47 = vpop.f32.mrf.mxu1  ;;  %v10353_v1 = vld [vmem:[#allocation6 + $0x754] sm:$0xf0]  ;;  %v10389_v29 = vld [vmem:[#allocation9 + $0x78] sm:$0xff] }
 0x401   :  { %5966 = vmatmul.bf16.vlgmr.msra.gmra.mxu0 %v10817_v23  ;;  %v10295_v23 = vld [vmem:[#allocation6 + $0x58c] sm:$0xf]  ;;  %5948 = vmatpush.bf16.msrb.mxu3 %v9425_v38  ;;  %v5773_v5 = vadd.f32 %v5772_v47, %v5760_v48  ;;  %v9393_v46 = vor.u32 %v10353_v1, %v9392_v6  ;;  %v9361_v38 = vor.u32 %v10345_v35, %v9360_v34  ;;  %v10380_v6 = vld [vmem:[#allocation9 + $0x30] sm:$0xff] }
 0x402   :  { %5991 = vmatpush.bf16.msra.mxu2 %v8725_v10  ;;  %6010 = vmatpush.bf16.msrb.mxu0 %v9093_v13  ;;  %v9173_v45 = vor.u32 %v10295_v23, %v9170_v40  ;;  %v10255_v10 = vld [vmem:[#allocation6 + $0x44c] sm:$0xf]  ;;  %v9010_v13 = vld [vmem:[#allocation6 + $0x458] sm:$0xf0] }
 0x403   :  { %5979 = vmatmul.bf16.vlgmr.msra.gmra.mxu1 %v10820_v56  ;;  %v10327_v56 = vld [vmem:[#allocation6 + $0x68c] sm:$0xf]  ;;  %v8978_v23 = vld [vmem:[#allocation6 + $0x418] sm:$0xf0] }
 0x404   :  { %6023 = vmatpush.bf16.msrb.mxu1 %v9221_v14  ;;  %v9301_v55 = vor.u32 %v10327_v56, %v9298_v42  ;;  %v9285_v14 = vor.u32 %v10323_v0, %v9282_v2  ;;  %v10279_v40 = vld [vmem:[#allocation6 + $0x50c] sm:$0xf]  ;;  %v9106_v56 = vld [vmem:[#allocation6 + $0x518] sm:$0xf0]  ;;  %v8981_v50 = vor.u32 %v10247_v51, %v8978_v23  ;;  %v8933_v0 = vor.u32 %v10235_v36, %v8930_v16 }
 0x405   :  { %5992 = vmatmul.bf16.vlgmr.msra.gmra.mxu2 %v10822_v17  ;;  %v10357_v17 = vld [vmem:[#allocation6 + $0x774] sm:$0xf0]  ;;  %v9109_v54 = vor.u32 %v10279_v40, %v9106_v56  ;;  %v10231_v1 = vld [vmem:[#allocation6 + $0x38c] sm:$0xf]  ;;  %v9426_v56 = vld [vmem:[#allocation6 + $0x798] sm:$0xf0] }
 0x406   :  { %6036 = vmatpush.bf16.msrb.mxu2 %v9349_v18  ;;  %6011 = vmatpush.bf16.msrb.mxu0 %v9077_v27  ;;  %v9409_v58 = vor.u32 %v10357_v17, %v9408_v44  ;;  %v9138_v18 = vld [vmem:[#allocation6 + $0x558] sm:$0xf0]  ;;  %v5761_v57 = vpop.f32.mrf.mxu0  ;;  %v9013_v27 = vor.u32 %v10255_v10, %v9010_v13  ;;  %v10311_v44 = vld [vmem:[#allocation6 + $0x60c] sm:$0xf] }
 0x407   :  { %v9234_v17 = vld [vmem:[#allocation6 + $0x618] sm:$0xf0]  ;;  %v10227_v10 = vld [vmem:[#allocation6 + $0x36c] sm:$0xf] }
 0x408   :  { %6024 = vmatpush.bf16.msrb.mxu1 %v9205_v28  ;;  %5949 = vmatpush.bf16.msrb.mxu3 %v9409_v58  ;;  %v5774_v26 = vpop.f32.mrf.mxu1  ;;  %v9141_v28 = vor.u32 %v10287_v24, %v9138_v18  ;;  %v5785_v43 = vpop.f32.mrf.mxu2  ;;  %v9237_v48 = vor.u32 %v10311_v44, %v9234_v17  ;;  %v10381_v58 = vld [vmem:[#allocation9 + $0x38] sm:$0xff]  ;;  %v10223_v18 = vld [vmem:[#allocation6 + $0x34c] sm:$0xf]  ;;  %v4360_v17 = vperm.slane %v10887_v39, 2 }
 0x409   :  { %v10909_v47 = vadd.f32 %v5785_v43, %v5773_v5  ;;  %v8914_v5 = vld [vmem:[#allocation6 + $0x398] sm:$0xf0]  ;;  %v10367_v35 = vld [vmem:[#allocation6 + $0x7cc] sm:$0xf] }
 0x40a   :  { %6037 = vmatpush.bf16.msrb.mxu2 %v9333_v11  ;;  %6012 = vmatpush.bf16.msrb.mxu0 %v9061_v41  ;;  %v9269_v11 = vor.u32 %v10319_v19, %v9266_v49  ;;  %v10243_v41 = vld [vmem:[#allocation6 + $0x3ec] sm:$0xf]  ;;  %v8898_v13 = vld [vmem:[#allocation6 + $0x378] sm:$0xf0] }
 0x40b   :  { %v8901_v24 = vor.u32 %v10227_v10, %v8898_v13  ;;  %v10219_v49 = vld [vmem:[#allocation6 + $0x32c] sm:$0xf] }
 0x40c   :  { %6025 = vmatpush.bf16.msrb.mxu1 %v9189_v62  ;;  %5950 = vmatpush.bf16.msrb.mxu3 %v9393_v46  ;;  %v8962_v62 = vld [vmem:[#allocation6 + $0x3f8] sm:$0xf0]  ;;  %v8869_v26 = vor.u32 %v10219_v49, %v8866_v20  ;;  %v10363_v51 = vld [vmem:[#allocation6 + $0x7ac] sm:$0xf] }
 0x40d   :  { %v8965_v42 = vor.u32 %v10243_v41, %v8962_v62  ;;  %v9458_v41 = vld [vmem:[#allocation6 + $0x7d8] sm:$0xf0]  ;;  %v10374_v62 = vld [vmem:[#allocation9] sm:$0xff]  ;;  %v10359_v40 = vld [vmem:[#allocation6 + $0x78c] sm:$0xf] }
 0x40e   :  { %6038 = vmatpush.bf16.msrb.mxu2 %v9317_v15  ;;  %6013 = vmatpush.bf16.msrb.mxu0 %v9045_v53  ;;  %v9253_v15 = vor.u32 %v10315_v32, %v9250_v33  ;;  %v10239_v53 = vld [vmem:[#allocation6 + $0x3cc] sm:$0xf]  ;;  %v10388_v33 = vld [vmem:[#allocation9 + $0x70] sm:$0xff]  ;;  %v9429_v44 = vor.u32 %v10359_v40, %v9426_v56 }
 0x40f   :  { %v10355_v43 = vld [vmem:[#allocation6 + $0x76c] sm:$0xf] }
 0x410   :  { %6026 = vmatpush.bf16.msrb.mxu1 %v9173_v45  ;;  %5951 = vmatpush.bf16.msrb.mxu3 %v9377_v12  ;;  %v8946_v45 = vld [vmem:[#allocation6 + $0x3d8] sm:$0xf0]  ;;  %v5787_v2 = vpop.f32.mrf.mxu2  ;;  %v10351_v16 = vld [vmem:[#allocation6 + $0x74c] sm:$0xf] }
 0x411   :  { %v9474_v12 = vld [vmem:[#allocation6 + $0x7f8] sm:$0xf0]  ;;  %v10391_v56 = vld [vmem:[#allocation9 + $0x88] sm:$0xff] }
 0x412   :  { %6039 = vmatpush.bf16.msrb.mxu2 %v9301_v55  ;;  %6014 = vmatpush.bf16.msrb.mxu0 %v9029_v7  ;;  %v8949_v55 = vor.u32 %v10239_v53, %v8946_v45  ;;  %v8917_v7 = vor.u32 %v10231_v1, %v8914_v5  ;;  %v9410_v53 = vld [vmem:[#allocation6 + $0x778] sm:$0xf0]  ;;  %v5734_v45 = vadd.f32 %v10907_v21, %v10900_v52  ;;  %v10383_v1 = vld [vmem:[#allocation9 + $0x48] sm:$0xff] }
 0x413   :  { %v9378_v52 = vld [vmem:[#allocation6 + $0x738] sm:$0xf0] }
 0x414   :  { %6027 = vmatpush.bf16.msrb.mxu1 %v9157_v9  ;;  %5952 = vmatpush.bf16.msrb.mxu3 %v9361_v38  ;;  %v10379_v9 = vld [vmem:[#allocation9 + $0x28] sm:$0xff]  ;;  %v10386_v38 = vld [vmem:[#allocation9 + $0x60] sm:$0xff] }
 0x416   :  { %6040 = vmatpush.bf16.msrb.mxu2 %v9285_v14  ;;  %6015 = vmatpush.bf16.msrb.mxu0 %v9013_v27  ;;  %v10376_v27 = vld [vmem:[#allocation9 + $0x10] sm:$0xff] }
 0x417   :  { %5953 = vmatmul.bf16.vlgmr.msrb.gmra.mxu3 %v10883_v8 }
 0x418   :  { %6028 = vmatpush.bf16.msrb.mxu1 %v9141_v28  ;;  %5997 = vmatpush.bf16.msra.mxu3 %v8965_v42  ;;  %v10215_v28 = vld [vmem:[#allocation6 + $0x30c] sm:$0xf]  ;;  %v10385_v42 = vld [vmem:[#allocation9 + $0x58] sm:$0xff] }
 0x419   :  { %v8853_v30 = vor.u32 %v10215_v28, %v8850_v60 }
 0x41a   :  { %6041 = vmatpush.bf16.msrb.mxu2 %v9269_v11  ;;  %6016 = vmatpush.bf16.msrb.mxu0 %v8997_v4  ;;  %v10371_v11 = vld [vmem:[#allocation6 + $0x7ec] sm:$0xf] }
 0x41b   :  { %v9477_v32 = vor.u32 %v10371_v11, %v9474_v12  ;;  %v10387_v4 = vld [vmem:[#allocation9 + $0x68] sm:$0xff] }
 0x41c   :  { %6029 = vmatpush.bf16.msrb.mxu1 %v9125_v37  ;;  %5998 = vmatpush.bf16.msra.mxu3 %v8949_v55  ;;  %v9461_v37 = vor.u32 %v10367_v35, %v9458_v41  ;;  %v10396_v41 = vld [vmem:[#allocation9 + $0xb0] sm:$0xff] }
 0x41e   :  { %6042 = vmatpush.bf16.msrb.mxu2 %v9253_v15  ;;  %6017 = vmatpush.bf16.msrb.mxu0 %v8981_v50  ;;  %v10915_v14 = vpop.f32.mrf.mxu0  ;;  %v9442_v15 = vld [vmem:[#allocation6 + $0x7b8] sm:$0xf0] }
 0x41f   :  { %v9445_v23 = vor.u32 %v10363_v51, %v9442_v15  ;;  %v10392_v15 = vld [vmem:[#allocation9 + $0x90] sm:$0xff] }
 0x420   :  { %6030 = vmatpush.bf16.msrb.mxu1 %v9109_v54  ;;  %5999 = vmatpush.bf16.msra.mxu3 %v8933_v0  ;;  %v10917_v46 = vpop.f32.mrf.mxu1  ;;  %v9394_v0 = vld [vmem:[#allocation6 + $0x758] sm:$0xf0] }
 0x421   :  { %6018 = vmatmul.bf16.vlgmr.msrb.gmra.mxu0 %v10853_v59  ;;  %v10378_v59 = vld [vmem:[#allocation9 + $0x20] sm:$0xff] }
 0x422   :  { %6043 = vmatpush.bf16.msrb.mxu2 %v9237_v48  ;;  %6338 = vmatpush.bf16.msra.mxu0 %v10381_v58  ;;  %v9413_v48 = vor.u32 %v10355_v43, %v9410_v53 }
 0x423   :  { %6031 = vmatmul.bf16.vlgmr.msrb.gmra.mxu1 %v10855_v61  ;;  %v8882_v61 = vld [vmem:[#allocation6 + $0x358] sm:$0xf0] }
 0x424   :  { %6000 = vmatpush.bf16.msra.mxu3 %v8917_v7  ;;  %v8885_v19 = vor.u32 %v10223_v18, %v8882_v61  ;;  %6351 = vmatpush.bf16.msra.mxu1 %v10389_v29  ;;  %v10347_v7 = vld [vmem:[#allocation6 + $0x72c] sm:$0xf]  ;;  %v10382_v18 = vld [vmem:[#allocation9 + $0x40] sm:$0xff] }
 0x425   :  { %6044 = vmatmul.bf16.vlgmr.msrb.gmra.mxu2 %v10861_v3  ;;  %v10377_v3 = vld [vmem:[#allocation9 + $0x18] sm:$0xff] }
 0x426   :  { %6339 = vmatpush.bf16.msra.mxu0 %v10380_v6  ;;  %v5813_v63 = vpop.f32.mrf.mxu0  ;;  %v9397_v6 = vor.u32 %v10351_v16, %v9394_v0 }
 0x428   :  { %6001 = vmatpush.bf16.msra.mxu3 %v8901_v24  ;;  %v10919_v25 = vpop.f32.mrf.mxu2  ;;  %v5826_v57 = vpop.f32.mrf.mxu1  ;;  %6352 = vmatpush.bf16.msra.mxu1 %v10388_v33 }
 0x42a   :  { %6340 = vmatpush.bf16.msra.mxu0 %v10379_v9 }
 0x42c   :  { %6002 = vmatpush.bf16.msra.mxu3 %v8885_v19  ;;  %6353 = vmatpush.bf16.msra.mxu1 %v10387_v4  ;;  %v10343_v19 = vld [vmem:[#allocation6 + $0x70c] sm:$0xf]  ;;  %v10394_v4 = vld [vmem:[#allocation9 + $0xa0] sm:$0xff] }
 0x42e   :  { %6341 = vmatpush.bf16.msra.mxu0 %v10378_v59  ;;  %v9381_v59 = vor.u32 %v10347_v7, %v9378_v52 }
 0x430   :  { %6003 = vmatpush.bf16.msra.mxu3 %v8869_v26  ;;  %v5839_v34 = vpop.f32.mrf.mxu2  ;;  %6354 = vmatpush.bf16.msra.mxu1 %v10386_v38 }
 0x432   :  { %6342 = vmatpush.bf16.msra.mxu0 %v10377_v3  ;;  %v9362_v3 = vld [vmem:[#allocation6 + $0x718] sm:$0xf0] }
 0x433   :  { %v9365_v49 = vor.u32 %v10343_v19, %v9362_v3  ;;  %v10400_v19 = vld [vmem:[#allocation9 + $0xd0] sm:$0xff]  ;;  %v10399_v3 = vld [vmem:[#allocation9 + $0xc8] sm:$0xff] }
 0x434   :  { %6004 = vmatpush.bf16.msra.mxu3 %v8853_v30  ;;  %6355 = vmatpush.bf16.msra.mxu1 %v10385_v42 }
 0x436   :  { %6343 = vmatpush.bf16.msra.mxu0 %v10376_v27  ;;  %v5746_v54 = vpop.f32.mrf.mxu3 }
 0x437   :  { %6005 = vmatmul.bf16.vlgmr.msra.gmra.mxu3 %v10824_v22  ;;  %v10384_v22 = vld [vmem:[#allocation9 + $0x50] sm:$0xff]  ;;  %v5747_v36 = vadd.f32 %v5746_v54, %v5734_v45 }
 0x438   :  { %6049 = vmatpush.bf16.msrb.mxu3 %v9477_v32  ;;  %6356 = vmatpush.bf16.msra.mxu1 %v10384_v22 }
 0x439   :  { %vm6062_vm8 = vcmp.gt.f32.partialorder %v5747_v36, 0.0  ;;  %v6066_v39 = vmul.f32 0.2, %v5747_v36 }
 0x43a   :  { %6344 = vmatpush.bf16.msra.mxu0 %v10375_v31  ;;  %v10397_v31 = vld [vmem:[#allocation9 + $0xb8] sm:$0xff] }
 0x43b   :  { %v6070_v5 = vsel %vm6062_vm8, %v5747_v36, %v6066_v39  ;;  %6364 = vmatpush.bf16.msra.mxu2 %v10397_v31 }
 0x43c   :  { %6050 = vmatpush.bf16.msrb.mxu3 %v9461_v37  ;;  %v6074_v21 = vpack.c.bf16 %v6070_v5, %v6070_v5  ;;  %6357 = vmatpush.bf16.msra.mxu1 %v10383_v1  ;;  %v10426_v37 = vld [vmem:[#allocation7] sm:$0xf] }
 0x43d   :  { %v4361_v51 = vperm.slane %v10426_v37, 3 }
 0x43e   :  { %6345 = vmatpush.bf16.msra.mxu0 %v10374_v62  ;;  %v5863_v50 = vpop.f32.mrf.mxu0  ;;  %v5748_v24 = vpop.f32.mrf.mxu3 }
 0x43f   :  { %v5864_v55 = vadd.f32 %v5863_v50, %v4360_v17  ;;  %6365 = vmatpush.bf16.msra.mxu2 %v10396_v41  ;;  %v10390_v17 = vld [vmem:[#allocation9 + $0x80] sm:$0xff]  ;;  %v10403_v24 = vld [vmem:[#allocation9 + $0xe8] sm:$0xff] }
 0x440   :  { %6051 = vmatpush.bf16.msrb.mxu3 %v9445_v23  ;;  %v5876_v58 = vpop.f32.mrf.mxu1  ;;  %6358 = vmatpush.bf16.msra.mxu1 %v10382_v18 }
 0x441   :  { %v5877_v2 = vadd.f32 %v5876_v58, %v5864_v55  ;;  %6346 = vmatmul.bf16.vlgmr.msra.gmra.mxu0 %v6074_v21  ;;  %v10404_v21 = vld [vmem:[#allocation9 + $0xf0] sm:$0xff] }
 0x444   :  { %6052 = vmatpush.bf16.msrb.mxu3 %v9429_v44 }
 0x446   :  { %v5865_v13 = vpop.f32.mrf.mxu0  ;;  %v5798_v63 = vpop.f32.mrf.mxu3 }
 0x447   :  { %v5799_v57 = vadd.f32 %v5798_v63, %v10909_v47 }
 0x448   :  { %6053 = vmatpush.bf16.msrb.mxu3 %v9413_v48  ;;  %v5889_v9 = vpop.f32.mrf.mxu2  ;;  %v5878_v61 = vpop.f32.mrf.mxu1 }
 0x449   :  { %v10925_v10 = vadd.f32 %v5889_v9, %v5877_v2  ;;  %v5812_v27 = vadd.f32 %v10915_v14, %v5799_v57  ;;  %v10395_v14 = vld [vmem:[#allocation9 + $0xa8] sm:$0xff]  ;;  %v10405_v2 = vld [vmem:[#allocation9 + $0xf8] sm:$0xff] }
 0x44a   :  { %6366 = vmatpush.bf16.msra.mxu2 %v10395_v14  ;;  %v10401_v61 = vld [vmem:[#allocation9 + $0xd8] sm:$0xff] }
 0x44b   :  { %v5825_v60 = vadd.f32 %v10917_v46, %v5812_v27 }
 0x44c   :  { %6054 = vmatpush.bf16.msrb.mxu3 %v9397_v6 }
 0x44d   :  { %v5838_v11 = vadd.f32 %v10919_v25, %v5825_v60  ;;  %v10393_v25 = vld [vmem:[#allocation9 + $0x98] sm:$0xff] }
 0x44e   :  { %v5800_v26 = vpop.f32.mrf.mxu3  ;;  %6367 = vmatpush.bf16.msra.mxu2 %v10394_v4 }
 0x450   :  { %6055 = vmatpush.bf16.msrb.mxu3 %v9381_v59  ;;  %v5891_v20 = vpop.f32.mrf.mxu2  ;;  %v10402_v59 = vld [vmem:[#allocation9 + $0xe0] sm:$0xff] }
 0x451   :  { %v10398_v20 = vld [vmem:[#allocation9 + $0xc0] sm:$0xff] }
 0x452   :  { %6368 = vmatpush.bf16.msra.mxu2 %v10393_v25 }
 0x454   :  { %6056 = vmatpush.bf16.msrb.mxu3 %v9365_v49 }
 0x456   :  { %6369 = vmatpush.bf16.msra.mxu2 %v10392_v15 }
 0x457   :  { %6057 = vmatmul.bf16.vlgmr.msrb.gmra.mxu3 %v10883_v8  ;;  %v5850_v12 = vpop.f32.mrf.mxu3 }
 0x458   :  { %v5851_v30 = vadd.f32 %v5850_v12, %v5838_v11  ;;  %6377 = vmatpush.bf16.msra.mxu3 %v10405_v2 }
 0x45a   :  { %vm6063_vm9 = vcmp.gt.f32.partialorder %v5851_v30, 0.0  ;;  %v6067_v33 = vmul.f32 0.2, %v5851_v30  ;;  %6370 = vmatpush.bf16.msra.mxu2 %v10391_v56 }
 0x45c   :  { %v6071_v35 = vsel %vm6063_vm9, %v5851_v30, %v6067_v33  ;;  %6378 = vmatpush.bf16.msra.mxu3 %v10404_v21 }
 0x45d   :  { %v6075_v47 = vpack.c.bf16 %v6071_v35, %v6071_v35 }
 0x45e   :  { %v5915_v28 = vpop.f32.mrf.mxu0  ;;  %6371 = vmatpush.bf16.msra.mxu2 %v10390_v17 }
 0x45f   :  { %v5852_v62 = vpop.f32.mrf.mxu3  ;;  %6359 = vmatmul.bf16.vlgmr.msra.gmra.mxu1 %v6075_v47 }
 0x460   :  { %v5928_v29 = vpop.f32.mrf.mxu1  ;;  %6379 = vmatpush.bf16.msra.mxu3 %v10403_v24 }
 0x464   :  { %6380 = vmatpush.bf16.msra.mxu3 %v10402_v59 }
 0x466   :  { %v5917_v34 = vpop.f32.mrf.mxu0 }
 0x467   :  { %v10418_v34 = vld [vmem:[#allocation10] ss:$0 sm:$0xff] }
 0x468   :  { %v5941_v32 = vpop.f32.mrf.mxu2  ;;  %v5930_v8 = vpop.f32.mrf.mxu1  ;;  %6381 = vmatpush.bf16.msra.mxu3 %v10401_v61 }
 0x46c   :  { %6382 = vmatpush.bf16.msra.mxu3 %v10400_v19 }
 0x470   :  { %v5943_v46 = vpop.f32.mrf.mxu2  ;;  %6383 = vmatpush.bf16.msra.mxu3 %v10399_v3 }
 0x474   :  { %6384 = vmatpush.bf16.msra.mxu3 %v10398_v20 }
 0x477   :  { %v5902_v44 = vpop.f32.mrf.mxu3 }
 0x478   :  { %v5903_v48 = vadd.f32 %v5902_v44, %v10925_v10 }
 0x47a   :  { %v5916_v55 = vadd.f32 %v5915_v28, %v5903_v48 }
 0x47c   :  { %v5929_v58 = vadd.f32 %v5928_v29, %v5916_v55 }
 0x47e   :  { %v5967_v38 = vpop.f32.mrf.mxu0  ;;  %v5942_v0 = vadd.f32 %v5941_v32, %v5929_v58 }
 0x47f   :  { %v5968_v40 = vadd.f32 %v5967_v38, %v4361_v51  ;;  %v5904_v50 = vpop.f32.mrf.mxu3 }
 0x480   :  { %v5980_v23 = vpop.f32.mrf.mxu1 }
 0x481   :  { %v5981_v42 = vadd.f32 %v5980_v23, %v5968_v40 }
 0x486   :  { %v5969_v45 = vpop.f32.mrf.mxu0 }
 0x488   :  { %v5993_v43 = vpop.f32.mrf.mxu2  ;;  %v5982_v22 = vpop.f32.mrf.mxu1 }
 0x489   :  { %v5994_v53 = vadd.f32 %v5993_v43, %v5981_v42 }
 0x490   :  { %v5995_v54 = vpop.f32.mrf.mxu2 }
 0x49a   :  { %v5954_v39 = vpop.f32.mrf.mxu3 }
 0x49b   :  { %v5955_v6 = vadd.f32 %v5954_v39, %v5942_v0 }
 0x49d   :  { %vm6064_vm10 = vcmp.gt.f32.partialorder %v5955_v6, 0.0  ;;  %v6068_v1 = vmul.f32 0.2, %v5955_v6 }
 0x49e   :  { %v6019_v36 = vpop.f32.mrf.mxu0 }
 0x49f   :  { %v6072_v9 = vsel %vm6064_vm10, %v5955_v6, %v6068_v1 }
 0x4a0   :  { %v6032_v16 = vpop.f32.mrf.mxu1  ;;  %v6076_v13 = vpack.c.bf16 %v6072_v9, %v6072_v9 }
 0x4a2   :  { %v5956_v10 = vpop.f32.mrf.mxu3  ;;  %6372 = vmatmul.bf16.vlgmr.msra.gmra.mxu2 %v6076_v13 }
 0x4a6   :  { %v6021_v7 = vpop.f32.mrf.mxu0 }
 0x4a8   :  { %v6045_v5 = vpop.f32.mrf.mxu2  ;;  %v6034_v52 = vpop.f32.mrf.mxu1 }
 0x4b0   :  { %v6047_v18 = vpop.f32.mrf.mxu2 }
 0x4ba   :  { %v6006_v49 = vpop.f32.mrf.mxu3 }
 0x4bb   :  { %v6007_v26 = vadd.f32 %v6006_v49, %v5994_v53 }
 0x4bd   :  { %v6020_v27 = vadd.f32 %v6019_v36, %v6007_v26 }
 0x4be   :  { %v6347_v57 = vpop.f32.mrf.mxu0 }
 0x4bf   :  { %v6033_v60 = vadd.f32 %v6032_v16, %v6020_v27  ;;  %v6348_v8 = vadd.f32 %v10418_v34, %v6347_v57 }
 0x4c1   :  { %v6046_v29 = vadd.f32 %v6045_v5, %v6033_v60 }
 0x4c2   :  { %v6008_v63 = vpop.f32.mrf.mxu3 }
 0x4c6   :  { %v6349_v28 = vpop.f32.mrf.mxu0 }
 0x4da   :  { %v6058_v11 = vpop.f32.mrf.mxu3 }
 0x4db   :  { %v6059_v12 = vadd.f32 %v6058_v11, %v6046_v29 }
 0x4dc   :  { %v6360_v35 = vpop.f32.mrf.mxu1 }
 0x4dd   :  { %vm6065_vm11 = vcmp.gt.f32.partialorder %v6059_v12, 0.0  ;;  %v6069_v30 = vmul.f32 0.2, %v6059_v12  ;;  %v6361_v47 = vadd.f32 %v6360_v35, %v6348_v8 }
 0x4df   :  { %v6073_v31 = vsel %vm6065_vm11, %v6059_v12, %v6069_v30 }
 0x4e0   :  { %v6077_v32 = vpack.c.bf16 %v6073_v31, %v6073_v31 }
 0x4e2   :  { %v6060_v33 = vpop.f32.mrf.mxu3  ;;  %6385 = vmatmul.bf16.vlgmr.msra.gmra.mxu3 %v6077_v32 }
 0x4e4   :  { %v6362_v41 = vpop.f32.mrf.mxu1 }
 0x525   :  { %v6373_v62 = vpop.f32.mrf.mxu2 }
 0x526   :  { %v6374_v46 = vadd.f32 %v6373_v62, %v6361_v47 }
 0x52d   :  { %v6375_v14 = vpop.f32.mrf.mxu2 }
 0x565   :  { %v6386_v4 = vpop.f32.mrf.mxu3 }
 0x566   :  { %v6387_v25 = vadd.f32 %v6386_v4, %v6374_v46 }
 0x568   :  { %v6390_v37 = vsub.f32 0.0, %v6387_v25 }
 0x56a   :  { %v6391_v51 = vmul.f32 1.442695, %v6390_v37 }
 0x56c   :  { %10419 = vpow2.f32 %v6391_v51 }
 0x56d   :  { %v6388_v15 = vpop.f32.mrf.mxu3 }
 0x572   :  { %v10420_v38 = vpop.eup %10419 }
 0x573   :  { %v6393_v23 = vadd.f32 1.0, %v10420_v38 }
 0x575   :  { %10421 = vrcp.f32 %v6393_v23 }
 0x57b   :  { %v10422_v40 = vpop.eup %10421 }
 0x57c   :  { %v6395_v56 = vmax.f32 %v10422_v40, 0.0 }
 0x57e   :  { %v6396_v42 = vmin.f32 %v6395_v56, 1.0 }
 0x580   :  { %6397 = vst [vmem:[%s10943_s7] sm:$0xff] %v6396_v42 }
 0x581   :  { %6402 = vsyncpa [#allocation3], 1 }
 0x582   :  { %6403 = vsyncpa [#allocation5], 1 }
 0x583   :  { %6404 = vsyncpa [#allocation8], 1 }
 0x584   :  { %6405 = vsyncpa [#allocation11], 1 }

</bundles_post_ra>
